<compile_context>
chip_gen: v5e
topology: v5e:2x2
jax: 0.10.0
libtpu: 0.0.40
codegen_flags: <defaults>
</compile_context>

<pallas_src>
import functools

import jax
import jax.numpy as jnp
from jax.experimental import pallas as pl
from jax.experimental.pallas import tpu as pltpu


def _exit_kernel(x_ref, w1_ref, b1_ref, w2_ref, b2_ref, w3_ref, b3_ref,
                 o_ref, pad_ref, *acc_scratch, stride):
    # One (batch element, output-row tile) per grid step.
    H, W, Cin = x_ref.shape[1], x_ref.shape[2], x_ref.shape[3]
    Cp = w1_ref.shape[1]
    Wo = (W + 2 - 3) // stride + 1
    THo = o_ref.shape[1]               # output rows produced by this tile
    TP = pad_ref.shape[0] - 2          # padded-h rows this tile consumes
    TPx = min(TP, H)                   # x rows loaded per tile
    r = pl.program_id(1)

    # Rows of h (= relu(bn1(conv1 x))) needed by this tile, in h coordinates:
    # [h_start, h_start + TP).  h rows outside [0, H) are conv2's zero pad.
    h_start = r * (THo * stride) - 1
    xs = jnp.clip(h_start, 0, H - TPx)     # clamped x row-window start
    dst = xs - h_start + 1                 # where that window lands in pad_ref

    # ---- conv1 (1x1, BN folded) + relu on the x row window ------------------
    # x is cast to bf16 here (not in the wrapper) so no extra XLA pass over x.
    x_slab = x_ref[0, pl.ds(xs, TPx), :, :].astype(jnp.bfloat16)
    h1 = jnp.dot(x_slab.reshape(TPx * W, Cin), w1_ref[...],
                 preferred_element_type=jnp.float32)
    h1 = jnp.maximum(h1 + b1_ref[...], 0.0)
    h1 = h1.reshape(TPx, W, Cp).astype(pad_ref.dtype)

    # ---- stage into the tile-local zero-padded conv2 input ------------------
    zdt = pad_ref.dtype
    # Rows 1 and TP are the only rows in the read range [1, TP] that can be
    # zero padding; pre-zero them (overwritten below whenever they are real).
    pad_ref[1:2, :, :] = jnp.zeros((1, W + 2, Cp), zdt)
    pad_ref[TP:TP + 1, :, :] = jnp.zeros((1, W + 2, Cp), zdt)
    pad_ref[:, 0:1, :] = jnp.zeros((TP + 2, 1, Cp), zdt)
    pad_ref[:, W + 1:W + 2, :] = jnp.zeros((TP + 2, 1, Cp), zdt)
    pad_ref[pl.ds(dst, TPx), 1:W + 1, :] = h1

    # ---- conv2 (3x3, pad=1, stride, BN folded) + relu ------------------------
    if stride == 1:
        def tap(ky, kx):
            return pad_ref[1 + ky:1 + ky + THo, kx:kx + Wo, :].reshape(
                THo * Wo, Cp)
    else:
        # TODO(synk): stride > 1 path (one-time parity split of columns plus
        # strided row slices) is retained from the previous version but is
        # not exercised by the self-test below (the module default is
        # stride=1).
        padv = pad_ref[...]
        cols = [padv[:, p::stride, :] for p in range(stride)]

        def tap(ky, kx):
            c = cols[kx % stride]
            return c[1 + ky:1 + ky + (THo - 1) * stride + 1:stride,
                     kx // stride:kx // stride + Wo, :].reshape(THo * Wo, Cp)

    if not acc_scratch:
        # Tiny channel count: a single K = 9*Cp MXU push.
        lhs = jnp.concatenate(
            [tap(ky, kx) for ky in range(3) for kx in range(3)], axis=-1)
        acc = jnp.dot(lhs, w2_ref[...], preferred_element_type=jnp.float32)
    else:
        # Larger channel count: accumulate tap-by-tap into a VMEM f32 scratch
        # so only one (THo*Wo, Cp) tap is live at a time (bounded vreg/VMEM
        # pressure; on v7x the MRB accumulates in place).
        acc_ref = acc_scratch[0]
        acc_ref[...] = jnp.zeros_like(acc_ref)
        for t in range(9):
            ky, kx = t // 3, t % 3
            acc_ref[...] += jnp.dot(tap(ky, kx),
                                    w2_ref[t * Cp:(t + 1) * Cp, :],
                                    preferred_element_type=jnp.float32)
        acc = acc_ref[...]
    h2 = jnp.maximum(acc + b2_ref[...], 0.0)

    # ---- conv3 (1x1, BN folded) + relu ---------------------------------------
    h3 = jnp.dot(h2.astype(w3_ref.dtype), w3_ref[...],
                 preferred_element_type=jnp.float32)
    h3 = jnp.maximum(h3 + b3_ref[...], 0.0)

    if len(o_ref.shape) == 3:
        # Lane-dense store: with Cp < 128 a (.., Wo, Cp) output would use only
        # Cp of 128 lanes and every store/writeback would be a masked partial
        # vst; (THo, Wo*Cp) slabs keep the writeback dense.
        o_ref[0] = h3.reshape(THo, Wo * Cp).astype(o_ref.dtype)
    else:
        o_ref[0] = h3.reshape(THo, Wo, Cp).astype(o_ref.dtype)


def _row_block_candidates(Ho, lane_dense):
    # Row tile must divide Ho; for the lane-dense (3-D) output the block's
    # second-to-last dim must be a multiple of 8 or equal to Ho.
    return [d for d in range(1, Ho + 1)
            if Ho % d == 0 and (not lane_dense or d % 8 == 0 or d == Ho)]


def _pick_row_block(Ho, lane_dense, target_rows, row_block):
    cands = _row_block_candidates(Ho, lane_dense)
    cap = row_block if row_block is not None else target_rows
    ok = [d for d in cands if d <= cap]
    return ok[-1] if ok else cands[0]


_CFG_CACHE = []   # (lane_dense, single_buffer_weights) configs known to compile


def exit_forward_nhwc(x_nhwc, params, *, stride=1, out_dtype=jnp.bfloat16,
                      row_block=None):
    """Exit-block forward, NHWC in / NHWC out (no boundary transposes)."""
    x = x_nhwc                         # consumed in caller dtype; cast in-kernel
    N, H, W, Cin = x.shape
    Cp = params["w1"].shape[1]
    Ho = (H + 2 - 3) // stride + 1
    Wo = (W + 2 - 3) // stride + 1
    out_dtype = jnp.dtype(out_dtype)

    # Fold BN scales into the conv weights; keep shifts as f32 biases.
    w1 = (params["w1"] * params["s1"]).astype(jnp.bfloat16)                      # (Cin, Cp)
    w2 = (params["w2"].reshape(9 * Cp, Cp) * params["s2"]).astype(jnp.bfloat16)  # (9*Cp, Cp)
    w3 = (params["w3"] * params["s3"]).astype(jnp.bfloat16)                      # (Cp, Cp)
    b1 = params["b1"].astype(jnp.float32)                                        # (1, Cp)
    b2 = params["b2"].astype(jnp.float32)
    b3 = params["b3"].astype(jnp.float32)

    # Generation-aware VMEM budget (v7x: 64 MiB/TC, v5e/v6e: 128 MiB).
    try:
        vmem_cap = int(pltpu.get_tpu_info().vmem_capacity_bytes)
    except Exception:
        vmem_cap = 64 * 1024 * 1024
    vmem_guard = min(int(vmem_cap * 0.85), 100 * 1024 * 1024)

    # Rough per-output-row cost of the tile-local working set -> row tile.
    per_row_bytes = (Wo * Cp * (4 + 4 + 4 + 9 * 2)              # acc, h2, h3, taps
                     + stride * (W + 2) * Cp * (2 + 4 + 2))     # pad rows, conv1 out
    target_rows = max(1, (vmem_guard // 3) // max(per_row_bytes, 1))
    if N == 1:         # keep a second parallel axis for megacore at batch 1
        target_rows = min(target_rows, max(8, Ho // 2))

    use_acc = Cp > 32
    weight_bytes = int((w1.size + w2.size + w3.size) * 2
                       + (b1.size + b2.size + b3.size) * 4)
    flops = 2 * N * (H * W * Cin * Cp + Ho * Wo * 9 * Cp * Cp + Ho * Wo * Cp * Cp)

    def build_and_call(lane_dense, single_buffer_weights):
        THo = _pick_row_block(Ho, lane_dense, target_rows, row_block)
        R = Ho // THo
        TP = (THo - 1) * stride + 3

        wmode = {}
        if single_buffer_weights:
            # Constant blocks do not need double buffering (saves w2 VMEM).
            wmode = dict(pipeline_mode=pl.Buffered(buffer_count=1))
        vec = lambda n, r: (0, 0)
        in_specs = [
            pl.BlockSpec((1, H, W, Cin), lambda n, r: (n, 0, 0, 0)),  # x (fetched once per n)
            pl.BlockSpec((Cin, Cp), vec, **wmode),                     # w1 (bf16, BN folded)
            pl.BlockSpec((1, Cp), vec, **wmode),                       # bias1 (f32)
            pl.BlockSpec((9 * Cp, Cp), vec, **wmode),                  # w2
            pl.BlockSpec((1, Cp), vec, **wmode),                       # bias2
            pl.BlockSpec((Cp, Cp), vec, **wmode),                      # w3
            pl.BlockSpec((1, Cp), vec, **wmode),                       # bias3
        ]
        if lane_dense:
            out_shape = jax.ShapeDtypeStruct((N, Ho, Wo * Cp), out_dtype)
            out_specs = pl.BlockSpec((1, THo, Wo * Cp), lambda n, r: (n, r, 0))
        else:
            out_shape = jax.ShapeDtypeStruct((N, Ho, Wo, Cp), out_dtype)
            out_specs = pl.BlockSpec((1, THo, Wo, Cp), lambda n, r: (n, r, 0, 0))

        scratch = [pltpu.VMEM((TP + 2, W + 2, Cp), jnp.bfloat16)]
        if use_acc:
            scratch.append(pltpu.VMEM((THo * Wo, Cp), jnp.float32))

        wbuf = 1 if single_buffer_weights else 2
        est_vmem = (2 * H * W * Cin * x.dtype.itemsize
                    + 2 * THo * Wo * Cp * out_dtype.itemsize
                    + wbuf * weight_bytes
                    + (TP + 2) * (W + 2) * Cp * 2
                    + THo * Wo * Cp * 4
                    + THo * per_row_bytes)
        vmem_limit = min(max(32 * 1024 * 1024, int(est_vmem * 1.5)), vmem_guard)

        bytes_accessed = (int(x.size) * x.dtype.itemsize + weight_bytes
                          + N * Ho * Wo * Cp * out_dtype.itemsize)

        out = pl.pallas_call(
            functools.partial(_exit_kernel, stride=stride),
            out_shape=out_shape,
            grid_spec=pltpu.PrefetchScalarGridSpec(
                num_scalar_prefetch=0,
                grid=(N, R),
                in_specs=in_specs,
                out_specs=out_specs,
                scratch_shapes=scratch),
            compiler_params=pltpu.CompilerParams(
                dimension_semantics=("parallel", "parallel"),
                vmem_limit_bytes=int(vmem_limit)),
            cost_estimate=pl.CostEstimate(flops=flops, transcendentals=0,
                                          bytes_accessed=int(bytes_accessed)),
        )(x, w1, b1, w2, b2, w3, b3)

        if lane_dense:
            out = out.reshape(N, Ho, Wo, Cp)   # free relabel back to NHWC
        return out

    # Config fallback: lane-dense output and single-buffered weights are
    # applied when the running JAX/Mosaic build supports them, otherwise we
    # drop to the plain (previously validated) configuration.
    cfgs = []
    for ld in ([True, False] if Cp < 128 else [False]):
        for sbw in (True, False):
            cfgs.append((ld, sbw))
    for c in _CFG_CACHE:
        if c in cfgs:
            cfgs.remove(c)
            cfgs.insert(0, c)

    last_err = None
    for ld, sbw in cfgs:
        try:
            out = jax.block_until_ready(build_and_call(ld, sbw))
            if (ld, sbw) not in _CFG_CACHE:
                _CFG_CACHE.insert(0, (ld, sbw))
            return out
        except Exception as err:       # unsupported feature -> next config
            last_err = err
    raise last_err


def exit_forward(x_nchw, params, *, stride=1, out_dtype=jnp.bfloat16,
                 row_block=None):
    """PyTorch-layout wrapper: NCHW in / NCHW out."""
    x = jnp.transpose(x_nchw, (0, 2, 3, 1))                 # NCHW -> NHWC
    out = exit_forward_nhwc(x, params, stride=stride, out_dtype=out_dtype,
                            row_block=row_block)
    return jnp.transpose(out, (0, 3, 1, 2))                 # NHWC -> NCHW


def _fold_bn(gamma, beta, mean, var, eps=1e-5):
    scale = gamma / jnp.sqrt(var + eps)
    shift = beta - mean * scale
    return scale.reshape(1, -1), shift.reshape(1, -1)


def make_params(key, inplanes, planes):
    ks = jax.random.split(key, 15)
    w1 = jax.random.normal(ks[0], (inplanes, planes), jnp.float32) * 0.1      # 1x1, IO
    w2 = jax.random.normal(ks[1], (3, 3, planes, planes), jnp.float32) * 0.1  # HWIO
    w3 = jax.random.normal(ks[2], (planes, planes), jnp.float32) * 0.1        # 1x1, IO
    g1 = 1.0 + 0.1 * jax.random.normal(ks[3], (planes,))
    be1 = 0.1 * jax.random.normal(ks[4], (planes,))
    g2 = 1.0 + 0.1 * jax.random.normal(ks[5], (planes,))
    be2 = 0.1 * jax.random.normal(ks[6], (planes,))
    g3 = 1.0 + 0.1 * jax.random.normal(ks[7], (planes,))
    be3 = 0.1 * jax.random.normal(ks[8], (planes,))
    m1 = 0.1 * jax.random.normal(ks[9], (planes,))
    v1 = 0.5 + jnp.abs(jax.random.normal(ks[10], (planes,)))
    m2 = 0.1 * jax.random.normal(ks[11], (planes,))
    v2 = 0.5 + jnp.abs(jax.random.normal(ks[12], (planes,)))
    m3 = 0.1 * jax.random.normal(ks[13], (planes,))
    v3 = 0.5 + jnp.abs(jax.random.normal(ks[14], (planes,)))
    s1, sh1 = _fold_bn(g1, be1, m1, v1)
    s2, sh2 = _fold_bn(g2, be2, m2, v2)
    s3, sh3 = _fold_bn(g3, be3, m3, v3)   # fixed: BN3 folded with its own stats
    return {
        "w1": w1, "s1": s1, "b1": sh1,
        "w2": w2, "s2": s2, "b2": sh2,
        "w3": w3, "s3": s3, "b3": sh3,
    }


def reference_forward(x_nchw, params, *, stride=1):
    """Pure-JAX reference with the same bf16 operand / f32 accumulate scheme."""
    x = jnp.transpose(x_nchw, (0, 2, 3, 1)).astype(jnp.bfloat16)
    dn = ("NHWC", "HWIO", "NHWC")
    w1 = (params["w1"] * params["s1"]).astype(jnp.bfloat16)[None, None]
    w2 = (params["w2"] * params["s2"]).astype(jnp.bfloat16)
    w3 = (params["w3"] * params["s3"]).astype(jnp.bfloat16)[None, None]

    h = jax.lax.conv_general_dilated(x, w1, (1, 1), "VALID",
                                     dimension_numbers=dn,
                                     preferred_element_type=jnp.float32)
    h = jnp.maximum(h + params["b1"][0], 0.0).astype(jnp.bfloat16)
    h = jax.lax.conv_general_dilated(h, w2, (stride, stride),
                                     [(1, 1), (1, 1)], dimension_numbers=dn,
                                     preferred_element_type=jnp.float32)
    h = jnp.maximum(h + params["b2"][0], 0.0).astype(jnp.bfloat16)
    h = jax.lax.conv_general_dilated(h, w3, (1, 1), "VALID",
                                     dimension_numbers=dn,
                                     preferred_element_type=jnp.float32)
    h = jnp.maximum(h + params["b3"][0], 0.0)
    return jnp.transpose(h, (0, 3, 1, 2)).astype(jnp.float32)


if __name__ == "__main__":
    key = jax.random.PRNGKey(0)
    kx, kp = jax.random.split(key)

    N, inplanes, planes, H, W = 2, 4, 16, 16, 16
    # keep the original toy channel count from the module test
    planes = 8
    stride = 1

    x = jax.random.normal(kx, (N, inplanes, H, W), jnp.float32)
    params = make_params(kp, inplanes, planes)

    # f32 output, two output-row tiles per image (exercises the halo logic
    # and the lane-dense writeback).
    out = jax.block_until_ready(
        exit_forward(x, params, stride=stride, out_dtype=jnp.float32,
                     row_block=8))
    ref = jax.block_until_ready(reference_forward(x, params, stride=stride))
    assert out.shape == ref.shape, (out.shape, ref.shape)
    err = float(jnp.max(jnp.abs(out - ref)))
    assert err < 2e-3, err

    # Default bf16 output path (halved HBM writeback); loose check vs f32 run.
    out_bf16 = jax.block_until_ready(
        exit_forward(x, params, stride=stride, row_block=8))
    err_bf16 = float(jnp.max(jnp.abs(out_bf16.astype(jnp.float32) - out)))
    assert err_bf16 < 5e-2, err_bf16

    print("KERNEL_OK")
</pallas_src>

<mosaic_0001>
module attributes {stable_mosaic.version = 11 : i64} {
  func.func @_exit_kernel(%arg0: i32, %arg1: i32, %arg2: memref<1x16x16x4xf32, #tpu.memory_space<vmem>>, %arg3: memref<4x8xbf16, #tpu.memory_space<vmem>>, %arg4: memref<1x8xf32, #tpu.memory_space<vmem>>, %arg5: memref<72x8xbf16, #tpu.memory_space<vmem>>, %arg6: memref<1x8xf32, #tpu.memory_space<vmem>>, %arg7: memref<8x8xbf16, #tpu.memory_space<vmem>>, %arg8: memref<1x8xf32, #tpu.memory_space<vmem>>, %arg9: memref<1x8x128xf32, #tpu.memory_space<vmem>>, %arg10: memref<12x18x8xbf16, #tpu.memory_space<vmem>>) attributes {dimension_semantics = [#tpu.dimension_semantics<parallel>, #tpu.dimension_semantics<parallel>], iteration_bounds = array<i64: 2, 2>, scalar_prefetch = 0 : i64, scratch_operands = 1 : i64, tpu.core_type = #tpu.core_type<tc>, window_params = [{transform_indices = @transform_0, window_bounds = array<i64: 1, 16, 16, 4>}, {pipeline_mode = #tpu.pipeline_mode<synchronous>, transform_indices = @transform_1, window_bounds = array<i64: 4, 8>}, {pipeline_mode = #tpu.pipeline_mode<synchronous>, transform_indices = @transform_2, window_bounds = array<i64: 1, 8>}, {pipeline_mode = #tpu.pipeline_mode<synchronous>, transform_indices = @transform_3, window_bounds = array<i64: 72, 8>}, {pipeline_mode = #tpu.pipeline_mode<synchronous>, transform_indices = @transform_4, window_bounds = array<i64: 1, 8>}, {pipeline_mode = #tpu.pipeline_mode<synchronous>, transform_indices = @transform_5, window_bounds = array<i64: 8, 8>}, {pipeline_mode = #tpu.pipeline_mode<synchronous>, transform_indices = @transform_6, window_bounds = array<i64: 1, 8>}, {transform_indices = @transform_7, window_bounds = array<i64: 1, 8, 128>}]} {
    %c8_i32 = arith.constant 8 : i32
    %0 = arith.muli %arg1, %c8_i32 : i32
    %c1_i32 = arith.constant 1 : i32
    %1 = arith.subi %0, %c1_i32 : i32
    %c0_i32 = arith.constant 0 : i32
    %c6_i32 = arith.constant 6 : i32
    %2 = arith.maxsi %c0_i32, %1 : i32
    %3 = arith.minsi %c6_i32, %2 : i32
    %4 = arith.subi %3, %1 : i32
    %c1_i32_0 = arith.constant 1 : i32
    %5 = arith.addi %4, %c1_i32_0 : i32
    %c0 = arith.constant 0 : index
    %6 = arith.index_cast %3 : i32 to index
    %c0_1 = arith.constant 0 : index
    %c0_2 = arith.constant 0 : index
    %7 = vector.load %arg2[%c0, %6, %c0_1, %c0_2] : memref<1x16x16x4xf32, #tpu.memory_space<vmem>>, vector<1x10x16x4xf32>
    %8 = vector.shape_cast %7 : vector<1x10x16x4xf32> to vector<10x16x4xf32>
    %9 = arith.truncf %8 : vector<10x16x4xf32> to vector<10x16x4xbf16>
    %10 = vector.shape_cast %9 : vector<10x16x4xbf16> to vector<160x4xbf16>
    %c0_3 = arith.constant 0 : index
    %c0_4 = arith.constant 0 : index
    %11 = vector.load %arg3[%c0_3, %c0_4] : memref<4x8xbf16, #tpu.memory_space<vmem>>, vector<4x8xbf16>
    %cst = arith.constant dense<0.000000e+00> : vector<160x8xf32>
    %12 = tpu.matmul %10, %11, %cst {dimension_numbers = #tpu.dot_dimension_numbers<[1], [0], [0], [1], [0, 0, 1, 1], [], []>} : vector<160x4xbf16>, vector<4x8xbf16>, vector<160x8xf32> -> vector<160x8xf32>
    %c0_5 = arith.constant 0 : index
    %c0_6 = arith.constant 0 : index
    %13 = vector.load %arg4[%c0_5, %c0_6] : memref<1x8xf32, #tpu.memory_space<vmem>>, vector<1x8xf32>
    %14 = vector.broadcast %13 : vector<1x8xf32> to vector<160x8xf32>
    %15 = arith.addf %12, %14 : vector<160x8xf32>
    %cst_7 = arith.constant 0.000000e+00 : f32
    %16 = vector.broadcast %cst_7 : f32 to vector<160x8xf32>
    %17 = arith.maximumf %15, %16 : vector<160x8xf32>
    %18 = vector.shape_cast %17 : vector<160x8xf32> to vector<10x16x8xf32>
    %19 = arith.truncf %18 : vector<10x16x8xf32> to vector<10x16x8xbf16>
    %cst_8 = arith.constant 0.000000e+00 : bf16
    %20 = vector.broadcast %cst_8 : bf16 to vector<1x18x8xbf16>
    %c1 = arith.constant 1 : index
    %c0_9 = arith.constant 0 : index
    %c0_10 = arith.constant 0 : index
    %21 = vector.load %arg10[%c1, %c0_9, %c0_10] : memref<12x18x8xbf16, #tpu.memory_space<vmem>>, vector<1x18x8xbf16>
    tpu.vector_store %arg10[%c1, %c0_9, %c0_10], %20 {strides = array<i32>} : memref<12x18x8xbf16, #tpu.memory_space<vmem>>, vector<1x18x8xbf16>,
    %cst_11 = arith.constant 0.000000e+00 : bf16
    %22 = vector.broadcast %cst_11 : bf16 to vector<1x18x8xbf16>
    %c10 = arith.constant 10 : index
    %c0_12 = arith.constant 0 : index
    %c0_13 = arith.constant 0 : index
    %23 = vector.load %arg10[%c10, %c0_12, %c0_13] : memref<12x18x8xbf16, #tpu.memory_space<vmem>>, vector<1x18x8xbf16>
    tpu.vector_store %arg10[%c10, %c0_12, %c0_13], %22 {strides = array<i32>} : memref<12x18x8xbf16, #tpu.memory_space<vmem>>, vector<1x18x8xbf16>,
    %cst_14 = arith.constant 0.000000e+00 : bf16
    %24 = vector.broadcast %cst_14 : bf16 to vector<12x1x8xbf16>
    %c0_15 = arith.constant 0 : index
    %c0_16 = arith.constant 0 : index
    %c0_17 = arith.constant 0 : index
    %25 = vector.load %arg10[%c0_15, %c0_16, %c0_17] : memref<12x18x8xbf16, #tpu.memory_space<vmem>>, vector<12x1x8xbf16>
    tpu.vector_store %arg10[%c0_15, %c0_16, %c0_17], %24 {strides = array<i32>} : memref<12x18x8xbf16, #tpu.memory_space<vmem>>, vector<12x1x8xbf16>,
    %cst_18 = arith.constant 0.000000e+00 : bf16
    %26 = vector.broadcast %cst_18 : bf16 to vector<12x1x8xbf16>
    %c0_19 = arith.constant 0 : index
    %c17 = arith.constant 17 : index
    %c0_20 = arith.constant 0 : index
    %27 = vector.load %arg10[%c0_19, %c17, %c0_20] : memref<12x18x8xbf16, #tpu.memory_space<vmem>>, vector<12x1x8xbf16>
    tpu.vector_store %arg10[%c0_19, %c17, %c0_20], %26 {strides = array<i32>} : memref<12x18x8xbf16, #tpu.memory_space<vmem>>, vector<12x1x8xbf16>,
    %28 = arith.index_cast %5 : i32 to index
    %c1_21 = arith.constant 1 : index
    %c0_22 = arith.constant 0 : index
    %29 = vector.load %arg10[%28, %c1_21, %c0_22] : memref<12x18x8xbf16, #tpu.memory_space<vmem>>, vector<10x16x8xbf16>
    tpu.vector_store %arg10[%28, %c1_21, %c0_22], %19 {strides = array<i32>} : memref<12x18x8xbf16, #tpu.memory_space<vmem>>, vector<10x16x8xbf16>,
    %c1_23 = arith.constant 1 : index
    %c0_24 = arith.constant 0 : index
    %c0_25 = arith.constant 0 : index
    %30 = vector.load %arg10[%c1_23, %c0_24, %c0_25] : memref<12x18x8xbf16, #tpu.memory_space<vmem>>, vector<8x16x8xbf16>
    %31 = vector.shape_cast %30 : vector<8x16x8xbf16> to vector<128x8xbf16>
    %c1_26 = arith.constant 1 : index
    %c1_27 = arith.constant 1 : index
    %c0_28 = arith.constant 0 : index
    %32 = vector.load %arg10[%c1_26, %c1_27, %c0_28] : memref<12x18x8xbf16, #tpu.memory_space<vmem>>, vector<8x16x8xbf16>
    %33 = vector.shape_cast %32 : vector<8x16x8xbf16> to vector<128x8xbf16>
    %c1_29 = arith.constant 1 : index
    %c2 = arith.constant 2 : index
    %c0_30 = arith.constant 0 : index
    %34 = vector.load %arg10[%c1_29, %c2, %c0_30] : memref<12x18x8xbf16, #tpu.memory_space<vmem>>, vector<8x16x8xbf16>
    %35 = vector.shape_cast %34 : vector<8x16x8xbf16> to vector<128x8xbf16>
    %c2_31 = arith.constant 2 : index
    %c0_32 = arith.constant 0 : index
    %c0_33 = arith.constant 0 : index
    %36 = vector.load %arg10[%c2_31, %c0_32, %c0_33] : memref<12x18x8xbf16, #tpu.memory_space<vmem>>, vector<8x16x8xbf16>
    %37 = vector.shape_cast %36 : vector<8x16x8xbf16> to vector<128x8xbf16>
    %c2_34 = arith.constant 2 : index
    %c1_35 = arith.constant 1 : index
    %c0_36 = arith.constant 0 : index
    %38 = vector.load %arg10[%c2_34, %c1_35, %c0_36] : memref<12x18x8xbf16, #tpu.memory_space<vmem>>, vector<8x16x8xbf16>
    %39 = vector.shape_cast %38 : vector<8x16x8xbf16> to vector<128x8xbf16>
    %c2_37 = arith.constant 2 : index
    %c2_38 = arith.constant 2 : index
    %c0_39 = arith.constant 0 : index
    %40 = vector.load %arg10[%c2_37, %c2_38, %c0_39] : memref<12x18x8xbf16, #tpu.memory_space<vmem>>, vector<8x16x8xbf16>
    %41 = vector.shape_cast %40 : vector<8x16x8xbf16> to vector<128x8xbf16>
    %c3 = arith.constant 3 : index
    %c0_40 = arith.constant 0 : index
    %c0_41 = arith.constant 0 : index
    %42 = vector.load %arg10[%c3, %c0_40, %c0_41] : memref<12x18x8xbf16, #tpu.memory_space<vmem>>, vector<8x16x8xbf16>
    %43 = vector.shape_cast %42 : vector<8x16x8xbf16> to vector<128x8xbf16>
    %c3_42 = arith.constant 3 : index
    %c1_43 = arith.constant 1 : index
    %c0_44 = arith.constant 0 : index
    %44 = vector.load %arg10[%c3_42, %c1_43, %c0_44] : memref<12x18x8xbf16, #tpu.memory_space<vmem>>, vector<8x16x8xbf16>
    %45 = vector.shape_cast %44 : vector<8x16x8xbf16> to vector<128x8xbf16>
    %c3_45 = arith.constant 3 : index
    %c2_46 = arith.constant 2 : index
    %c0_47 = arith.constant 0 : index
    %46 = vector.load %arg10[%c3_45, %c2_46, %c0_47] : memref<12x18x8xbf16, #tpu.memory_space<vmem>>, vector<8x16x8xbf16>
    %47 = vector.shape_cast %46 : vector<8x16x8xbf16> to vector<128x8xbf16>
    %48 = tpu.concatenate %31, %33, %35, %37, %39, %41, %43, %45, %47 in 1 : vector<128x8xbf16>, vector<128x8xbf16>, vector<128x8xbf16>, vector<128x8xbf16>, vector<128x8xbf16>, vector<128x8xbf16>, vector<128x8xbf16>, vector<128x8xbf16>, vector<128x8xbf16> -> vector<128x72xbf16>
    %c0_48 = arith.constant 0 : index
    %c0_49 = arith.constant 0 : index
    %49 = vector.load %arg5[%c0_48, %c0_49] : memref<72x8xbf16, #tpu.memory_space<vmem>>, vector<72x8xbf16>
    %cst_50 = arith.constant dense<0.000000e+00> : vector<128x8xf32>
    %50 = tpu.matmul %48, %49, %cst_50 {dimension_numbers = #tpu.dot_dimension_numbers<[1], [0], [0], [1], [0, 0, 1, 1], [], []>} : vector<128x72xbf16>, vector<72x8xbf16>, vector<128x8xf32> -> vector<128x8xf32>
    %c0_51 = arith.constant 0 : index
    %c0_52 = arith.constant 0 : index
    %51 = vector.load %arg6[%c0_51, %c0_52] : memref<1x8xf32, #tpu.memory_space<vmem>>, vector<1x8xf32>
    %52 = vector.broadcast %51 : vector<1x8xf32> to vector<128x8xf32>
    %53 = arith.addf %50, %52 : vector<128x8xf32>
    %cst_53 = arith.constant 0.000000e+00 : f32
    %54 = vector.broadcast %cst_53 : f32 to vector<128x8xf32>
    %55 = arith.maximumf %53, %54 : vector<128x8xf32>
    %56 = arith.truncf %55 : vector<128x8xf32> to vector<128x8xbf16>
    %c0_54 = arith.constant 0 : index
    %c0_55 = arith.constant 0 : index
    %57 = vector.load %arg7[%c0_54, %c0_55] : memref<8x8xbf16, #tpu.memory_space<vmem>>, vector<8x8xbf16>
    %cst_56 = arith.constant dense<0.000000e+00> : vector<128x8xf32>
    %58 = tpu.matmul %56, %57, %cst_56 {dimension_numbers = #tpu.dot_dimension_numbers<[1], [0], [0], [1], [0, 0, 1, 1], [], []>} : vector<128x8xbf16>, vector<8x8xbf16>, vector<128x8xf32> -> vector<128x8xf32>
    %c0_57 = arith.constant 0 : index
    %c0_58 = arith.constant 0 : index
    %59 = vector.load %arg8[%c0_57, %c0_58] : memref<1x8xf32, #tpu.memory_space<vmem>>, vector<1x8xf32>
    %60 = vector.broadcast %59 : vector<1x8xf32> to vector<128x8xf32>
    %61 = arith.addf %58, %60 : vector<128x8xf32>
    %cst_59 = arith.constant 0.000000e+00 : f32
    %62 = vector.broadcast %cst_59 : f32 to vector<128x8xf32>
    %63 = arith.maximumf %61, %62 : vector<128x8xf32>
    %64 = vector.shape_cast %63 : vector<128x8xf32> to vector<8x128xf32>
    %c0_60 = arith.constant 0 : index
    %c0_61 = arith.constant 0 : index
    %c0_62 = arith.constant 0 : index
    %65 = vector.load %arg9[%c0_60, %c0_61, %c0_62] : memref<1x8x128xf32, #tpu.memory_space<vmem>>, vector<1x8x128xf32>
    %66 = vector.shape_cast %65 : vector<1x8x128xf32> to vector<8x128xf32>
    %67 = vector.shape_cast %64 : vector<8x128xf32> to vector<1x8x128xf32>
    tpu.vector_store %arg9[%c0_60, %c0_61, %c0_62], %67 {strides = array<i32>} : memref<1x8x128xf32, #tpu.memory_space<vmem>>, vector<1x8x128xf32>,
    return
  }
  func.func @transform_0(%arg0: i32, %arg1: i32) -> (i32, i32, i32, i32) {
    %c0_i32 = arith.constant 0 : i32
    %c0_i32_0 = arith.constant 0 : i32
    %c0_i32_1 = arith.constant 0 : i32
    %c0_i32_2 = arith.constant 0 : i32
    return %arg0, %c0_i32, %c0_i32_0, %c0_i32_1 : i32, i32, i32, i32
  }
  func.func @transform_1(%arg0: i32, %arg1: i32) -> (i32, i32) {
    %c0_i32 = arith.constant 0 : i32
    %c0_i32_0 = arith.constant 0 : i32
    %c0_i32_1 = arith.constant 0 : i32
    return %c0_i32, %c0_i32_0 : i32, i32
  }
  func.func @transform_2(%arg0: i32, %arg1: i32) -> (i32, i32) {
    %c0_i32 = arith.constant 0 : i32
    %c0_i32_0 = arith.constant 0 : i32
    %c0_i32_1 = arith.constant 0 : i32
    return %c0_i32, %c0_i32_0 : i32, i32
  }
  func.func @transform_3(%arg0: i32, %arg1: i32) -> (i32, i32) {
    %c0_i32 = arith.constant 0 : i32
    %c0_i32_0 = arith.constant 0 : i32
    %c0_i32_1 = arith.constant 0 : i32
    return %c0_i32, %c0_i32_0 : i32, i32
  }
  func.func @transform_4(%arg0: i32, %arg1: i32) -> (i32, i32) {
    %c0_i32 = arith.constant 0 : i32
    %c0_i32_0 = arith.constant 0 : i32
    %c0_i32_1 = arith.constant 0 : i32
    return %c0_i32, %c0_i32_0 : i32, i32
  }
  func.func @transform_5(%arg0: i32, %arg1: i32) -> (i32, i32) {
    %c0_i32 = arith.constant 0 : i32
    %c0_i32_0 = arith.constant 0 : i32
    %c0_i32_1 = arith.constant 0 : i32
    return %c0_i32, %c0_i32_0 : i32, i32
  }
  func.func @transform_6(%arg0: i32, %arg1: i32) -> (i32, i32) {
    %c0_i32 = arith.constant 0 : i32
    %c0_i32_0 = arith.constant 0 : i32
    %c0_i32_1 = arith.constant 0 : i32
    return %c0_i32, %c0_i32_0 : i32, i32
  }
  func.func @transform_7(%arg0: i32, %arg1: i32) -> (i32, i32, i32) {
    %c0_i32 = arith.constant 0 : i32
    %c0_i32_0 = arith.constant 0 : i32
    return %arg0, %arg1, %c0_i32 : i32, i32, i32
  }
}

module attributes {stable_mosaic.version = 11 : i64} {
  func.func @_exit_kernel(%arg0: i32, %arg1: i32, %arg2: memref<1x16x16x4xf32, #tpu.memory_space<vmem>>, %arg3: memref<4x8xbf16, #tpu.memory_space<vmem>>, %arg4: memref<1x8xf32, #tpu.memory_space<vmem>>, %arg5: memref<72x8xbf16, #tpu.memory_space<vmem>>, %arg6: memref<1x8xf32, #tpu.memory_space<vmem>>, %arg7: memref<8x8xbf16, #tpu.memory_space<vmem>>, %arg8: memref<1x8xf32, #tpu.memory_space<vmem>>, %arg9: memref<1x8x128xf32, #tpu.memory_space<vmem>>, %arg10: memref<12x18x8xbf16, #tpu.memory_space<vmem>>) attributes {dimension_semantics = [#tpu.dimension_semantics<parallel>, #tpu.dimension_semantics<parallel>], iteration_bounds = array<i64: 2, 2>, scalar_prefetch = 0 : i64, scratch_operands = 1 : i64, tpu.core_type = #tpu.core_type<tc>, window_params = [{transform_indices = @transform_0, window_bounds = array<i64: 1, 16, 16, 4>}, {pipeline_mode = #tpu.pipeline_mode<synchronous>, transform_indices = @transform_1, window_bounds = array<i64: 4, 8>}, {pipeline_mode = #tpu.pipeline_mode<synchronous>, transform_indices = @transform_2, window_bounds = array<i64: 1, 8>}, {pipeline_mode = #tpu.pipeline_mode<synchronous>, transform_indices = @transform_3, window_bounds = array<i64: 72, 8>}, {pipeline_mode = #tpu.pipeline_mode<synchronous>, transform_indices = @transform_4, window_bounds = array<i64: 1, 8>}, {pipeline_mode = #tpu.pipeline_mode<synchronous>, transform_indices = @transform_5, window_bounds = array<i64: 8, 8>}, {pipeline_mode = #tpu.pipeline_mode<synchronous>, transform_indices = @transform_6, window_bounds = array<i64: 1, 8>}, {transform_indices = @transform_7, window_bounds = array<i64: 1, 8, 128>}]} {
    %c8_i32 = arith.constant 8 : i32
    %0 = arith.muli %arg1, %c8_i32 : i32
    %c1_i32 = arith.constant 1 : i32
    %1 = arith.subi %0, %c1_i32 : i32
    %c0_i32 = arith.constant 0 : i32
    %c6_i32 = arith.constant 6 : i32
    %2 = arith.maxsi %c0_i32, %1 : i32
    %3 = arith.minsi %c6_i32, %2 : i32
    %4 = arith.subi %3, %1 : i32
    %c1_i32_0 = arith.constant 1 : i32
    %5 = arith.addi %4, %c1_i32_0 : i32
    %c0 = arith.constant 0 : index
    %6 = arith.index_cast %3 : i32 to index
    %c0_1 = arith.constant 0 : index
    %c0_2 = arith.constant 0 : index
    %7 = vector.load %arg2[%c0, %6, %c0_1, %c0_2] : memref<1x16x16x4xf32, #tpu.memory_space<vmem>>, vector<1x10x16x4xf32>
    %8 = vector.shape_cast %7 : vector<1x10x16x4xf32> to vector<10x16x4xf32>
    %9 = arith.truncf %8 : vector<10x16x4xf32> to vector<10x16x4xbf16>
    %10 = vector.shape_cast %9 : vector<10x16x4xbf16> to vector<160x4xbf16>
    %c0_3 = arith.constant 0 : index
    %c0_4 = arith.constant 0 : index
    %11 = vector.load %arg3[%c0_3, %c0_4] : memref<4x8xbf16, #tpu.memory_space<vmem>>, vector<4x8xbf16>
    %cst = arith.constant dense<0.000000e+00> : vector<160x8xf32>
    %12 = tpu.matmul %10, %11, %cst {dimension_numbers = #tpu.dot_dimension_numbers<[1], [0], [0], [1], [0, 0, 1, 1], [], []>} : vector<160x4xbf16>, vector<4x8xbf16>, vector<160x8xf32> -> vector<160x8xf32>
    %c0_5 = arith.constant 0 : index
    %c0_6 = arith.constant 0 : index
    %13 = vector.load %arg4[%c0_5, %c0_6] : memref<1x8xf32, #tpu.memory_space<vmem>>, vector<1x8xf32>
    %14 = vector.broadcast %13 : vector<1x8xf32> to vector<160x8xf32>
    %15 = arith.addf %12, %14 : vector<160x8xf32>
    %cst_7 = arith.constant 0.000000e+00 : f32
    %16 = vector.broadcast %cst_7 : f32 to vector<160x8xf32>
    %17 = arith.maximumf %15, %16 : vector<160x8xf32>
    %18 = vector.shape_cast %17 : vector<160x8xf32> to vector<10x16x8xf32>
    %19 = arith.truncf %18 : vector<10x16x8xf32> to vector<10x16x8xbf16>
    %cst_8 = arith.constant 0.000000e+00 : bf16
    %20 = vector.broadcast %cst_8 : bf16 to vector<1x18x8xbf16>
    %c1 = arith.constant 1 : index
    %c0_9 = arith.constant 0 : index
    %c0_10 = arith.constant 0 : index
    %21 = vector.load %arg10[%c1, %c0_9, %c0_10] : memref<12x18x8xbf16, #tpu.memory_space<vmem>>, vector<1x18x8xbf16>
    tpu.vector_store %arg10[%c1, %c0_9, %c0_10], %20 {strides = array<i32>} : memref<12x18x8xbf16, #tpu.memory_space<vmem>>, vector<1x18x8xbf16>,
    %cst_11 = arith.constant 0.000000e+00 : bf16
    %22 = vector.broadcast %cst_11 : bf16 to vector<1x18x8xbf16>
    %c10 = arith.constant 10 : index
    %c0_12 = arith.constant 0 : index
    %c0_13 = arith.constant 0 : index
    %23 = vector.load %arg10[%c10, %c0_12, %c0_13] : memref<12x18x8xbf16, #tpu.memory_space<vmem>>, vector<1x18x8xbf16>
    tpu.vector_store %arg10[%c10, %c0_12, %c0_13], %22 {strides = array<i32>} : memref<12x18x8xbf16, #tpu.memory_space<vmem>>, vector<1x18x8xbf16>,
    %cst_14 = arith.constant 0.000000e+00 : bf16
    %24 = vector.broadcast %cst_14 : bf16 to vector<12x1x8xbf16>
    %c0_15 = arith.constant 0 : index
    %c0_16 = arith.constant 0 : index
    %c0_17 = arith.constant 0 : index
    %25 = vector.load %arg10[%c0_15, %c0_16, %c0_17] : memref<12x18x8xbf16, #tpu.memory_space<vmem>>, vector<12x1x8xbf16>
    tpu.vector_store %arg10[%c0_15, %c0_16, %c0_17], %24 {strides = array<i32>} : memref<12x18x8xbf16, #tpu.memory_space<vmem>>, vector<12x1x8xbf16>,
    %cst_18 = arith.constant 0.000000e+00 : bf16
    %26 = vector.broadcast %cst_18 : bf16 to vector<12x1x8xbf16>
    %c0_19 = arith.constant 0 : index
    %c17 = arith.constant 17 : index
    %c0_20 = arith.constant 0 : index
    %27 = vector.load %arg10[%c0_19, %c17, %c0_20] : memref<12x18x8xbf16, #tpu.memory_space<vmem>>, vector<12x1x8xbf16>
    tpu.vector_store %arg10[%c0_19, %c17, %c0_20], %26 {strides = array<i32>} : memref<12x18x8xbf16, #tpu.memory_space<vmem>>, vector<12x1x8xbf16>,
    %28 = arith.index_cast %5 : i32 to index
    %c1_21 = arith.constant 1 : index
    %c0_22 = arith.constant 0 : index
    %29 = vector.load %arg10[%28, %c1_21, %c0_22] : memref<12x18x8xbf16, #tpu.memory_space<vmem>>, vector<10x16x8xbf16>
    tpu.vector_store %arg10[%28, %c1_21, %c0_22], %19 {strides = array<i32>} : memref<12x18x8xbf16, #tpu.memory_space<vmem>>, vector<10x16x8xbf16>,
    %c1_23 = arith.constant 1 : index
    %c0_24 = arith.constant 0 : index
    %c0_25 = arith.constant 0 : index
    %30 = vector.load %arg10[%c1_23, %c0_24, %c0_25] : memref<12x18x8xbf16, #tpu.memory_space<vmem>>, vector<8x16x8xbf16>
    %31 = vector.shape_cast %30 : vector<8x16x8xbf16> to vector<128x8xbf16>
    %c1_26 = arith.constant 1 : index
    %c1_27 = arith.constant 1 : index
    %c0_28 = arith.constant 0 : index
    %32 = vector.load %arg10[%c1_26, %c1_27, %c0_28] : memref<12x18x8xbf16, #tpu.memory_space<vmem>>, vector<8x16x8xbf16>
    %33 = vector.shape_cast %32 : vector<8x16x8xbf16> to vector<128x8xbf16>
    %c1_29 = arith.constant 1 : index
    %c2 = arith.constant 2 : index
    %c0_30 = arith.constant 0 : index
    %34 = vector.load %arg10[%c1_29, %c2, %c0_30] : memref<12x18x8xbf16, #tpu.memory_space<vmem>>, vector<8x16x8xbf16>
    %35 = vector.shape_cast %34 : vector<8x16x8xbf16> to vector<128x8xbf16>
    %c2_31 = arith.constant 2 : index
    %c0_32 = arith.constant 0 : index
    %c0_33 = arith.constant 0 : index
    %36 = vector.load %arg10[%c2_31, %c0_32, %c0_33] : memref<12x18x8xbf16, #tpu.memory_space<vmem>>, vector<8x16x8xbf16>
    %37 = vector.shape_cast %36 : vector<8x16x8xbf16> to vector<128x8xbf16>
    %c2_34 = arith.constant 2 : index
    %c1_35 = arith.constant 1 : index
    %c0_36 = arith.constant 0 : index
    %38 = vector.load %arg10[%c2_34, %c1_35, %c0_36] : memref<12x18x8xbf16, #tpu.memory_space<vmem>>, vector<8x16x8xbf16>
    %39 = vector.shape_cast %38 : vector<8x16x8xbf16> to vector<128x8xbf16>
    %c2_37 = arith.constant 2 : index
    %c2_38 = arith.constant 2 : index
    %c0_39 = arith.constant 0 : index
    %40 = vector.load %arg10[%c2_37, %c2_38, %c0_39] : memref<12x18x8xbf16, #tpu.memory_space<vmem>>, vector<8x16x8xbf16>
    %41 = vector.shape_cast %40 : vector<8x16x8xbf16> to vector<128x8xbf16>
    %c3 = arith.constant 3 : index
    %c0_40 = arith.constant 0 : index
    %c0_41 = arith.constant 0 : index
    %42 = vector.load %arg10[%c3, %c0_40, %c0_41] : memref<12x18x8xbf16, #tpu.memory_space<vmem>>, vector<8x16x8xbf16>
    %43 = vector.shape_cast %42 : vector<8x16x8xbf16> to vector<128x8xbf16>
    %c3_42 = arith.constant 3 : index
    %c1_43 = arith.constant 1 : index
    %c0_44 = arith.constant 0 : index
    %44 = vector.load %arg10[%c3_42, %c1_43, %c0_44] : memref<12x18x8xbf16, #tpu.memory_space<vmem>>, vector<8x16x8xbf16>
    %45 = vector.shape_cast %44 : vector<8x16x8xbf16> to vector<128x8xbf16>
    %c3_45 = arith.constant 3 : index
    %c2_46 = arith.constant 2 : index
    %c0_47 = arith.constant 0 : index
    %46 = vector.load %arg10[%c3_45, %c2_46, %c0_47] : memref<12x18x8xbf16, #tpu.memory_space<vmem>>, vector<8x16x8xbf16>
    %47 = vector.shape_cast %46 : vector<8x16x8xbf16> to vector<128x8xbf16>
    %48 = tpu.concatenate %31, %33, %35, %37, %39, %41, %43, %45, %47 in 1 : vector<128x8xbf16>, vector<128x8xbf16>, vector<128x8xbf16>, vector<128x8xbf16>, vector<128x8xbf16>, vector<128x8xbf16>, vector<128x8xbf16>, vector<128x8xbf16>, vector<128x8xbf16> -> vector<128x72xbf16>
    %c0_48 = arith.constant 0 : index
    %c0_49 = arith.constant 0 : index
    %49 = vector.load %arg5[%c0_48, %c0_49] : memref<72x8xbf16, #tpu.memory_space<vmem>>, vector<72x8xbf16>
    %cst_50 = arith.constant dense<0.000000e+00> : vector<128x8xf32>
    %50 = tpu.matmul %48, %49, %cst_50 {dimension_numbers = #tpu.dot_dimension_numbers<[1], [0], [0], [1], [0, 0, 1, 1], [], []>} : vector<128x72xbf16>, vector<72x8xbf16>, vector<128x8xf32> -> vector<128x8xf32>
    %c0_51 = arith.constant 0 : index
    %c0_52 = arith.constant 0 : index
    %51 = vector.load %arg6[%c0_51, %c0_52] : memref<1x8xf32, #tpu.memory_space<vmem>>, vector<1x8xf32>
    %52 = vector.broadcast %51 : vector<1x8xf32> to vector<128x8xf32>
    %53 = arith.addf %50, %52 : vector<128x8xf32>
    %cst_53 = arith.constant 0.000000e+00 : f32
    %54 = vector.broadcast %cst_53 : f32 to vector<128x8xf32>
    %55 = arith.maximumf %53, %54 : vector<128x8xf32>
    %56 = arith.truncf %55 : vector<128x8xf32> to vector<128x8xbf16>
    %c0_54 = arith.constant 0 : index
    %c0_55 = arith.constant 0 : index
    %57 = vector.load %arg7[%c0_54, %c0_55] : memref<8x8xbf16, #tpu.memory_space<vmem>>, vector<8x8xbf16>
    %cst_56 = arith.constant dense<0.000000e+00> : vector<128x8xf32>
    %58 = tpu.matmul %56, %57, %cst_56 {dimension_numbers = #tpu.dot_dimension_numbers<[1], [0], [0], [1], [0, 0, 1, 1], [], []>} : vector<128x8xbf16>, vector<8x8xbf16>, vector<128x8xf32> -> vector<128x8xf32>
    %c0_57 = arith.constant 0 : index
    %c0_58 = arith.constant 0 : index
    %59 = vector.load %arg8[%c0_57, %c0_58] : memref<1x8xf32, #tpu.memory_space<vmem>>, vector<1x8xf32>
    %60 = vector.broadcast %59 : vector<1x8xf32> to vector<128x8xf32>
    %61 = arith.addf %58, %60 : vector<128x8xf32>
    %cst_59 = arith.constant 0.000000e+00 : f32
    %62 = vector.broadcast %cst_59 : f32 to vector<128x8xf32>
    %63 = arith.maximumf %61, %62 : vector<128x8xf32>
    %64 = vector.shape_cast %63 : vector<128x8xf32> to vector<8x128xf32>
    %c0_60 = arith.constant 0 : index
    %c0_61 = arith.constant 0 : index
    %c0_62 = arith.constant 0 : index
    %65 = vector.load %arg9[%c0_60, %c0_61, %c0_62] : memref<1x8x128xf32, #tpu.memory_space<vmem>>, vector<1x8x128xf32>
    %66 = vector.shape_cast %65 : vector<1x8x128xf32> to vector<8x128xf32>
    %67 = vector.shape_cast %64 : vector<8x128xf32> to vector<1x8x128xf32>
    tpu.vector_store %arg9[%c0_60, %c0_61, %c0_62], %67 {strides = array<i32>} : memref<1x8x128xf32, #tpu.memory_space<vmem>>, vector<1x8x128xf32>,
    return
  }
  func.func @transform_0(%arg0: i32, %arg1: i32) -> (i32, i32, i32, i32) {
    %c0_i32 = arith.constant 0 : i32
    %c0_i32_0 = arith.constant 0 : i32
    %c0_i32_1 = arith.constant 0 : i32
    %c0_i32_2 = arith.constant 0 : i32
    return %arg0, %c0_i32, %c0_i32_0, %c0_i32_1 : i32, i32, i32, i32
  }
  func.func @transform_1(%arg0: i32, %arg1: i32) -> (i32, i32) {
    %c0_i32 = arith.constant 0 : i32
    %c0_i32_0 = arith.constant 0 : i32
    %c0_i32_1 = arith.constant 0 : i32
    return %c0_i32, %c0_i32_0 : i32, i32
  }
  func.func @transform_2(%arg0: i32, %arg1: i32) -> (i32, i32) {
    %c0_i32 = arith.constant 0 : i32
    %c0_i32_0 = arith.constant 0 : i32
    %c0_i32_1 = arith.constant 0 : i32
    return %c0_i32, %c0_i32_0 : i32, i32
  }
  func.func @transform_3(%arg0: i32, %arg1: i32) -> (i32, i32) {
    %c0_i32 = arith.constant 0 : i32
    %c0_i32_0 = arith.constant 0 : i32
    %c0_i32_1 = arith.constant 0 : i32
    return %c0_i32, %c0_i32_0 : i32, i32
  }
  func.func @transform_4(%arg0: i32, %arg1: i32) -> (i32, i32) {
    %c0_i32 = arith.constant 0 : i32
    %c0_i32_0 = arith.constant 0 : i32
    %c0_i32_1 = arith.constant 0 : i32
    return %c0_i32, %c0_i32_0 : i32, i32
  }
  func.func @transform_5(%arg0: i32, %arg1: i32) -> (i32, i32) {
    %c0_i32 = arith.constant 0 : i32
    %c0_i32_0 = arith.constant 0 : i32
    %c0_i32_1 = arith.constant 0 : i32
    return %c0_i32, %c0_i32_0 : i32, i32
  }
  func.func @transform_6(%arg0: i32, %arg1: i32) -> (i32, i32) {
    %c0_i32 = arith.constant 0 : i32
    %c0_i32_0 = arith.constant 0 : i32
    %c0_i32_1 = arith.constant 0 : i32
    return %c0_i32, %c0_i32_0 : i32, i32
  }
  func.func @transform_7(%arg0: i32, %arg1: i32) -> (i32, i32, i32) {
    %c0_i32 = arith.constant 0 : i32
    %c0_i32_0 = arith.constant 0 : i32
    return %arg0, %arg1, %c0_i32 : i32, i32, i32
  }
}

module attributes {stable_mosaic.version = 11 : i64} {
  func.func @_exit_kernel(%arg0: i32, %arg1: i32, %arg2: memref<1x16x16x4xf32, #tpu.memory_space<vmem>>, %arg3: memref<4x8xbf16, #tpu.memory_space<vmem>>, %arg4: memref<1x8xf32, #tpu.memory_space<vmem>>, %arg5: memref<72x8xbf16, #tpu.memory_space<vmem>>, %arg6: memref<1x8xf32, #tpu.memory_space<vmem>>, %arg7: memref<8x8xbf16, #tpu.memory_space<vmem>>, %arg8: memref<1x8xf32, #tpu.memory_space<vmem>>, %arg9: memref<1x8x16x8xf32, #tpu.memory_space<vmem>>, %arg10: memref<12x18x8xbf16, #tpu.memory_space<vmem>>) attributes {dimension_semantics = [#tpu.dimension_semantics<parallel>, #tpu.dimension_semantics<parallel>], iteration_bounds = array<i64: 2, 2>, scalar_prefetch = 0 : i64, scratch_operands = 1 : i64, tpu.core_type = #tpu.core_type<tc>, window_params = [{transform_indices = @transform_0, window_bounds = array<i64: 1, 16, 16, 4>}, {pipeline_mode = #tpu.pipeline_mode<synchronous>, transform_indices = @transform_1, window_bounds = array<i64: 4, 8>}, {pipeline_mode = #tpu.pipeline_mode<synchronous>, transform_indices = @transform_2, window_bounds = array<i64: 1, 8>}, {pipeline_mode = #tpu.pipeline_mode<synchronous>, transform_indices = @transform_3, window_bounds = array<i64: 72, 8>}, {pipeline_mode = #tpu.pipeline_mode<synchronous>, transform_indices = @transform_4, window_bounds = array<i64: 1, 8>}, {pipeline_mode = #tpu.pipeline_mode<synchronous>, transform_indices = @transform_5, window_bounds = array<i64: 8, 8>}, {pipeline_mode = #tpu.pipeline_mode<synchronous>, transform_indices = @transform_6, window_bounds = array<i64: 1, 8>}, {transform_indices = @transform_7, window_bounds = array<i64: 1, 8, 16, 8>}]} {
    %c8_i32 = arith.constant 8 : i32
    %0 = arith.muli %arg1, %c8_i32 : i32
    %c1_i32 = arith.constant 1 : i32
    %1 = arith.subi %0, %c1_i32 : i32
    %c0_i32 = arith.constant 0 : i32
    %c6_i32 = arith.constant 6 : i32
    %2 = arith.maxsi %c0_i32, %1 : i32
    %3 = arith.minsi %c6_i32, %2 : i32
    %4 = arith.subi %3, %1 : i32
    %c1_i32_0 = arith.constant 1 : i32
    %5 = arith.addi %4, %c1_i32_0 : i32
    %c0 = arith.constant 0 : index
    %6 = arith.index_cast %3 : i32 to index
    %c0_1 = arith.constant 0 : index
    %c0_2 = arith.constant 0 : index
    %7 = vector.load %arg2[%c0, %6, %c0_1, %c0_2] : memref<1x16x16x4xf32, #tpu.memory_space<vmem>>, vector<1x10x16x4xf32>
    %8 = vector.shape_cast %7 : vector<1x10x16x4xf32> to vector<10x16x4xf32>
    %9 = arith.truncf %8 : vector<10x16x4xf32> to vector<10x16x4xbf16>
    %10 = vector.shape_cast %9 : vector<10x16x4xbf16> to vector<160x4xbf16>
    %c0_3 = arith.constant 0 : index
    %c0_4 = arith.constant 0 : index
    %11 = vector.load %arg3[%c0_3, %c0_4] : memref<4x8xbf16, #tpu.memory_space<vmem>>, vector<4x8xbf16>
    %cst = arith.constant dense<0.000000e+00> : vector<160x8xf32>
    %12 = tpu.matmul %10, %11, %cst {dimension_numbers = #tpu.dot_dimension_numbers<[1], [0], [0], [1], [0, 0, 1, 1], [], []>} : vector<160x4xbf16>, vector<4x8xbf16>, vector<160x8xf32> -> vector<160x8xf32>
    %c0_5 = arith.constant 0 : index
    %c0_6 = arith.constant 0 : index
    %13 = vector.load %arg4[%c0_5, %c0_6] : memref<1x8xf32, #tpu.memory_space<vmem>>, vector<1x8xf32>
    %14 = vector.broadcast %13 : vector<1x8xf32> to vector<160x8xf32>
    %15 = arith.addf %12, %14 : vector<160x8xf32>
    %cst_7 = arith.constant 0.000000e+00 : f32
    %16 = vector.broadcast %cst_7 : f32 to vector<160x8xf32>
    %17 = arith.maximumf %15, %16 : vector<160x8xf32>
    %18 = vector.shape_cast %17 : vector<160x8xf32> to vector<10x16x8xf32>
    %19 = arith.truncf %18 : vector<10x16x8xf32> to vector<10x16x8xbf16>
    %cst_8 = arith.constant 0.000000e+00 : bf16
    %20 = vector.broadcast %cst_8 : bf16 to vector<1x18x8xbf16>
    %c1 = arith.constant 1 : index
    %c0_9 = arith.constant 0 : index
    %c0_10 = arith.constant 0 : index
    %21 = vector.load %arg10[%c1, %c0_9, %c0_10] : memref<12x18x8xbf16, #tpu.memory_space<vmem>>, vector<1x18x8xbf16>
    tpu.vector_store %arg10[%c1, %c0_9, %c0_10], %20 {strides = array<i32>} : memref<12x18x8xbf16, #tpu.memory_space<vmem>>, vector<1x18x8xbf16>,
    %cst_11 = arith.constant 0.000000e+00 : bf16
    %22 = vector.broadcast %cst_11 : bf16 to vector<1x18x8xbf16>
    %c10 = arith.constant 10 : index
    %c0_12 = arith.constant 0 : index
    %c0_13 = arith.constant 0 : index
    %23 = vector.load %arg10[%c10, %c0_12, %c0_13] : memref<12x18x8xbf16, #tpu.memory_space<vmem>>, vector<1x18x8xbf16>
    tpu.vector_store %arg10[%c10, %c0_12, %c0_13], %22 {strides = array<i32>} : memref<12x18x8xbf16, #tpu.memory_space<vmem>>, vector<1x18x8xbf16>,
    %cst_14 = arith.constant 0.000000e+00 : bf16
    %24 = vector.broadcast %cst_14 : bf16 to vector<12x1x8xbf16>
    %c0_15 = arith.constant 0 : index
    %c0_16 = arith.constant 0 : index
    %c0_17 = arith.constant 0 : index
    %25 = vector.load %arg10[%c0_15, %c0_16, %c0_17] : memref<12x18x8xbf16, #tpu.memory_space<vmem>>, vector<12x1x8xbf16>
    tpu.vector_store %arg10[%c0_15, %c0_16, %c0_17], %24 {strides = array<i32>} : memref<12x18x8xbf16, #tpu.memory_space<vmem>>, vector<12x1x8xbf16>,
    %cst_18 = arith.constant 0.000000e+00 : bf16
    %26 = vector.broadcast %cst_18 : bf16 to vector<12x1x8xbf16>
    %c0_19 = arith.constant 0 : index
    %c17 = arith.constant 17 : index
    %c0_20 = arith.constant 0 : index
    %27 = vector.load %arg10[%c0_19, %c17, %c0_20] : memref<12x18x8xbf16, #tpu.memory_space<vmem>>, vector<12x1x8xbf16>
    tpu.vector_store %arg10[%c0_19, %c17, %c0_20], %26 {strides = array<i32>} : memref<12x18x8xbf16, #tpu.memory_space<vmem>>, vector<12x1x8xbf16>,
    %28 = arith.index_cast %5 : i32 to index
    %c1_21 = arith.constant 1 : index
    %c0_22 = arith.constant 0 : index
    %29 = vector.load %arg10[%28, %c1_21, %c0_22] : memref<12x18x8xbf16, #tpu.memory_space<vmem>>, vector<10x16x8xbf16>
    tpu.vector_store %arg10[%28, %c1_21, %c0_22], %19 {strides = array<i32>} : memref<12x18x8xbf16, #tpu.memory_space<vmem>>, vector<10x16x8xbf16>,
    %c1_23 = arith.constant 1 : index
    %c0_24 = arith.constant 0 : index
    %c0_25 = arith.constant 0 : index
    %30 = vector.load %arg10[%c1_23, %c0_24, %c0_25] : memref<12x18x8xbf16, #tpu.memory_space<vmem>>, vector<8x16x8xbf16>
    %31 = vector.shape_cast %30 : vector<8x16x8xbf16> to vector<128x8xbf16>
    %c1_26 = arith.constant 1 : index
    %c1_27 = arith.constant 1 : index
    %c0_28 = arith.constant 0 : index
    %32 = vector.load %arg10[%c1_26, %c1_27, %c0_28] : memref<12x18x8xbf16, #tpu.memory_space<vmem>>, vector<8x16x8xbf16>
    %33 = vector.shape_cast %32 : vector<8x16x8xbf16> to vector<128x8xbf16>
    %c1_29 = arith.constant 1 : index
    %c2 = arith.constant 2 : index
    %c0_30 = arith.constant 0 : index
    %34 = vector.load %arg10[%c1_29, %c2, %c0_30] : memref<12x18x8xbf16, #tpu.memory_space<vmem>>, vector<8x16x8xbf16>
    %35 = vector.shape_cast %34 : vector<8x16x8xbf16> to vector<128x8xbf16>
    %c2_31 = arith.constant 2 : index
    %c0_32 = arith.constant 0 : index
    %c0_33 = arith.constant 0 : index
    %36 = vector.load %arg10[%c2_31, %c0_32, %c0_33] : memref<12x18x8xbf16, #tpu.memory_space<vmem>>, vector<8x16x8xbf16>
    %37 = vector.shape_cast %36 : vector<8x16x8xbf16> to vector<128x8xbf16>
    %c2_34 = arith.constant 2 : index
    %c1_35 = arith.constant 1 : index
    %c0_36 = arith.constant 0 : index
    %38 = vector.load %arg10[%c2_34, %c1_35, %c0_36] : memref<12x18x8xbf16, #tpu.memory_space<vmem>>, vector<8x16x8xbf16>
    %39 = vector.shape_cast %38 : vector<8x16x8xbf16> to vector<128x8xbf16>
    %c2_37 = arith.constant 2 : index
    %c2_38 = arith.constant 2 : index
    %c0_39 = arith.constant 0 : index
    %40 = vector.load %arg10[%c2_37, %c2_38, %c0_39] : memref<12x18x8xbf16, #tpu.memory_space<vmem>>, vector<8x16x8xbf16>
    %41 = vector.shape_cast %40 : vector<8x16x8xbf16> to vector<128x8xbf16>
    %c3 = arith.constant 3 : index
    %c0_40 = arith.constant 0 : index
    %c0_41 = arith.constant 0 : index
    %42 = vector.load %arg10[%c3, %c0_40, %c0_41] : memref<12x18x8xbf16, #tpu.memory_space<vmem>>, vector<8x16x8xbf16>
    %43 = vector.shape_cast %42 : vector<8x16x8xbf16> to vector<128x8xbf16>
    %c3_42 = arith.constant 3 : index
    %c1_43 = arith.constant 1 : index
    %c0_44 = arith.constant 0 : index
    %44 = vector.load %arg10[%c3_42, %c1_43, %c0_44] : memref<12x18x8xbf16, #tpu.memory_space<vmem>>, vector<8x16x8xbf16>
    %45 = vector.shape_cast %44 : vector<8x16x8xbf16> to vector<128x8xbf16>
    %c3_45 = arith.constant 3 : index
    %c2_46 = arith.constant 2 : index
    %c0_47 = arith.constant 0 : index
    %46 = vector.load %arg10[%c3_45, %c2_46, %c0_47] : memref<12x18x8xbf16, #tpu.memory_space<vmem>>, vector<8x16x8xbf16>
    %47 = vector.shape_cast %46 : vector<8x16x8xbf16> to vector<128x8xbf16>
    %48 = tpu.concatenate %31, %33, %35, %37, %39, %41, %43, %45, %47 in 1 : vector<128x8xbf16>, vector<128x8xbf16>, vector<128x8xbf16>, vector<128x8xbf16>, vector<128x8xbf16>, vector<128x8xbf16>, vector<128x8xbf16>, vector<128x8xbf16>, vector<128x8xbf16> -> vector<128x72xbf16>
    %c0_48 = arith.constant 0 : index
    %c0_49 = arith.constant 0 : index
    %49 = vector.load %arg5[%c0_48, %c0_49] : memref<72x8xbf16, #tpu.memory_space<vmem>>, vector<72x8xbf16>
    %cst_50 = arith.constant dense<0.000000e+00> : vector<128x8xf32>
    %50 = tpu.matmul %48, %49, %cst_50 {dimension_numbers = #tpu.dot_dimension_numbers<[1], [0], [0], [1], [0, 0, 1, 1], [], []>} : vector<128x72xbf16>, vector<72x8xbf16>, vector<128x8xf32> -> vector<128x8xf32>
    %c0_51 = arith.constant 0 : index
    %c0_52 = arith.constant 0 : index
    %51 = vector.load %arg6[%c0_51, %c0_52] : memref<1x8xf32, #tpu.memory_space<vmem>>, vector<1x8xf32>
    %52 = vector.broadcast %51 : vector<1x8xf32> to vector<128x8xf32>
    %53 = arith.addf %50, %52 : vector<128x8xf32>
    %cst_53 = arith.constant 0.000000e+00 : f32
    %54 = vector.broadcast %cst_53 : f32 to vector<128x8xf32>
    %55 = arith.maximumf %53, %54 : vector<128x8xf32>
    %56 = arith.truncf %55 : vector<128x8xf32> to vector<128x8xbf16>
    %c0_54 = arith.constant 0 : index
    %c0_55 = arith.constant 0 : index
    %57 = vector.load %arg7[%c0_54, %c0_55] : memref<8x8xbf16, #tpu.memory_space<vmem>>, vector<8x8xbf16>
    %cst_56 = arith.constant dense<0.000000e+00> : vector<128x8xf32>
    %58 = tpu.matmul %56, %57, %cst_56 {dimension_numbers = #tpu.dot_dimension_numbers<[1], [0], [0], [1], [0, 0, 1, 1], [], []>} : vector<128x8xbf16>, vector<8x8xbf16>, vector<128x8xf32> -> vector<128x8xf32>
    %c0_57 = arith.constant 0 : index
    %c0_58 = arith.constant 0 : index
    %59 = vector.load %arg8[%c0_57, %c0_58] : memref<1x8xf32, #tpu.memory_space<vmem>>, vector<1x8xf32>
    %60 = vector.broadcast %59 : vector<1x8xf32> to vector<128x8xf32>
    %61 = arith.addf %58, %60 : vector<128x8xf32>
    %cst_59 = arith.constant 0.000000e+00 : f32
    %62 = vector.broadcast %cst_59 : f32 to vector<128x8xf32>
    %63 = arith.maximumf %61, %62 : vector<128x8xf32>
    %64 = vector.shape_cast %63 : vector<128x8xf32> to vector<8x16x8xf32>
    %c0_60 = arith.constant 0 : index
    %c0_61 = arith.constant 0 : index
    %c0_62 = arith.constant 0 : index
    %c0_63 = arith.constant 0 : index
    %65 = vector.load %arg9[%c0_60, %c0_61, %c0_62, %c0_63] : memref<1x8x16x8xf32, #tpu.memory_space<vmem>>, vector<1x8x16x8xf32>
    %66 = vector.shape_cast %65 : vector<1x8x16x8xf32> to vector<8x16x8xf32>
    %67 = vector.shape_cast %64 : vector<8x16x8xf32> to vector<1x8x16x8xf32>
    tpu.vector_store %arg9[%c0_60, %c0_61, %c0_62, %c0_63], %67 {strides = array<i32>} : memref<1x8x16x8xf32, #tpu.memory_space<vmem>>, vector<1x8x16x8xf32>,
    return
  }
  func.func @transform_0(%arg0: i32, %arg1: i32) -> (i32, i32, i32, i32) {
    %c0_i32 = arith.constant 0 : i32
    %c0_i32_0 = arith.constant 0 : i32
    %c0_i32_1 = arith.constant 0 : i32
    %c0_i32_2 = arith.constant 0 : i32
    return %arg0, %c0_i32, %c0_i32_0, %c0_i32_1 : i32, i32, i32, i32
  }
  func.func @transform_1(%arg0: i32, %arg1: i32) -> (i32, i32) {
    %c0_i32 = arith.constant 0 : i32
    %c0_i32_0 = arith.constant 0 : i32
    %c0_i32_1 = arith.constant 0 : i32
    return %c0_i32, %c0_i32_0 : i32, i32
  }
  func.func @transform_2(%arg0: i32, %arg1: i32) -> (i32, i32) {
    %c0_i32 = arith.constant 0 : i32
    %c0_i32_0 = arith.constant 0 : i32
    %c0_i32_1 = arith.constant 0 : i32
    return %c0_i32, %c0_i32_0 : i32, i32
  }
  func.func @transform_3(%arg0: i32, %arg1: i32) -> (i32, i32) {
    %c0_i32 = arith.constant 0 : i32
    %c0_i32_0 = arith.constant 0 : i32
    %c0_i32_1 = arith.constant 0 : i32
    return %c0_i32, %c0_i32_0 : i32, i32
  }
  func.func @transform_4(%arg0: i32, %arg1: i32) -> (i32, i32) {
    %c0_i32 = arith.constant 0 : i32
    %c0_i32_0 = arith.constant 0 : i32
    %c0_i32_1 = arith.constant 0 : i32
    return %c0_i32, %c0_i32_0 : i32, i32
  }
  func.func @transform_5(%arg0: i32, %arg1: i32) -> (i32, i32) {
    %c0_i32 = arith.constant 0 : i32
    %c0_i32_0 = arith.constant 0 : i32
    %c0_i32_1 = arith.constant 0 : i32
    return %c0_i32, %c0_i32_0 : i32, i32
  }
  func.func @transform_6(%arg0: i32, %arg1: i32) -> (i32, i32) {
    %c0_i32 = arith.constant 0 : i32
    %c0_i32_0 = arith.constant 0 : i32
    %c0_i32_1 = arith.constant 0 : i32
    return %c0_i32, %c0_i32_0 : i32, i32
  }
  func.func @transform_7(%arg0: i32, %arg1: i32) -> (i32, i32, i32, i32) {
    %c0_i32 = arith.constant 0 : i32
    %c0_i32_0 = arith.constant 0 : i32
    %c0_i32_1 = arith.constant 0 : i32
    return %arg0, %arg1, %c0_i32, %c0_i32_0 : i32, i32, i32, i32
  }
}

module attributes {stable_mosaic.version = 11 : i64} {
  func.func @_exit_kernel(%arg0: i32, %arg1: i32, %arg2: memref<1x16x16x4xf32, #tpu.memory_space<vmem>>, %arg3: memref<4x8xbf16, #tpu.memory_space<vmem>>, %arg4: memref<1x8xf32, #tpu.memory_space<vmem>>, %arg5: memref<72x8xbf16, #tpu.memory_space<vmem>>, %arg6: memref<1x8xf32, #tpu.memory_space<vmem>>, %arg7: memref<8x8xbf16, #tpu.memory_space<vmem>>, %arg8: memref<1x8xf32, #tpu.memory_space<vmem>>, %arg9: memref<1x8x16x8xf32, #tpu.memory_space<vmem>>, %arg10: memref<12x18x8xbf16, #tpu.memory_space<vmem>>) attributes {dimension_semantics = [#tpu.dimension_semantics<parallel>, #tpu.dimension_semantics<parallel>], iteration_bounds = array<i64: 2, 2>, scalar_prefetch = 0 : i64, scratch_operands = 1 : i64, tpu.core_type = #tpu.core_type<tc>, window_params = [{transform_indices = @transform_0, window_bounds = array<i64: 1, 16, 16, 4>}, {pipeline_mode = #tpu.pipeline_mode<synchronous>, transform_indices = @transform_1, window_bounds = array<i64: 4, 8>}, {pipeline_mode = #tpu.pipeline_mode<synchronous>, transform_indices = @transform_2, window_bounds = array<i64: 1, 8>}, {pipeline_mode = #tpu.pipeline_mode<synchronous>, transform_indices = @transform_3, window_bounds = array<i64: 72, 8>}, {pipeline_mode = #tpu.pipeline_mode<synchronous>, transform_indices = @transform_4, window_bounds = array<i64: 1, 8>}, {pipeline_mode = #tpu.pipeline_mode<synchronous>, transform_indices = @transform_5, window_bounds = array<i64: 8, 8>}, {pipeline_mode = #tpu.pipeline_mode<synchronous>, transform_indices = @transform_6, window_bounds = array<i64: 1, 8>}, {transform_indices = @transform_7, window_bounds = array<i64: 1, 8, 16, 8>}]} {
    %c8_i32 = arith.constant 8 : i32
    %0 = arith.muli %arg1, %c8_i32 : i32
    %c1_i32 = arith.constant 1 : i32
    %1 = arith.subi %0, %c1_i32 : i32
    %c0_i32 = arith.constant 0 : i32
    %c6_i32 = arith.constant 6 : i32
    %2 = arith.maxsi %c0_i32, %1 : i32
    %3 = arith.minsi %c6_i32, %2 : i32
    %4 = arith.subi %3, %1 : i32
    %c1_i32_0 = arith.constant 1 : i32
    %5 = arith.addi %4, %c1_i32_0 : i32
    %c0 = arith.constant 0 : index
    %6 = arith.index_cast %3 : i32 to index
    %c0_1 = arith.constant 0 : index
    %c0_2 = arith.constant 0 : index
    %7 = vector.load %arg2[%c0, %6, %c0_1, %c0_2] : memref<1x16x16x4xf32, #tpu.memory_space<vmem>>, vector<1x10x16x4xf32>
    %8 = vector.shape_cast %7 : vector<1x10x16x4xf32> to vector<10x16x4xf32>
    %9 = arith.truncf %8 : vector<10x16x4xf32> to vector<10x16x4xbf16>
    %10 = vector.shape_cast %9 : vector<10x16x4xbf16> to vector<160x4xbf16>
    %c0_3 = arith.constant 0 : index
    %c0_4 = arith.constant 0 : index
    %11 = vector.load %arg3[%c0_3, %c0_4] : memref<4x8xbf16, #tpu.memory_space<vmem>>, vector<4x8xbf16>
    %cst = arith.constant dense<0.000000e+00> : vector<160x8xf32>
    %12 = tpu.matmul %10, %11, %cst {dimension_numbers = #tpu.dot_dimension_numbers<[1], [0], [0], [1], [0, 0, 1, 1], [], []>} : vector<160x4xbf16>, vector<4x8xbf16>, vector<160x8xf32> -> vector<160x8xf32>
    %c0_5 = arith.constant 0 : index
    %c0_6 = arith.constant 0 : index
    %13 = vector.load %arg4[%c0_5, %c0_6] : memref<1x8xf32, #tpu.memory_space<vmem>>, vector<1x8xf32>
    %14 = vector.broadcast %13 : vector<1x8xf32> to vector<160x8xf32>
    %15 = arith.addf %12, %14 : vector<160x8xf32>
    %cst_7 = arith.constant 0.000000e+00 : f32
    %16 = vector.broadcast %cst_7 : f32 to vector<160x8xf32>
    %17 = arith.maximumf %15, %16 : vector<160x8xf32>
    %18 = vector.shape_cast %17 : vector<160x8xf32> to vector<10x16x8xf32>
    %19 = arith.truncf %18 : vector<10x16x8xf32> to vector<10x16x8xbf16>
    %cst_8 = arith.constant 0.000000e+00 : bf16
    %20 = vector.broadcast %cst_8 : bf16 to vector<1x18x8xbf16>
    %c1 = arith.constant 1 : index
    %c0_9 = arith.constant 0 : index
    %c0_10 = arith.constant 0 : index
    %21 = vector.load %arg10[%c1, %c0_9, %c0_10] : memref<12x18x8xbf16, #tpu.memory_space<vmem>>, vector<1x18x8xbf16>
    tpu.vector_store %arg10[%c1, %c0_9, %c0_10], %20 {strides = array<i32>} : memref<12x18x8xbf16, #tpu.memory_space<vmem>>, vector<1x18x8xbf16>,
    %cst_11 = arith.constant 0.000000e+00 : bf16
    %22 = vector.broadcast %cst_11 : bf16 to vector<1x18x8xbf16>
    %c10 = arith.constant 10 : index
    %c0_12 = arith.constant 0 : index
    %c0_13 = arith.constant 0 : index
    %23 = vector.load %arg10[%c10, %c0_12, %c0_13] : memref<12x18x8xbf16, #tpu.memory_space<vmem>>, vector<1x18x8xbf16>
    tpu.vector_store %arg10[%c10, %c0_12, %c0_13], %22 {strides = array<i32>} : memref<12x18x8xbf16, #tpu.memory_space<vmem>>, vector<1x18x8xbf16>,
    %cst_14 = arith.constant 0.000000e+00 : bf16
    %24 = vector.broadcast %cst_14 : bf16 to vector<12x1x8xbf16>
    %c0_15 = arith.constant 0 : index
    %c0_16 = arith.constant 0 : index
    %c0_17 = arith.constant 0 : index
    %25 = vector.load %arg10[%c0_15, %c0_16, %c0_17] : memref<12x18x8xbf16, #tpu.memory_space<vmem>>, vector<12x1x8xbf16>
    tpu.vector_store %arg10[%c0_15, %c0_16, %c0_17], %24 {strides = array<i32>} : memref<12x18x8xbf16, #tpu.memory_space<vmem>>, vector<12x1x8xbf16>,
    %cst_18 = arith.constant 0.000000e+00 : bf16
    %26 = vector.broadcast %cst_18 : bf16 to vector<12x1x8xbf16>
    %c0_19 = arith.constant 0 : index
    %c17 = arith.constant 17 : index
    %c0_20 = arith.constant 0 : index
    %27 = vector.load %arg10[%c0_19, %c17, %c0_20] : memref<12x18x8xbf16, #tpu.memory_space<vmem>>, vector<12x1x8xbf16>
    tpu.vector_store %arg10[%c0_19, %c17, %c0_20], %26 {strides = array<i32>} : memref<12x18x8xbf16, #tpu.memory_space<vmem>>, vector<12x1x8xbf16>,
    %28 = arith.index_cast %5 : i32 to index
    %c1_21 = arith.constant 1 : index
    %c0_22 = arith.constant 0 : index
    %29 = vector.load %arg10[%28, %c1_21, %c0_22] : memref<12x18x8xbf16, #tpu.memory_space<vmem>>, vector<10x16x8xbf16>
    tpu.vector_store %arg10[%28, %c1_21, %c0_22], %19 {strides = array<i32>} : memref<12x18x8xbf16, #tpu.memory_space<vmem>>, vector<10x16x8xbf16>,
    %c1_23 = arith.constant 1 : index
    %c0_24 = arith.constant 0 : index
    %c0_25 = arith.constant 0 : index
    %30 = vector.load %arg10[%c1_23, %c0_24, %c0_25] : memref<12x18x8xbf16, #tpu.memory_space<vmem>>, vector<8x16x8xbf16>
    %31 = vector.shape_cast %30 : vector<8x16x8xbf16> to vector<128x8xbf16>
    %c1_26 = arith.constant 1 : index
    %c1_27 = arith.constant 1 : index
    %c0_28 = arith.constant 0 : index
    %32 = vector.load %arg10[%c1_26, %c1_27, %c0_28] : memref<12x18x8xbf16, #tpu.memory_space<vmem>>, vector<8x16x8xbf16>
    %33 = vector.shape_cast %32 : vector<8x16x8xbf16> to vector<128x8xbf16>
    %c1_29 = arith.constant 1 : index
    %c2 = arith.constant 2 : index
    %c0_30 = arith.constant 0 : index
    %34 = vector.load %arg10[%c1_29, %c2, %c0_30] : memref<12x18x8xbf16, #tpu.memory_space<vmem>>, vector<8x16x8xbf16>
    %35 = vector.shape_cast %34 : vector<8x16x8xbf16> to vector<128x8xbf16>
    %c2_31 = arith.constant 2 : index
    %c0_32 = arith.constant 0 : index
    %c0_33 = arith.constant 0 : index
    %36 = vector.load %arg10[%c2_31, %c0_32, %c0_33] : memref<12x18x8xbf16, #tpu.memory_space<vmem>>, vector<8x16x8xbf16>
    %37 = vector.shape_cast %36 : vector<8x16x8xbf16> to vector<128x8xbf16>
    %c2_34 = arith.constant 2 : index
    %c1_35 = arith.constant 1 : index
    %c0_36 = arith.constant 0 : index
    %38 = vector.load %arg10[%c2_34, %c1_35, %c0_36] : memref<12x18x8xbf16, #tpu.memory_space<vmem>>, vector<8x16x8xbf16>
    %39 = vector.shape_cast %38 : vector<8x16x8xbf16> to vector<128x8xbf16>
    %c2_37 = arith.constant 2 : index
    %c2_38 = arith.constant 2 : index
    %c0_39 = arith.constant 0 : index
    %40 = vector.load %arg10[%c2_37, %c2_38, %c0_39] : memref<12x18x8xbf16, #tpu.memory_space<vmem>>, vector<8x16x8xbf16>
    %41 = vector.shape_cast %40 : vector<8x16x8xbf16> to vector<128x8xbf16>
    %c3 = arith.constant 3 : index
    %c0_40 = arith.constant 0 : index
    %c0_41 = arith.constant 0 : index
    %42 = vector.load %arg10[%c3, %c0_40, %c0_41] : memref<12x18x8xbf16, #tpu.memory_space<vmem>>, vector<8x16x8xbf16>
    %43 = vector.shape_cast %42 : vector<8x16x8xbf16> to vector<128x8xbf16>
    %c3_42 = arith.constant 3 : index
    %c1_43 = arith.constant 1 : index
    %c0_44 = arith.constant 0 : index
    %44 = vector.load %arg10[%c3_42, %c1_43, %c0_44] : memref<12x18x8xbf16, #tpu.memory_space<vmem>>, vector<8x16x8xbf16>
    %45 = vector.shape_cast %44 : vector<8x16x8xbf16> to vector<128x8xbf16>
    %c3_45 = arith.constant 3 : index
    %c2_46 = arith.constant 2 : index
    %c0_47 = arith.constant 0 : index
    %46 = vector.load %arg10[%c3_45, %c2_46, %c0_47] : memref<12x18x8xbf16, #tpu.memory_space<vmem>>, vector<8x16x8xbf16>
    %47 = vector.shape_cast %46 : vector<8x16x8xbf16> to vector<128x8xbf16>
    %48 = tpu.concatenate %31, %33, %35, %37, %39, %41, %43, %45, %47 in 1 : vector<128x8xbf16>, vector<128x8xbf16>, vector<128x8xbf16>, vector<128x8xbf16>, vector<128x8xbf16>, vector<128x8xbf16>, vector<128x8xbf16>, vector<128x8xbf16>, vector<128x8xbf16> -> vector<128x72xbf16>
    %c0_48 = arith.constant 0 : index
    %c0_49 = arith.constant 0 : index
    %49 = vector.load %arg5[%c0_48, %c0_49] : memref<72x8xbf16, #tpu.memory_space<vmem>>, vector<72x8xbf16>
    %cst_50 = arith.constant dense<0.000000e+00> : vector<128x8xf32>
    %50 = tpu.matmul %48, %49, %cst_50 {dimension_numbers = #tpu.dot_dimension_numbers<[1], [0], [0], [1], [0, 0, 1, 1], [], []>} : vector<128x72xbf16>, vector<72x8xbf16>, vector<128x8xf32> -> vector<128x8xf32>
    %c0_51 = arith.constant 0 : index
    %c0_52 = arith.constant 0 : index
    %51 = vector.load %arg6[%c0_51, %c0_52] : memref<1x8xf32, #tpu.memory_space<vmem>>, vector<1x8xf32>
    %52 = vector.broadcast %51 : vector<1x8xf32> to vector<128x8xf32>
    %53 = arith.addf %50, %52 : vector<128x8xf32>
    %cst_53 = arith.constant 0.000000e+00 : f32
    %54 = vector.broadcast %cst_53 : f32 to vector<128x8xf32>
    %55 = arith.maximumf %53, %54 : vector<128x8xf32>
    %56 = arith.truncf %55 : vector<128x8xf32> to vector<128x8xbf16>
    %c0_54 = arith.constant 0 : index
    %c0_55 = arith.constant 0 : index
    %57 = vector.load %arg7[%c0_54, %c0_55] : memref<8x8xbf16, #tpu.memory_space<vmem>>, vector<8x8xbf16>
    %cst_56 = arith.constant dense<0.000000e+00> : vector<128x8xf32>
    %58 = tpu.matmul %56, %57, %cst_56 {dimension_numbers = #tpu.dot_dimension_numbers<[1], [0], [0], [1], [0, 0, 1, 1], [], []>} : vector<128x8xbf16>, vector<8x8xbf16>, vector<128x8xf32> -> vector<128x8xf32>
    %c0_57 = arith.constant 0 : index
    %c0_58 = arith.constant 0 : index
    %59 = vector.load %arg8[%c0_57, %c0_58] : memref<1x8xf32, #tpu.memory_space<vmem>>, vector<1x8xf32>
    %60 = vector.broadcast %59 : vector<1x8xf32> to vector<128x8xf32>
    %61 = arith.addf %58, %60 : vector<128x8xf32>
    %cst_59 = arith.constant 0.000000e+00 : f32
    %62 = vector.broadcast %cst_59 : f32 to vector<128x8xf32>
    %63 = arith.maximumf %61, %62 : vector<128x8xf32>
    %64 = vector.shape_cast %63 : vector<128x8xf32> to vector<8x16x8xf32>
    %c0_60 = arith.constant 0 : index
    %c0_61 = arith.constant 0 : index
    %c0_62 = arith.constant 0 : index
    %c0_63 = arith.constant 0 : index
    %65 = vector.load %arg9[%c0_60, %c0_61, %c0_62, %c0_63] : memref<1x8x16x8xf32, #tpu.memory_space<vmem>>, vector<1x8x16x8xf32>
    %66 = vector.shape_cast %65 : vector<1x8x16x8xf32> to vector<8x16x8xf32>
    %67 = vector.shape_cast %64 : vector<8x16x8xf32> to vector<1x8x16x8xf32>
    tpu.vector_store %arg9[%c0_60, %c0_61, %c0_62, %c0_63], %67 {strides = array<i32>} : memref<1x8x16x8xf32, #tpu.memory_space<vmem>>, vector<1x8x16x8xf32>,
    return
  }
  func.func @transform_0(%arg0: i32, %arg1: i32) -> (i32, i32, i32, i32) {
    %c0_i32 = arith.constant 0 : i32
    %c0_i32_0 = arith.constant 0 : i32
    %c0_i32_1 = arith.constant 0 : i32
    %c0_i32_2 = arith.constant 0 : i32
    return %arg0, %c0_i32, %c0_i32_0, %c0_i32_1 : i32, i32, i32, i32
  }
  func.func @transform_1(%arg0: i32, %arg1: i32) -> (i32, i32) {
    %c0_i32 = arith.constant 0 : i32
    %c0_i32_0 = arith.constant 0 : i32
    %c0_i32_1 = arith.constant 0 : i32
    return %c0_i32, %c0_i32_0 : i32, i32
  }
  func.func @transform_2(%arg0: i32, %arg1: i32) -> (i32, i32) {
    %c0_i32 = arith.constant 0 : i32
    %c0_i32_0 = arith.constant 0 : i32
    %c0_i32_1 = arith.constant 0 : i32
    return %c0_i32, %c0_i32_0 : i32, i32
  }
  func.func @transform_3(%arg0: i32, %arg1: i32) -> (i32, i32) {
    %c0_i32 = arith.constant 0 : i32
    %c0_i32_0 = arith.constant 0 : i32
    %c0_i32_1 = arith.constant 0 : i32
    return %c0_i32, %c0_i32_0 : i32, i32
  }
  func.func @transform_4(%arg0: i32, %arg1: i32) -> (i32, i32) {
    %c0_i32 = arith.constant 0 : i32
    %c0_i32_0 = arith.constant 0 : i32
    %c0_i32_1 = arith.constant 0 : i32
    return %c0_i32, %c0_i32_0 : i32, i32
  }
  func.func @transform_5(%arg0: i32, %arg1: i32) -> (i32, i32) {
    %c0_i32 = arith.constant 0 : i32
    %c0_i32_0 = arith.constant 0 : i32
    %c0_i32_1 = arith.constant 0 : i32
    return %c0_i32, %c0_i32_0 : i32, i32
  }
  func.func @transform_6(%arg0: i32, %arg1: i32) -> (i32, i32) {
    %c0_i32 = arith.constant 0 : i32
    %c0_i32_0 = arith.constant 0 : i32
    %c0_i32_1 = arith.constant 0 : i32
    return %c0_i32, %c0_i32_0 : i32, i32
  }
  func.func @transform_7(%arg0: i32, %arg1: i32) -> (i32, i32, i32, i32) {
    %c0_i32 = arith.constant 0 : i32
    %c0_i32_0 = arith.constant 0 : i32
    %c0_i32_1 = arith.constant 0 : i32
    return %arg0, %arg1, %c0_i32, %c0_i32_0 : i32, i32, i32, i32
  }
}

</mosaic_0001>

<bundles_post_ra>
// kernel: tpu_custom_call.1
= control target key start
LH: loop header
LB: loop body
LE: loop exit
PB: predicated region body
PF: predicated region fallthrough
CT: control target
= control target key end

     0   :  { %s3094_s24 = smov 0   ;;  %s3096_s25 = smov 0   ;;  %s4230_s0 = inlined_call_operand.vmem [shape: f32[2,16,16,4], index: 0, kind: input, shape index: {}]   ;;  %s4231_s1 = inlined_call_operand.vmem [shape: bf16[4,8], index: 1, kind: input, shape index: {}]   ;;  %s4232_s2 = inlined_call_operand.vmem [shape: f32[1,8], index: 2, kind: input, shape index: {}]   ;;  %s4233_s3 = inlined_call_operand.vmem [shape: bf16[72,8], index: 3, kind: input, shape index: {}]   ;;  %s4234_s4 = inlined_call_operand.vmem [shape: f32[1,8], index: 4, kind: input, shape index: {}]   ;;  %s4235_s5 = inlined_call_operand.vmem [shape: bf16[8,8], index: 5, kind: input, shape index: {}]   ;;  %s4236_s6 = inlined_call_operand.vmem [shape: f32[1,8], index: 6, kind: input, shape index: {}]   ;;  %s4237_s7 = inlined_call_operand.vmem [shape: f32[2,16,16,8], index: 7, kind: output, shape index: {}]  }
   0x1   :  { %s3098_s26 = smov 0   ;;  %s3100_s27 = smov 0  }
   0x2   :  { %s3102_s28 = smov 0  }
   0x3 LB: > { %s26_s29 = sadd.s32 1, %s3035_s26  ;;  %s29_s30 = sadd.s32 1, %s3039_s27  ;;  %s3043_s28 = sphi %s3102_s28, %s17_s28   ;;  %s3039_s27 = sphi %s3100_s27, %s4253_s27   ;;  %s3035_s26 = sphi %s3098_s26, %s4252_s26   ;;  %s3031_s25 = sphi %s3096_s25, %s4251_s25   ;;  %s3027_s24 = sphi %s3094_s24, %s4250_s24  }
   0x4   : > { %p27_p0 = scmp.ge.s32.totalorder %s26_s29, 2  ;;  %p2686_p1 = scmp.ge.s32.totalorder %s3043_s28, 1 }
   0x5   : > { %p251_p2 = scmp.lt.s32.totalorder %s3043_s28, 5 }
   0x6   : > { %s4255_s29 = smov (%p27_p0, %s26_s29), 0  ;;  %s4257_s30 = smov (!%p27_p0, %s29_s30), %s3039_s27 }
   0x7   : > { %p252_p3 = pnand %p2686_p1, %p251_p2  ;;  %p31_p4 = scmp.ge.s32.totalorder %s4257_s30, 2 }
   0x8   : > { %p288_p5 = scmp.lt.s32.totalorder (!%p252_p3), %s3031_s25, 1  ;;  %s3127_s10 = sshll.u32 (!%p252_p3), %s3027_s24, 3 }
   0x9   : > { %s4259_s30 = smov (%p31_p4, %s4257_s30), 0  ;;  %255 = sbr.rel (%p252_p3) target bundleno = 870 (0x366), region = 48 }
   0xa   : > { %s3130_s11 = sadd.s32 (!%p252_p3), 4294967295, %s3127_s10  ;;  %s3046_s24 = smov (!%p252_p3), 48  }
   0xb   : > { %p307_p6 = scmp.gt.s32.totalorder (!%p252_p3), %s3130_s11, 0  ;;  %p2695_p7 = scmp.lt.s32.totalorder (!%p252_p3), %s3130_s11, 6 }
   0xc   : > { %s3047_s8 = smov (!%p252_p3), 24   ;;  %s3048_s9 = smov (!%p252_p3), 16  }
   0xd   : > { %s3052_s14 = smov (!%p252_p3), 32   ;;  %s3053_s15 = smov (!%p252_p3), 56  }
   0xe   : > { %v355_v0 = vld [vmem:[%s4231_s1] sm:$0x3]  ;;  %vm441_vm0 = vcmask 1041408   ;;  %s4261_s25 = smov (!%p288_p5, %s3031_s25), 1  ;;  %vm410_vm1 = vcmask 31744   ;;  %vm545_vm2 = vcmask 60416  }
   0xf   : > { %v443_v1 = vsel %vm441_vm0, %v355_v0, 0  ;;  %s2915_s12 = sshll.u32 %s4261_s25, 8  ;;  %vm548_vm3 = vcmask 57344   ;;  %vm555_vm4 = vsmask.f32 256  ;;  %vm1159_vm11 = vcmask 1042432  }
  0x10   : > { %452 = vmatpush.bf16.msra.mxu0 %v443_v1  ;;  %2946 = vmatpush.bf16.msra.mxu3 %v443_v1  ;;  %s308_s13 = scalar_select %p307_p6, %s3130_s11, 0  ;;  %vm3186_vm5 = vmand %vm548_vm3, %vm555_vm4  ;;  %vm593_vm6 = vsmask.f32 7938  ;;  %vm631_vm9 = vsmask.f32 4368  ;;  %vm1160_vm12 = vcmask 1046532  }
  0x11   : > { %s292_s16 = scalar_lea.vmem %s4230_s0, %s2915_s12  ;;  %vm3212_vm7 = vmand %vm548_vm3, %vm593_vm6  ;;  %s3050_s12 = smov 64   ;;  %vm932_vm14 = vsmask.f32 3328  ;;  %vm933_vm15 = vsmask.f32 7440 }
  0x12   : > { %s4263_s13 = smov (!%p2695_p7, %s308_s13), 6  ;;  %vm3256_vm8 = vmand %vm545_vm2, %vm593_vm6  ;;  %vm2397_vm6 = vcmask 1043456   ;;  %p296_p8 = scmp.lt.s32.totalorder %s3127_s10, 15 }
  0x13   : > { %s311_s17 = ssub.s32 %s4263_s13, %s3130_s11  ;;  %s2700_s18 = sshll.u32 %s4263_s13, 4  ;;  %vm3268_vm10 = vmor %vm555_vm4, %vm631_vm9  ;;  %vm2255_vm4 = vcmask 261120   ;;  %vm2323_vm9 = vcmask 523264  }
  0x14   : > { %s3146_s19 = scalar_lea.vmem %s292_s16, %s2700_s18  ;;  %s2637_s22 = smul.u32 12, %s311_s17  ;;  %vm3412_vm13 = vmor %vm1159_vm11, %vm1160_vm12 }
  0x15   : > { %v315_v2 = vld [vmem:[%s3146_s19] sm:$0xff]  ;;  %v316_v3 = vld [vmem:[%s3146_s19 + $0x8] sm:$0xff]  ;;  %v317_v9 = vld [vmem:[%s3146_s19 + $0x10] sm:$0xff]  ;;  %s3049_s11 = smov 40   ;;  %s3051_s13 = smov 8  }
  0x16   : > { %v335_v4 = vpack.c.bf16 %v315_v2, %v315_v2  ;;  %v336_v5 = vpack.c.bf16 %v316_v3, %v316_v3  ;;  %v318_v10 = vld [vmem:[%s3146_s19 + $0x18] sm:$0xff]  ;;  %v337_v11 = vpack.c.bf16 %v317_v9, %v317_v9  ;;  %v329_v15 = vld [vmem:[%s3146_s19 + $0x70] sm:$0xff]  ;;  %v319_v23 = vld [vmem:[%s3146_s19 + $0x20] sm:$0xff]  ;;  %s3260_s23 = scalar_lea.vmem [#allocation2], %s2637_s22  ;;  %s4265_s10 = smov (!%p296_p8, %s3127_s10), 15 }
  0x17   : > { %v338_v12 = vpack.c.bf16 %v318_v10, %v318_v10  ;;  %v330_v16 = vld [vmem:[%s3146_s19 + $0x78] sm:$0xff]  ;;  %v349_v17 = vpack.c.bf16 %v329_v15, %v329_v15  ;;  %v320_v24 = vld [vmem:[%s3146_s19 + $0x28] sm:$0xff]  ;;  %v339_v25 = vpack.c.bf16 %v319_v23, %v319_v23  ;;  %v331_v29 = vld [vmem:[%s3146_s19 + $0x80] sm:$0xff] }
  0x18   : > { %v380_v6 = vunpack.c.l.b16 %v335_v4  ;;  %v381_v7 = vunpack.c.l.b16 %v336_v5  ;;  %v382_v13 = vunpack.c.l.b16 %v337_v11  ;;  %v350_v18 = vpack.c.bf16 %v330_v16, %v330_v16  ;;  %v332_v30 = vld [vmem:[%s3146_s19 + $0x88] sm:$0xff]  ;;  %v321_v37 = vld [vmem:[%s3146_s19 + $0x30] sm:$0xff]  ;;  %v322_v38 = vld [vmem:[%s3146_s19 + $0x38] sm:$0xff] }
  0x19   : > { %v383_v14 = vunpack.c.l.b16 %v338_v12  ;;  %v394_v20 = vunpack.c.l.b16 %v349_v17  ;;  %v340_v26 = vpack.c.bf16 %v320_v24, %v320_v24  ;;  %v384_v27 = vunpack.c.l.b16 %v339_v25  ;;  %v333_v43 = vld [vmem:[%s3146_s19 + $0x90] sm:$0xff]  ;;  %v334_v44 = vld [vmem:[%s3146_s19 + $0x98] sm:$0xff]  ;;  %v323_v51 = vld [vmem:[%s3146_s19 + $0x40] sm:$0xff] }
  0x1a   : > { %v400_v8 = vpack.c.b16 %v381_v7, %v380_v6  ;;  %v395_v21 = vunpack.c.l.b16 %v350_v18  ;;  %v351_v31 = vpack.c.bf16 %v331_v29, %v331_v29  ;;  %v352_v32 = vpack.c.bf16 %v332_v30, %v332_v30  ;;  %v324_v52 = vld [vmem:[%s3146_s19 + $0x48] sm:$0xff]  ;;  %v325_v58 = vld [vmem:[%s3146_s19 + $0x50] sm:$0xff]  ;;  %v326_v59 = vld [vmem:[%s3146_s19 + $0x58] sm:$0xff] }
  0x1b   : > { %v401_v19 = vpack.c.b16 %v383_v14, %v382_v13  ;;  %v385_v28 = vunpack.c.l.b16 %v340_v26  ;;  %v341_v39 = vpack.c.bf16 %v321_v37, %v321_v37  ;;  %v342_v40 = vpack.c.bf16 %v322_v38, %v322_v38  ;;  %v327_v1 = vld [vmem:[%s3146_s19 + $0x60] sm:$0xff]  ;;  %v328_v2 = vld [vmem:[%s3146_s19 + $0x68] sm:$0xff]  ;;  %v563_v14 = vld [vmem:[#allocation2 + $0x18] sm:$0x1] }
  0x1c   : > { %2701 = vmatmul.msk.bf16.vlgmr.msra.gmra.mxu0 %vm410_vm1, %v400_v8  ;;  %v407_v22 = vpack.c.b16 %v395_v21, %v394_v20  ;;  %v396_v34 = vunpack.c.l.b16 %v351_v31  ;;  %v397_v35 = vunpack.c.l.b16 %v352_v32  ;;  %v353_v45 = vpack.c.bf16 %v333_v43, %v333_v43  ;;  %v557_v10 = vld [vmem:[#allocation2] sm:$0x1]  ;;  %v566_v15 = vld [vmem:[#allocation2 + $0x24] sm:$0x1]  ;;  %v569_v18 = vld [vmem:[#allocation2 + $0x30] sm:$0x1] }
  0x1d   : > { %v402_v33 = vpack.c.b16 %v385_v28, %v384_v27  ;;  %v386_v41 = vunpack.c.l.b16 %v341_v39  ;;  %v387_v42 = vunpack.c.l.b16 %v342_v40  ;;  %v354_v46 = vpack.c.bf16 %v334_v44, %v334_v44  ;;  %v572_v20 = vld [vmem:[#allocation2 + $0x3c] sm:$0x1]  ;;  %v578_v24 = vld [vmem:[#allocation2 + $0x54] sm:$0x1]  ;;  %v581_v26 = vld [vmem:[#allocation2 + $0x60] sm:$0x1] }
  0x1e   : > { %2708 = vmatmul.msk.bf16.vlgmr.msra.gmra.mxu3 %vm410_vm1, %v407_v22  ;;  %v408_v36 = vpack.c.b16 %v397_v35, %v396_v34  ;;  %v398_v48 = vunpack.c.l.b16 %v353_v45  ;;  %v343_v53 = vpack.c.bf16 %v323_v51, %v323_v51  ;;  %v344_v54 = vpack.c.bf16 %v324_v52, %v324_v52  ;;  %v575_v22 = vld [vmem:[#allocation2 + $0x48] sm:$0x1]  ;;  %v584_v28 = vld [vmem:[#allocation2 + $0x6c] sm:$0x1]  ;;  %v601_v39 = vld [vmem:[#allocation2 + $0x20] sm:$0x1] }
  0x1f   : > { %v403_v47 = vpack.c.b16 %v387_v42, %v386_v41  ;;  %v399_v49 = vunpack.c.l.b16 %v354_v46  ;;  %v345_v60 = vpack.c.bf16 %v325_v58, %v325_v58  ;;  %v346_v61 = vpack.c.bf16 %v326_v59, %v326_v59  ;;  %v595_v35 = vld [vmem:[#allocation2 + $0x8] sm:$0x1]  ;;  %v604_v41 = vld [vmem:[#allocation2 + $0x2c] sm:$0x1]  ;;  %v607_v43 = vld [vmem:[#allocation2 + $0x38] sm:$0x1] }
  0x20   : > { %v388_v55 = vunpack.c.l.b16 %v343_v53  ;;  %v389_v56 = vunpack.c.l.b16 %v344_v54  ;;  %v347_v3 = vpack.c.bf16 %v327_v1, %v327_v1  ;;  %v348_v4 = vpack.c.bf16 %v328_v2, %v328_v2  ;;  %v610_v45 = vld [vmem:[#allocation2 + $0x44] sm:$0x1]  ;;  %v619_v51 = vld [vmem:[#allocation2 + $0x68] sm:$0x1]  ;;  %v622_v53 = vld [vmem:[#allocation2 + $0x74] sm:$0x1] }
  0x21   : > { %v409_v50 = vpack.c.b16 %v399_v49, %v398_v48  ;;  %v390_v62 = vunpack.c.l.b16 %v345_v60  ;;  %v391_v63 = vunpack.c.l.b16 %v346_v61  ;;  %v3045_v7 = vmov 0   ;;  %v616_v49 = vld [vmem:[#allocation2 + $0x5c] sm:$0x1]  ;;  %v3247_v59 = vld [vmem:[%s4232_s2] ss:$0 sm:$0xff]  ;;  %vm3622_vm0 = vmor %vm932_vm14, %vm933_vm15 }
  0x22   : > { %v404_v57 = vpack.c.b16 %v389_v56, %v388_v55  ;;  %v392_v5 = vunpack.c.l.b16 %v347_v3  ;;  %v393_v6 = vunpack.c.l.b16 %v348_v4  ;;  %546 = vst.msk [vmem:[#allocation2 + $0xc] sm:$0xf] %vm545_vm2, %v3045_v7  ;;  %v558_v12 = vsel %vm3186_vm5, 0, %v557_v10 }
  0x23   : > { %v405_v0 = vpack.c.b16 %v391_v63, %v390_v62  ;;  %547 = vst.msk [vmem:[#allocation2 + $0x10] sm:$0xf] %vm545_vm2, %v3045_v7  ;;  %v564_v16 = vsel %vm3186_vm5, 0, %v563_v14  ;;  %v567_v17 = vsel %vm3186_vm5, 0, %v566_v15  ;;  %v573_v21 = vsel %vm3186_vm5, 0, %v572_v20 }
  0x24   : > { %549 = vst.msk [vmem:[#allocation2 + $0x14] sm:$0x1] %vm548_vm3, %v3045_v7  ;;  %v406_v8 = vpack.c.b16 %v393_v6, %v392_v5  ;;  %v576_v23 = vsel %vm3186_vm5, 0, %v575_v22  ;;  %v579_v25 = vsel %vm3186_vm5, 0, %v578_v24  ;;  %v582_v27 = vsel %vm3186_vm5, 0, %v581_v26 }
  0x25   : > { %551 = vst.msk [vmem:[#allocation2 + $0x78] sm:$0xf] %vm545_vm2, %v3045_v7  ;;  %v585_v29 = vsel %vm3186_vm5, 0, %v584_v28  ;;  %v602_v40 = vsel %vm3212_vm7, 0, %v601_v39  ;;  %v605_v42 = vsel %vm3212_vm7, 0, %v604_v41  ;;  %v608_v44 = vsel %vm3212_vm7, 0, %v607_v43 }
  0x26   : > { %552 = vst.msk [vmem:[#allocation2 + $0x7c] sm:$0xf] %vm545_vm2, %v3045_v7  ;;  %v611_v46 = vsel %vm3212_vm7, 0, %v610_v45  ;;  %v620_v52 = vsel %vm3212_vm7, 0, %v619_v51  ;;  %v623_v54 = vsel %vm3212_vm7, 0, %v622_v53 }
  0x27   : > { %553 = vst.msk [vmem:[#allocation2 + $0x80] sm:$0x1] %vm548_vm3, %v3045_v7  ;;  %vm2238_vm3 = vcmask 195584  }
  0x28   : > { %559 = vst [vmem:[#allocation2] sm:$0x1] %v558_v12 }
  0x29   : > { %v560_v11 = vld [vmem:[#allocation2 + $0xc] sm:$0x1]  ;;  %565 = vst [vmem:[#allocation2 + $0x18] sm:$0x1] %v564_v16 }
  0x2a   : > { %v561_v13 = vsel %vm3186_vm5, 0, %v560_v11  ;;  %568 = vst [vmem:[#allocation2 + $0x24] sm:$0x1] %v567_v17 }
  0x2b   : > { %562 = vst [vmem:[#allocation2 + $0xc] sm:$0x1] %v561_v13  ;;  %v598_v37 = vld [vmem:[#allocation2 + $0x14] sm:$0x1] }
  0x2c   : > { %2702 = vmatmul.msk.bf16.gmra.mxu0 %vm410_vm1, %v401_v19  ;;  %v570_v19 = vsel %vm3186_vm5, 0, %v569_v18  ;;  %574 = vst [vmem:[#allocation2 + $0x3c] sm:$0x1] %v573_v21  ;;  %v587_v30 = vld [vmem:[#allocation2 + $0x78] sm:$0x1]  ;;  %v599_v38 = vsel %vm3212_vm7, 0, %v598_v37 }
  0x2d   : > { %571 = vst [vmem:[#allocation2 + $0x30] sm:$0x1] %v570_v19  ;;  %v588_v32 = vsel %vm3186_vm5, 0, %v587_v30 }
  0x2e   : > { %2709 = vmatmul.msk.bf16.gmra.mxu3 %vm410_vm1, %v408_v36  ;;  %577 = vst [vmem:[#allocation2 + $0x48] sm:$0x1] %v576_v23  ;;  %v596_v36 = vsel %vm3212_vm7, 0, %v595_v35  ;;  %v625_v55 = vld [vmem:[#allocation2 + $0x80] sm:$0x1] }
  0x2f   : > { %580 = vst [vmem:[#allocation2 + $0x54] sm:$0x1] %v579_v25  ;;  %v626_v56 = vsel %vm3212_vm7, 0, %v625_v55 }
  0x30   : > { %583 = vst [vmem:[#allocation2 + $0x60] sm:$0x1] %v582_v27 }
  0x31   : > { %586 = vst [vmem:[#allocation2 + $0x6c] sm:$0x1] %v585_v29 }
  0x32   : > { %589 = vst [vmem:[#allocation2 + $0x78] sm:$0x1] %v588_v32 }
  0x33   : > { %597 = vst [vmem:[#allocation2 + $0x8] sm:$0x1] %v596_v36 }
  0x34   : > { %600 = vst [vmem:[#allocation2 + $0x14] sm:$0x1] %v599_v38 }
  0x35   : > { %603 = vst [vmem:[#allocation2 + $0x20] sm:$0x1] %v602_v40 }
  0x36   : > { %606 = vst [vmem:[#allocation2 + $0x2c] sm:$0x1] %v605_v42 }
  0x37   : > { %609 = vst [vmem:[#allocation2 + $0x38] sm:$0x1] %v608_v44 }
  0x38   : > { %612 = vst [vmem:[#allocation2 + $0x44] sm:$0x1] %v611_v46 }
  0x39   : > { %621 = vst [vmem:[#allocation2 + $0x68] sm:$0x1] %v620_v52 }
  0x3a   : > { %624 = vst [vmem:[#allocation2 + $0x74] sm:$0x1] %v623_v54 }
  0x3b   : > { %627 = vst [vmem:[#allocation2 + $0x80] sm:$0x1] %v626_v56 }
  0x3c   : > { %2703 = vmatmul.msk.bf16.gmra.mxu0 %vm410_vm1, %v402_v33  ;;  %v590_v33 = vld [vmem:[#allocation2 + $0x84] sm:$0x1] }
  0x3d   : > { %v591_v34 = vsel %vm3186_vm5, 0, %v590_v33 }
  0x3e   : > { %2710 = vmatmul.msk.bf16.gmra.mxu3 %vm410_vm1, %v409_v50  ;;  %592 = vst [vmem:[#allocation2 + $0x84] sm:$0x1] %v591_v34  ;;  %v617_v50 = vsel %vm3212_vm7, 0, %v616_v49 }
  0x3f   : > { %618 = vst [vmem:[#allocation2 + $0x5c] sm:$0x1] %v617_v50 }
  0x4c   : > { %2704 = vmatmul.msk.bf16.gmra.mxu0 %vm410_vm1, %v403_v47  ;;  %v613_v47 = vld [vmem:[#allocation2 + $0x50] sm:$0x1] }
  0x4d   : > { %v614_v48 = vsel %vm3212_vm7, 0, %v613_v47 }
  0x4e   : > { %615 = vst [vmem:[#allocation2 + $0x50] sm:$0x1] %v614_v48 }
  0x5c   : > { %2705 = vmatmul.msk.bf16.gmra.mxu0 %vm410_vm1, %v404_v57  ;;  %v628_v57 = vld [vmem:[#allocation2 + $0x8c] sm:$0x1] }
  0x5d   : > { %v629_v58 = vsel %vm3212_vm7, 0, %v628_v57  ;;  %vm2289_vm7 = vcmask 392192  }
  0x5e   : > { %630 = vst [vmem:[#allocation2 + $0x8c] sm:$0x1] %v629_v58 }
  0x65   : > { %v2711_v6 = vld [vmem:[%s3260_s23 + $0xc] sm:$0xf]  ;;  %v2714_v18 = vld [vmem:[%s3260_s23 + $0x14] sm:$0x1]  ;;  %v2716_v32 = vld [vmem:[%s3260_s23 + $0x18] sm:$0xf] }
  0x66   : > { %v2719_v46 = vld [vmem:[%s3260_s23 + $0x20] sm:$0x1] }
  0x6c   : > { %2706 = vmatmul.msk.bf16.gmra.mxu0 %vm410_vm1, %v405_v0 }
  0x7c   : > { %2707 = vmatmul.msk.bf16.gmra.mxu0 %vm410_vm1, %v406_v8  ;;  %vm2196_vm1 = vcmask 64512  }
  0x99   : > { %v454_v60 = vpop.f32.mrf.mxu0 }
  0x9a   : > { %v455_v61 = vadd.f32 %v3247_v59, %v454_v60 }
  0x9c   : > { %v504_v62 = vmax.f32 %v455_v61, 0.0 }
  0x9e   : > { %v524_v63 = vpack.c.bf16 %v504_v62, %v504_v62 }
  0xa0   : > { %v634_v0 = vshrl.u32 %v524_v63, 16  ;;  %v637_v3 = vshll.u32 %v524_v63, 16  ;;  %v2746_v63 = vld [vmem:[%s3260_s23 + $0x60] sm:$0xf] }
  0xa1   : > { %v456_v1 = vpop.f32.mrf.mxu0  ;;  %v489_v27 = vpop.f32.mrf.mxu3 }
  0xa2   : > { %v636_v2 = vrot.slane %v634_v0, 7  ;;  %v457_v4 = vadd.f32 %v3247_v59, %v456_v1  ;;  %v490_v37 = vadd.f32 %v3247_v59, %v489_v27 }
  0xa4   : > { %v639_v7 = vor.u32 %v637_v3, %v636_v2  ;;  %v505_v8 = vmax.f32 %v457_v4, 0.0  ;;  %v640_v19 = vrot.slane %v636_v2, 4  ;;  %v518_v41 = vmax.f32 %v490_v37, 0.0 }
  0xa6   : > { %v839_v10 = vsel %vm3256_vm8, %v639_v7, %v2711_v6  ;;  %v525_v11 = vpack.c.bf16 %v505_v8, %v505_v8  ;;  %v538_v47 = vpack.c.bf16 %v518_v41, %v518_v41 }
  0xa7   : > { %2712 = vst [vmem:[%s3260_s23 + $0xc] sm:$0xf] %v839_v10 }
  0xa8   : > { %v642_v12 = vshrl.u32 %v525_v11, 16  ;;  %v645_v15 = vshll.u32 %v525_v11, 16  ;;  %v753_v53 = vshrl.u32 %v538_v47, 16  ;;  %v756_v54 = vshll.u32 %v538_v47, 16  ;;  %v2749_v11 = vld [vmem:[%s3260_s23 + $0x68] sm:$0x1] }
  0xa9   : > { %v459_v13 = vpop.f32.mrf.mxu0  ;;  %v491_v39 = vpop.f32.mrf.mxu3 }
  0xaa   : > { %v644_v14 = vrot.slane %v642_v12, 7  ;;  %v460_v16 = vadd.f32 %v3247_v59, %v459_v13  ;;  %v492_v42 = vadd.f32 %v3247_v59, %v491_v39  ;;  %v755_v60 = vrot.slane %v753_v53, 7  ;;  %v2721_v12 = vld [vmem:[%s3260_s23 + $0x24] sm:$0xf] }
  0xac   : > { %v647_v20 = vor.u32 %v645_v15, %v644_v14  ;;  %v649_v21 = vrot.slane %v644_v14, 4  ;;  %v506_v22 = vmax.f32 %v460_v16, 0.0  ;;  %v519_v48 = vmax.f32 %v492_v42, 0.0 }
  0xad   : > { %v758_v3 = vor.u32 %v756_v54, %v755_v60  ;;  %v759_v4 = vrot.slane %v755_v60, 4  ;;  %v2726_v60 = vld [vmem:[%s3260_s23 + $0x30] sm:$0xf] }
  0xae   : > { %v648_v23 = vsel %vm3268_vm10, %v640_v19, %v647_v20  ;;  %v843_v24 = vsel %vm3186_vm5, %v649_v21, %v2714_v18  ;;  %v526_v25 = vpack.c.bf16 %v506_v22, %v506_v22  ;;  %v539_v55 = vpack.c.bf16 %v519_v48, %v519_v48  ;;  %v2751_v48 = vld [vmem:[%s3260_s23 + $0x6c] sm:$0xf] }
  0xaf   : > { %2713 = vst.msk [vmem:[%s3260_s23 + $0x10] sm:$0xf] %vm545_vm2, %v648_v23  ;;  %v888_v13 = vsel %vm3256_vm8, %v758_v3, %v2746_v63 }
  0xb0   : > { %2715 = vst [vmem:[%s3260_s23 + $0x14] sm:$0x1] %v843_v24  ;;  %v651_v26 = vshrl.u32 %v526_v25, 16  ;;  %v654_v30 = vshll.u32 %v526_v25, 16  ;;  %v761_v61 = vshrl.u32 %v539_v55, 16  ;;  %v764_v0 = vshll.u32 %v539_v55, 16 }
  0xb1   : > { %v461_v28 = vpop.f32.mrf.mxu0  ;;  %v494_v1 = vpop.f32.mrf.mxu3  ;;  %2747 = vst [vmem:[%s3260_s23 + $0x60] sm:$0xf] %v888_v13 }
  0xb2   : > { %v653_v29 = vrot.slane %v651_v26, 7  ;;  %v462_v31 = vadd.f32 %v3247_v59, %v461_v28  ;;  %v763_v6 = vrot.slane %v761_v61, 7  ;;  %v495_v23 = vadd.f32 %v3247_v59, %v494_v1 }
  0xb4   : > { %v656_v33 = vor.u32 %v654_v30, %v653_v29  ;;  %v507_v34 = vmax.f32 %v462_v31, 0.0  ;;  %v657_v49 = vrot.slane %v653_v29, 4  ;;  %v766_v14 = vor.u32 %v764_v0, %v763_v6 }
  0xb5   : > { %v768_v15 = vrot.slane %v763_v6, 4  ;;  %v520_v27 = vmax.f32 %v495_v23, 0.0 }
  0xb6   : > { %v846_v35 = vsel %vm3256_vm8, %v656_v33, %v2716_v32  ;;  %v527_v36 = vpack.c.bf16 %v507_v34, %v507_v34  ;;  %v767_v19 = vsel %vm3268_vm10, %v759_v4, %v766_v14  ;;  %v2724_v32 = vld [vmem:[%s3260_s23 + $0x2c] sm:$0x1] }
  0xb7   : > { %2717 = vst [vmem:[%s3260_s23 + $0x18] sm:$0xf] %v846_v35  ;;  %v892_v20 = vsel %vm3186_vm5, %v768_v15, %v2749_v11  ;;  %v540_v33 = vpack.c.bf16 %v520_v27, %v520_v27 }
  0xb8   : > { %v659_v38 = vshrl.u32 %v527_v36, 16  ;;  %v662_v44 = vshll.u32 %v527_v36, 16  ;;  %2748 = vst.msk [vmem:[%s3260_s23 + $0x64] sm:$0xf] %vm545_vm2, %v767_v19 }
  0xb9   : > { %v464_v40 = vpop.f32.mrf.mxu0  ;;  %2750 = vst [vmem:[%s3260_s23 + $0x68] sm:$0x1] %v892_v20  ;;  %v496_v25 = vpop.f32.mrf.mxu3  ;;  %v770_v39 = vshrl.u32 %v540_v33, 16 }
  0xba   : > { %v661_v43 = vrot.slane %v659_v38, 7  ;;  %v465_v45 = vadd.f32 %v3247_v59, %v464_v40  ;;  %v497_v28 = vadd.f32 %v3247_v59, %v496_v25  ;;  %v773_v40 = vshll.u32 %v540_v33, 16 }
  0xbc   : > { %v664_v50 = vor.u32 %v662_v44, %v661_v43  ;;  %v666_v51 = vrot.slane %v661_v43, 4  ;;  %v508_v52 = vmax.f32 %v465_v45, 0.0  ;;  %v521_v34 = vmax.f32 %v497_v28, 0.0 }
  0xbd   : > { %v772_v45 = vrot.slane %v770_v39, 7 }
  0xbe   : > { %v665_v56 = vsel %vm3268_vm10, %v657_v49, %v664_v50  ;;  %v850_v57 = vsel %vm3186_vm5, %v666_v51, %v2719_v46  ;;  %v528_v58 = vpack.c.bf16 %v508_v52, %v508_v52  ;;  %v541_v41 = vpack.c.bf16 %v521_v34, %v521_v34  ;;  %v2756_v34 = vld [vmem:[%s3260_s23 + $0x78] sm:$0xf] }
  0xbf   : > { %2718 = vst.msk [vmem:[%s3260_s23 + $0x1c] sm:$0xf] %vm545_vm2, %v665_v56  ;;  %v775_v52 = vor.u32 %v773_v40, %v772_v45  ;;  %v776_v53 = vrot.slane %v772_v45, 4 }
  0xc0   : > { %2720 = vst [vmem:[%s3260_s23 + $0x20] sm:$0x1] %v850_v57  ;;  %v668_v62 = vshrl.u32 %v528_v58, 16  ;;  %v671_v8 = vshll.u32 %v528_v58, 16  ;;  %v778_v46 = vshrl.u32 %v541_v41, 16  ;;  %v781_v49 = vshll.u32 %v541_v41, 16 }
  0xc1   : > { %v466_v2 = vpop.f32.mrf.mxu0  ;;  %v499_v50 = vpop.f32.mrf.mxu3  ;;  %v2754_v58 = vld [vmem:[%s3260_s23 + $0x74] sm:$0x1]  ;;  %v895_v61 = vsel %vm3256_vm8, %v775_v52, %v2751_v48 }
  0xc2   : > { %v670_v7 = vrot.slane %v668_v62, 7  ;;  %v467_v10 = vadd.f32 %v3247_v59, %v466_v2  ;;  %v780_v54 = vrot.slane %v778_v46, 7  ;;  %2752 = vst [vmem:[%s3260_s23 + $0x6c] sm:$0xf] %v895_v61 }
  0xc4   : > { %v673_v16 = vor.u32 %v671_v8, %v670_v7  ;;  %v509_v18 = vmax.f32 %v467_v10, 0.0  ;;  %v674_v35 = vrot.slane %v670_v7, 4  ;;  %v783_v62 = vor.u32 %v781_v49, %v780_v54 }
  0xc5   : > { %v785_v63 = vrot.slane %v780_v54, 4  ;;  %v500_v7 = vadd.f32 %v3247_v59, %v499_v50 }
  0xc6   : > { %v853_v21 = vsel %vm3256_vm8, %v673_v16, %v2721_v12  ;;  %v529_v22 = vpack.c.bf16 %v509_v18, %v509_v18  ;;  %v784_v2 = vsel %vm3268_vm10, %v776_v53, %v783_v62  ;;  %v2729_v18 = vld [vmem:[%s3260_s23 + $0x38] sm:$0x1] }
  0xc7   : > { %2722 = vst [vmem:[%s3260_s23 + $0x24] sm:$0xf] %v853_v21  ;;  %v899_v3 = vsel %vm3186_vm5, %v785_v63, %v2754_v58  ;;  %v522_v12 = vmax.f32 %v500_v7, 0.0 }
  0xc8   : > { %v676_v24 = vshrl.u32 %v529_v22, 16  ;;  %v679_v30 = vshll.u32 %v529_v22, 16  ;;  %2753 = vst.msk [vmem:[%s3260_s23 + $0x70] sm:$0xf] %vm545_vm2, %v784_v2 }
  0xc9   : > { %v469_v26 = vpop.f32.mrf.mxu0  ;;  %2755 = vst [vmem:[%s3260_s23 + $0x74] sm:$0x1] %v899_v3  ;;  %v501_v10 = vpop.f32.mrf.mxu3  ;;  %v542_v19 = vpack.c.bf16 %v522_v12, %v522_v12 }
  0xca   : > { %v678_v29 = vrot.slane %v676_v24, 7  ;;  %v470_v31 = vadd.f32 %v3247_v59, %v469_v26  ;;  %v502_v13 = vadd.f32 %v3247_v59, %v501_v10 }
  0xcb   : > { %v787_v25 = vshrl.u32 %v542_v19, 16  ;;  %v790_v26 = vshll.u32 %v542_v19, 16 }
  0xcc   : > { %v681_v36 = vor.u32 %v679_v30, %v678_v29  ;;  %v683_v37 = vrot.slane %v678_v29, 4  ;;  %v510_v38 = vmax.f32 %v470_v31, 0.0  ;;  %v523_v20 = vmax.f32 %v502_v13, 0.0 }
  0xcd   : > { %v789_v31 = vrot.slane %v787_v25, 7 }
  0xce   : > { %v682_v42 = vsel %vm3268_vm10, %v674_v35, %v681_v36  ;;  %v857_v43 = vsel %vm3186_vm5, %v683_v37, %v2724_v32  ;;  %v530_v44 = vpack.c.bf16 %v510_v38, %v510_v38  ;;  %v543_v27 = vpack.c.bf16 %v523_v20, %v523_v20 }
  0xcf   : > { %2723 = vst.msk [vmem:[%s3260_s23 + $0x28] sm:$0xf] %vm545_vm2, %v682_v42  ;;  %v792_v37 = vor.u32 %v790_v26, %v789_v31  ;;  %v793_v38 = vrot.slane %v789_v31, 4 }
  0xd0   : > { %2725 = vst [vmem:[%s3260_s23 + $0x2c] sm:$0x1] %v857_v43  ;;  %v685_v47 = vshrl.u32 %v530_v44, 16  ;;  %v688_v56 = vshll.u32 %v530_v44, 16  ;;  %v795_v32 = vshrl.u32 %v543_v27, 16  ;;  %v798_v35 = vshll.u32 %v543_v27, 16 }
  0xd1   : > { %v471_v51 = vpop.f32.mrf.mxu0  ;;  %v2759_v43 = vld [vmem:[%s3260_s23 + $0x80] sm:$0x1]  ;;  %v2731_v44 = vld [vmem:[%s3260_s23 + $0x3c] sm:$0xf]  ;;  %v902_v45 = vsel %vm3256_vm8, %v792_v37, %v2756_v34 }
  0xd2   : > { %v687_v55 = vrot.slane %v685_v47, 7  ;;  %v472_v57 = vadd.f32 %v3247_v59, %v471_v51  ;;  %v797_v39 = vrot.slane %v795_v32, 7  ;;  %2757 = vst [vmem:[%s3260_s23 + $0x78] sm:$0xf] %v902_v45 }
  0xd4   : > { %v690_v0 = vor.u32 %v688_v56, %v687_v55  ;;  %v511_v1 = vmax.f32 %v472_v57, 0.0  ;;  %v691_v21 = vrot.slane %v687_v55, 4  ;;  %v800_v46 = vor.u32 %v798_v35, %v797_v39  ;;  %v2741_v35 = vld [vmem:[%s3260_s23 + $0x54] sm:$0xf] }
  0xd5   : > { %v802_v47 = vrot.slane %v797_v39, 4 }
  0xd6   : > { %v860_v4 = vsel %vm3256_vm8, %v690_v0, %v2726_v60  ;;  %v531_v6 = vpack.c.bf16 %v511_v1, %v511_v1  ;;  %v801_v50 = vsel %vm3268_vm10, %v793_v38, %v800_v46  ;;  %v2734_v60 = vld [vmem:[%s3260_s23 + $0x44] sm:$0x1] }
  0xd7   : > { %2727 = vst [vmem:[%s3260_s23 + $0x30] sm:$0xf] %v860_v4  ;;  %v906_v51 = vsel %vm3186_vm5, %v802_v47, %v2759_v43  ;;  %v2744_v43 = vld [vmem:[%s3260_s23 + $0x5c] sm:$0x1] }
  0xd8   : > { %v693_v8 = vshrl.u32 %v531_v6, 16  ;;  %v696_v15 = vshll.u32 %v531_v6, 16  ;;  %2758 = vst.msk [vmem:[%s3260_s23 + $0x7c] sm:$0xf] %vm545_vm2, %v801_v50 }
  0xd9   : > { %v474_v11 = vpop.f32.mrf.mxu0  ;;  %2760 = vst [vmem:[%s3260_s23 + $0x80] sm:$0x1] %v906_v51 }
  0xda   : > { %v695_v14 = vrot.slane %v693_v8, 7  ;;  %v475_v16 = vadd.f32 %v3247_v59, %v474_v11  ;;  %v2736_v11 = vld [vmem:[%s3260_s23 + $0x48] sm:$0xf] }
  0xdc   : > { %v698_v22 = vor.u32 %v696_v15, %v695_v14  ;;  %v700_v23 = vrot.slane %v695_v14, 4  ;;  %v512_v24 = vmax.f32 %v475_v16, 0.0 }
  0xde   : > { %v699_v28 = vsel %vm3268_vm10, %v691_v21, %v698_v22  ;;  %v864_v29 = vsel %vm3186_vm5, %v700_v23, %v2729_v18  ;;  %v532_v30 = vpack.c.bf16 %v512_v24, %v512_v24  ;;  %v2739_v22 = vld [vmem:[%s3260_s23 + $0x50] sm:$0x1] }
  0xdf   : > { %2728 = vst.msk [vmem:[%s3260_s23 + $0x34] sm:$0xf] %vm545_vm2, %v699_v28 }
  0xe0   : > { %2730 = vst [vmem:[%s3260_s23 + $0x38] sm:$0x1] %v864_v29  ;;  %v702_v33 = vshrl.u32 %v532_v30, 16  ;;  %v705_v41 = vshll.u32 %v532_v30, 16 }
  0xe1   : > { %v476_v36 = vpop.f32.mrf.mxu0 }
  0xe2   : > { %v704_v40 = vrot.slane %v702_v33, 7  ;;  %v477_v42 = vadd.f32 %v3247_v59, %v476_v36 }
  0xe4   : > { %v707_v48 = vor.u32 %v705_v41, %v704_v40  ;;  %v513_v49 = vmax.f32 %v477_v42, 0.0  ;;  %v708_v61 = vrot.slane %v704_v40, 4 }
  0xe6   : > { %v867_v52 = vsel %vm3256_vm8, %v707_v48, %v2731_v44  ;;  %v533_v53 = vpack.c.bf16 %v513_v49, %v513_v49 }
  0xe7   : > { %2732 = vst [vmem:[%s3260_s23 + $0x3c] sm:$0xf] %v867_v52 }
  0xe8   : > { %v710_v54 = vshrl.u32 %v533_v53, 16  ;;  %v713_v57 = vshll.u32 %v533_v53, 16 }
  0xe9   : > { %v479_v55 = vpop.f32.mrf.mxu0 }
  0xea   : > { %v712_v56 = vrot.slane %v710_v54, 7  ;;  %v480_v58 = vadd.f32 %v3247_v59, %v479_v55 }
  0xec   : > { %v715_v62 = vor.u32 %v713_v57, %v712_v56  ;;  %v717_v63 = vrot.slane %v712_v56, 4  ;;  %v514_v0 = vmax.f32 %v480_v58, 0.0 }
  0xee   : > { %v716_v1 = vsel %vm3268_vm10, %v708_v61, %v715_v62  ;;  %v871_v2 = vsel %vm3186_vm5, %v717_v63, %v2734_v60  ;;  %v534_v3 = vpack.c.bf16 %v514_v0, %v514_v0 }
  0xef   : > { %2733 = vst.msk [vmem:[%s3260_s23 + $0x40] sm:$0xf] %vm545_vm2, %v716_v1 }
  0xf0   : > { %2735 = vst [vmem:[%s3260_s23 + $0x44] sm:$0x1] %v871_v2  ;;  %v719_v4 = vshrl.u32 %v534_v3, 16  ;;  %v722_v8 = vshll.u32 %v534_v3, 16 }
  0xf1   : > { %v481_v6 = vpop.f32.mrf.mxu0 }
  0xf2   : > { %v721_v7 = vrot.slane %v719_v4, 7  ;;  %v482_v10 = vadd.f32 %v3247_v59, %v481_v6 }
  0xf4   : > { %v724_v12 = vor.u32 %v722_v8, %v721_v7  ;;  %v515_v13 = vmax.f32 %v482_v10, 0.0  ;;  %v725_v23 = vrot.slane %v721_v7, 4 }
  0xf6   : > { %v874_v14 = vsel %vm3256_vm8, %v724_v12, %v2736_v11  ;;  %v535_v15 = vpack.c.bf16 %v515_v13, %v515_v13 }
  0xf7   : > { %2737 = vst [vmem:[%s3260_s23 + $0x48] sm:$0xf] %v874_v14 }
  0xf8   : > { %v727_v16 = vshrl.u32 %v535_v15, 16  ;;  %v730_v20 = vshll.u32 %v535_v15, 16 }
  0xf9   : > { %v484_v18 = vpop.f32.mrf.mxu0 }
  0xfa   : > { %v729_v19 = vrot.slane %v727_v16, 7  ;;  %v485_v21 = vadd.f32 %v3247_v59, %v484_v18 }
  0xfc   : > { %v732_v24 = vor.u32 %v730_v20, %v729_v19  ;;  %v734_v25 = vrot.slane %v729_v19, 4  ;;  %v516_v26 = vmax.f32 %v485_v21, 0.0 }
  0xfe   : > { %v733_v27 = vsel %vm3268_vm10, %v725_v23, %v732_v24  ;;  %v878_v28 = vsel %vm3186_vm5, %v734_v25, %v2739_v22  ;;  %v536_v29 = vpack.c.bf16 %v516_v26, %v516_v26 }
  0xff   : > { %2738 = vst.msk [vmem:[%s3260_s23 + $0x4c] sm:$0xf] %vm545_vm2, %v733_v27 }
 0x100   : > { %2740 = vst [vmem:[%s3260_s23 + $0x50] sm:$0x1] %v878_v28  ;;  %v736_v30 = vshrl.u32 %v536_v29, 16  ;;  %v739_v33 = vshll.u32 %v536_v29, 16 }
 0x101   : > { %v486_v31 = vpop.f32.mrf.mxu0 }
 0x102   : > { %v738_v32 = vrot.slane %v736_v30, 7  ;;  %v487_v34 = vadd.f32 %v3247_v59, %v486_v31 }
 0x104   : > { %v741_v36 = vor.u32 %v739_v33, %v738_v32  ;;  %v517_v37 = vmax.f32 %v487_v34, 0.0  ;;  %v742_v44 = vrot.slane %v738_v32, 4 }
 0x106   : > { %v881_v38 = vsel %vm3256_vm8, %v741_v36, %v2741_v35  ;;  %v537_v39 = vpack.c.bf16 %v517_v37, %v517_v37  ;;  %vm2306_vm8 = vcmask 457728  }
 0x107   : > { %2742 = vst [vmem:[%s3260_s23 + $0x54] sm:$0xf] %v881_v38 }
 0x108   : > { %v744_v40 = vshrl.u32 %v537_v39, 16  ;;  %v747_v42 = vshll.u32 %v537_v39, 16 }
 0x10a   : > { %v746_v41 = vrot.slane %v744_v40, 7 }
 0x10c   : > { %v749_v45 = vor.u32 %v747_v42, %v746_v41  ;;  %v751_v46 = vrot.slane %v746_v41, 4 }
 0x10e   : > { %v750_v59 = vsel %vm3268_vm10, %v742_v44, %v749_v45  ;;  %v885_v47 = vsel %vm3186_vm5, %v751_v46, %v2744_v43  ;;  %vm2272_vm5 = vcmask 326656   ;;  %vm2380_vm10 = vcmask 588800  }
 0x10f   : > { %2743 = vst.msk [vmem:[%s3260_s23 + $0x58] sm:$0xf] %vm545_vm2, %v750_v59  ;;  %vm2221_vm2 = vcmask 130048  }
 0x110   : > { %2745 = vst [vmem:[%s3260_s23 + $0x5c] sm:$0x1] %v885_v47 }
 0x117   : > { %v2934_v5 = vld [vmem:[#allocation2 + $0x24] sm:$0xff]  ;;  %v2928_v48 = vld [vmem:[#allocation2 + $0x30] sm:$0xff]  ;;  %v2926_v49 = vld [vmem:[#allocation2 + $0x18] sm:$0xff] }
 0x118   : > { %2100 = vrot.lane.b32.xlu2 %v2934_v5, %s3046_s24  ;;  %1976 = vrot.lane.b32.xlu0 %v2928_v48, %s3047_s8  ;;  %v3407_v50 = vld [vmem:[#allocation2 + $0x10] sm:$0xf]  ;;  %v3410_v9 = vld [vmem:[#allocation2 + $0x14] sm:$0x1]  ;;  %v1127_v17 = vld [vmem:[#allocation2 + $0xc] sm:$0xe] }
 0x119   : > { %1972 = vrot.lane.b32.xlu1 %v2926_v49, %s3047_s8  ;;  %v1164_v52 = vrot.slane %v3407_v50, 5  ;;  %v2761_v53 = vrot.slane %v1127_v17, 9  ;;  %v3417_v54 = vld [vmem:[#allocation2 + $0x1c] sm:$0xf]  ;;  %v3419_v55 = vld [vmem:[#allocation2 + $0x20] sm:$0x1] }
 0x11a   : > { %v1167_v57 = vrot.slane %v3410_v9, 5  ;;  %v1435_v58 = vld [vmem:[#allocation2 + $0x18] sm:$0xe]  ;;  %v1469_v60 = vrot.slane %v3417_v54, 5  ;;  %v1472_v61 = vrot.slane %v3419_v55, 5  ;;  %v2929_v62 = vld [vmem:[#allocation2 + $0x3c] sm:$0xff] }
 0x11b   : > { %v1166_v56 = vrot.slane %v1164_v52, 4  ;;  %v2936_v63 = vld [vmem:[#allocation2 + $0x3c] sm:$0xff]  ;;  %v1165_v0 = vsel %vm3412_vm13, %v2761_v53, %v1164_v52  ;;  %v2769_v1 = vrot.slane %v1435_v58, 9  ;;  %v1253_v4 = vshll.u32 %v3417_v54, 16  ;;  %v2927_v6 = vld [vmem:[#allocation2 + $0x24] sm:$0xff] }
 0x11c   : > { %v3426_v2 = vld [vmem:[#allocation2 + $0x1c] sm:$0xf]  ;;  %v3428_v3 = vld [vmem:[#allocation2 + $0x20] sm:$0x1]  ;;  %v1900_v8 = vunpack.c.l.b16 %v1165_v0  ;;  %v1471_v10 = vrot.slane %v1469_v60, 4  ;;  %v2937_v53 = vld [vmem:[#allocation2 + $0x48] sm:$0xff] }
 0x11d   : > { %v1168_v7 = vsel %vm3412_vm13, %v1166_v56, %v1167_v57  ;;  %v1128_v11 = vld [vmem:[#allocation2 + $0x18] sm:$0xe]  ;;  %v1171_v12 = vrot.slane %v3426_v2, 5  ;;  %v3434_v13 = vld [vmem:[#allocation2 + $0x28] sm:$0xf]  ;;  %v1470_v15 = vsel %vm3412_vm13, %v2769_v1, %v1469_v60  ;;  %v1174_v18 = vrot.slane %v3428_v3, 5 }
 0x11e   : > { %v1901_v14 = vunpack.c.l.b16 %v1168_v7  ;;  %v2762_v16 = vrot.slane %v1128_v11, 9  ;;  %v3439_v19 = vld [vmem:[#allocation2 + $0x2c] sm:$0x1]  ;;  %v1740_v20 = vld [vmem:[#allocation2 + $0x24] sm:$0xe]  ;;  %v1473_v21 = vsel %vm3412_vm13, %v1471_v10, %v1472_v61  ;;  %v2028_v22 = vunpack.c.l.b16 %v1470_v15  ;;  %v2935_v7 = vld [vmem:[#allocation2 + $0x30] sm:$0xff] }
 0x11f   : > { %v1173_v23 = vrot.slane %v1171_v12, 4  ;;  %v2777_v24 = vrot.slane %v1740_v20, 9  ;;  %v3443_v25 = vld [vmem:[#allocation2 + $0x28] sm:$0xf]  ;;  %v3445_v26 = vld [vmem:[#allocation2 + $0x2c] sm:$0x1]  ;;  %v2029_v28 = vunpack.c.l.b16 %v1473_v21 }
 0x120   : > { %1978 = vrot.lane.b32.xlu2 %v2929_v62, %s3047_s8  ;;  %2104 = vrot.lane.b32.xlu0 %v2936_v63, %s3046_s24  ;;  %v1916_v27 = vpack.c.b16 %v1901_v14, %v1900_v8  ;;  %v1172_v29 = vsel %vm3412_vm13, %v2762_v16, %v1171_v12  ;;  %v1774_v30 = vrot.slane %v3434_v13, 5  ;;  %v1129_v31 = vld [vmem:[#allocation2 + $0x24] sm:$0xe]  ;;  %v3452_v32 = vld [vmem:[#allocation2 + $0x28] sm:$0xf]  ;;  %v1777_v35 = vrot.slane %v3439_v19, 5 }
 0x121   : > { %1974 = vrot.lane.b32.xlu1 %v2927_v6, %s3047_s8  ;;  %v1175_v33 = vsel %vm3412_vm13, %v1173_v23, %v1174_v18  ;;  %v1902_v34 = vunpack.c.l.b16 %v1172_v29  ;;  %v2763_v36 = vrot.slane %v1129_v31, 9  ;;  %v3458_v37 = vld [vmem:[#allocation2 + $0x2c] sm:$0x1]  ;;  %v1436_v38 = vld [vmem:[#allocation2 + $0x24] sm:$0xe]  ;;  %v3460_v39 = vpack.c.b16 %v2029_v28, %v2028_v22 }
 0x122   : > { %v1903_v40 = vunpack.c.l.b16 %v1175_v33  ;;  %v1775_v41 = vsel %vm3412_vm13, %v2777_v24, %v1774_v30  ;;  %v1776_v42 = vrot.slane %v1774_v30, 4  ;;  %v3464_v43 = vld [vmem:[#allocation2 + $0x34] sm:$0xf]  ;;  %v1178_v45 = vrot.slane %v3443_v25, 5  ;;  %v1130_v47 = vld [vmem:[#allocation2 + $0x30] sm:$0xe] }
 0x123   : > { %v2156_v44 = vunpack.c.l.b16 %v1775_v41  ;;  %v1181_v46 = vrot.slane %v3445_v26, 5  ;;  %v2770_v59 = vrot.slane %v1436_v38, 9  ;;  %v1476_v49 = vrot.slane %v3452_v32, 5  ;;  %v3474_v52 = vld [vmem:[#allocation2 + $0x38] sm:$0x1] }
 0x124   : > { %v3468_v5 = vpack.c.b16 %v1903_v40, %v1902_v34  ;;  %v1778_v48 = vsel %vm3412_vm13, %v1776_v42, %v1777_v35  ;;  %v1479_v17 = vrot.slane %v3458_v37, 5  ;;  %v1179_v57 = vsel %vm3412_vm13, %v2763_v36, %v1178_v45  ;;  %v3481_v1 = vld [vmem:[#allocation2 + $0x34] sm:$0xf]  ;;  %v1437_v6 = vld [vmem:[#allocation2 + $0x30] sm:$0xe] }
 0x125   : > { %v2157_v56 = vunpack.c.l.b16 %v1778_v48  ;;  %v1180_v58 = vrot.slane %v1178_v45, 4  ;;  %v2764_v60 = vrot.slane %v1130_v47, 9  ;;  %v1904_v61 = vunpack.c.l.b16 %v1179_v57  ;;  %v3488_v14 = vld [vmem:[#allocation2 + $0x38] sm:$0x1]  ;;  %v1741_v15 = vld [vmem:[#allocation2 + $0x30] sm:$0xe] }
 0x126   : > { %v1477_v62 = vsel %vm3412_vm13, %v2770_v59, %v1476_v49  ;;  %v1478_v63 = vrot.slane %v1476_v49, 4  ;;  %v1185_v0 = vrot.slane %v3464_v43, 5  ;;  %v1188_v12 = vrot.slane %v3474_v52, 5  ;;  %v3496_v22 = vld [vmem:[#allocation2 + $0x34] sm:$0xf] }
 0x127   : > { %v3483_v8 = vpack.c.b16 %v2157_v56, %v2156_v44  ;;  %v1182_v10 = vsel %vm3412_vm13, %v1180_v58, %v1181_v46  ;;  %v2030_v11 = vunpack.c.l.b16 %v1477_v62  ;;  %v2771_v28 = vrot.slane %v1437_v6, 9  ;;  %v3500_v30 = vld [vmem:[#allocation2 + $0x38] sm:$0x1]  ;;  %v3507_v36 = vld [vmem:[#allocation2 + $0x40] sm:$0xf] }
 0x128   : > { %2106 = vrot.lane.b32.xlu2 %v2937_v53, %s3046_s24  ;;  %1924 = vrot.lane.b32.xlu0 %v1916_v27, %s3048_s9  ;;  %v1905_v16 = vunpack.c.l.b16 %v1182_v10  ;;  %v1480_v18 = vsel %vm3412_vm13, %v1478_v63, %v1479_v17  ;;  %v1186_v20 = vsel %vm3412_vm13, %v2764_v60, %v1185_v0  ;;  %v1187_v21 = vrot.slane %v1185_v0, 4  ;;  %v1438_v27 = vld [vmem:[#allocation2 + $0x3c] sm:$0xe]  ;;  %v3509_v38 = vld [vmem:[#allocation2 + $0x44] sm:$0x1]  ;;  %v2930_v60 = vld [vmem:[#allocation2 + $0x48] sm:$0xff] }
 0x129   : > { %2102 = vrot.lane.b32.xlu1 %v2935_v7, %s3046_s24  ;;  %v2031_v23 = vunpack.c.l.b16 %v1480_v18  ;;  %v1906_v24 = vunpack.c.l.b16 %v1186_v20  ;;  %v1483_v29 = vrot.slane %v3481_v1, 5  ;;  %v1486_v34 = vrot.slane %v3488_v14, 5  ;;  %v1742_v45 = vld [vmem:[#allocation2 + $0x3c] sm:$0xe]  ;;  %v3517_v49 = vld [vmem:[#allocation2 + $0x40] sm:$0xf] }
 0x12a   : > { %v3502_v31 = vpack.c.b16 %v1905_v16, %v1904_v61  ;;  %v1189_v33 = vsel %vm3412_vm13, %v1187_v21, %v1188_v12  ;;  %v2778_v35 = vrot.slane %v1741_v15, 9  ;;  %v1781_v59 = vrot.slane %v3496_v22, 5  ;;  %v3525_v58 = vld [vmem:[#allocation2 + $0x44] sm:$0x1]  ;;  %v3532_v12 = vld [vmem:[#allocation2 + $0x40] sm:$0xf] }
 0x12b   : > { %v3511_v40 = vpack.c.b16 %v2031_v23, %v2030_v11  ;;  %v1907_v41 = vunpack.c.l.b16 %v1189_v33  ;;  %v1484_v42 = vsel %vm3412_vm13, %v2771_v28, %v1483_v29  ;;  %v1485_v44 = vrot.slane %v1483_v29, 4  ;;  %v1131_v15 = vld [vmem:[#allocation2 + $0x3c] sm:$0xe]  ;;  %v3543_v23 = vld [vmem:[#allocation2 + $0x44] sm:$0x1] }
 0x12c   : > { %v2032_v46 = vunpack.c.l.b16 %v1484_v42  ;;  %v1784_v47 = vrot.slane %v3500_v30, 5  ;;  %v2772_v48 = vrot.slane %v1438_v27, 9  ;;  %v1490_v56 = vrot.slane %v3507_v36, 5  ;;  %v3550_v27 = vld [vmem:[#allocation2 + $0x4c] sm:$0xf] }
 0x12d   : > { %v3519_v17 = vpack.c.b16 %v1907_v41, %v1906_v24  ;;  %v1487_v53 = vsel %vm3412_vm13, %v1485_v44, %v1486_v34  ;;  %v1493_v57 = vrot.slane %v3509_v38, 5  ;;  %v1782_v62 = vsel %vm3412_vm13, %v2778_v35, %v1781_v59  ;;  %v1743_v24 = vld [vmem:[#allocation2 + $0x48] sm:$0xe]  ;;  %v3553_v42 = vld [vmem:[#allocation2 + $0x50] sm:$0x1] }
 0x12e   : > { %v2033_v61 = vunpack.c.l.b16 %v1487_v53  ;;  %v1783_v63 = vrot.slane %v1781_v59, 4  ;;  %v2779_v0 = vrot.slane %v1742_v45, 9  ;;  %v2158_v6 = vunpack.c.l.b16 %v1782_v62  ;;  %v1133_v44 = vld [vmem:[#allocation2 + $0x54] sm:$0xe]  ;;  %v3562_v53 = vld [vmem:[#allocation2 + $0x5c] sm:$0x1] }
 0x12f   : > { %v1491_v7 = vsel %vm3412_vm13, %v2772_v48, %v1490_v56  ;;  %v1492_v10 = vrot.slane %v1490_v56, 4  ;;  %v1788_v11 = vrot.slane %v3517_v49, 5  ;;  %v1791_v21 = vrot.slane %v3525_v58, 5  ;;  %v3560_v48 = vld [vmem:[#allocation2 + $0x58] sm:$0xf] }
 0x130   : > { %2052 = vrot.lane.b32.xlu2 %v3460_v39, %s3049_s11  ;;  %1926 = vrot.lane.b32.xlu0 %v3468_v5, %s3048_s9  ;;  %v3538_v16 = vpack.c.b16 %v2033_v61, %v2032_v46  ;;  %v1785_v18 = vsel %vm3412_vm13, %v1783_v63, %v1784_v47  ;;  %v2034_v20 = vunpack.c.l.b16 %v1491_v7  ;;  %v2765_v35 = vrot.slane %v1131_v15, 9  ;;  %v1439_v62 = vld [vmem:[#allocation2 + $0x48] sm:$0xe] }
 0x131   : > { %1980 = vrot.lane.b32.xlu1 %v2930_v60, %s3047_s8  ;;  %v2159_v28 = vunpack.c.l.b16 %v1785_v18  ;;  %v1494_v39 = vsel %vm3412_vm13, %v1492_v10, %v1493_v57  ;;  %v1789_v5 = vsel %vm3412_vm13, %v2779_v0, %v1788_v11  ;;  %v1790_v29 = vrot.slane %v1788_v11, 4  ;;  %v3570_v10 = vld [vmem:[#allocation2 + $0x4c] sm:$0xf] }
 0x132   : > { %v2035_v33 = vunpack.c.l.b16 %v1494_v39  ;;  %v2160_v34 = vunpack.c.l.b16 %v1789_v5  ;;  %v1192_v41 = vrot.slane %v3532_v12, 5  ;;  %v1195_v59 = vrot.slane %v3543_v23, 5 }
 0x133   : > { %v3555_v45 = vpack.c.b16 %v2159_v28, %v2158_v6  ;;  %v1792_v46 = vsel %vm3412_vm13, %v1790_v29, %v1791_v21  ;;  %v2780_v47 = vrot.slane %v1743_v24, 9  ;;  %v1795_v0 = vrot.slane %v3550_v27, 5  ;;  %v3578_v21 = vld [vmem:[#allocation2 + $0x50] sm:$0x1] }
 0x134   : > { %v3564_v56 = vpack.c.b16 %v2035_v33, %v2034_v20  ;;  %v2161_v57 = vunpack.c.l.b16 %v1792_v46  ;;  %v1193_v60 = vsel %vm3412_vm13, %v2765_v35, %v1192_v41  ;;  %v1194_v61 = vrot.slane %v1192_v41, 4 }
 0x135   : > { %v1908_v63 = vunpack.c.l.b16 %v1193_v60  ;;  %v1798_v6 = vrot.slane %v3553_v42, 5  ;;  %v2767_v7 = vrot.slane %v1133_v44, 9  ;;  %v1206_v18 = vrot.slane %v3560_v48, 5 }
 0x136   : > { %v3572_v11 = vpack.c.b16 %v2161_v57, %v2160_v34  ;;  %v1196_v15 = vsel %vm3412_vm13, %v1194_v61, %v1195_v59  ;;  %v1209_v20 = vrot.slane %v3562_v53, 5  ;;  %v1796_v28 = vsel %vm3412_vm13, %v2780_v47, %v1795_v0 }
 0x137   : > { %v1909_v24 = vunpack.c.l.b16 %v1196_v15  ;;  %v1797_v39 = vrot.slane %v1795_v0, 4  ;;  %v2773_v5 = vrot.slane %v1439_v62, 9  ;;  %v2162_v29 = vunpack.c.l.b16 %v1796_v28 }
 0x138   : > { %1928 = vrot.lane.b32.xlu2 %v3502_v31, %s3048_s9  ;;  %2054 = vrot.lane.b32.xlu0 %v3511_v40, %s3049_s11  ;;  %v1207_v33 = vsel %vm3412_vm13, %v2767_v7, %v1206_v18  ;;  %v1208_v34 = vrot.slane %v1206_v18, 4  ;;  %v1497_v35 = vrot.slane %v3570_v10, 5  ;;  %v1500_v46 = vrot.slane %v3578_v21, 5  ;;  %v1219_v40 = vld [vmem:[#allocation2 + $0x18] sm:$0xf] }
 0x139   : > { %2180 = vrot.lane.b32.xlu1 %v3483_v8, %s3050_s12  ;;  %v3591_v41 = vpack.c.b16 %v1909_v24, %v1908_v63  ;;  %v1799_v44 = vsel %vm3412_vm13, %v1797_v39, %v1798_v6  ;;  %v1912_v31 = vunpack.c.l.b16 %v1207_v33  ;;  %v910_v8 = vld [vmem:[#allocation2 + $0x18] sm:$0xf]  ;;  %v1244_v6 = vshrl.u32 %v1219_v40, 16 }
 0x13a   : > { %v2163_v59 = vunpack.c.l.b16 %v1799_v44  ;;  %v1210_v47 = vsel %vm3412_vm13, %v1208_v34, %v1209_v20  ;;  %v1498_v57 = vsel %vm3412_vm13, %v2773_v5, %v1497_v35  ;;  %v1499_v60 = vrot.slane %v1497_v35, 4 }
 0x13b   : > { %v1913_v61 = vunpack.c.l.b16 %v1210_v47  ;;  %v2036_v62 = vunpack.c.l.b16 %v1498_v57  ;;  %v1247_v7 = vshll.u32 %v1219_v40, 16  ;;  %v1255_v20 = vrot.slane %v1253_v4, 5 }
 0x13c   : > { %v3600_v63 = vpack.c.b16 %v2163_v59, %v2162_v29  ;;  %v1501_v0 = vsel %vm3412_vm13, %v1499_v60, %v1500_v46  ;;  %v1257_v24 = vshrl.u32 %v3417_v54, 16  ;;  %v1246_v28 = vrot.slane %v1244_v6, 4  ;;  %v908_v46 = vld [vmem:[#allocation2 + $0xc] sm:$0xf] }
 0x13d   : > { %v3604_v15 = vpack.c.b16 %v1913_v61, %v1912_v31  ;;  %v2037_v18 = vunpack.c.l.b16 %v1501_v0  ;;  %v1249_v39 = vrot.slane %v1247_v7, 5  ;;  %v1263_v5 = vshll.u32 %v3419_v55, 16 }
 0x13e   : > { %v960_v33 = vshrl.u32 %v910_v8, 16  ;;  %v1259_v34 = vrot.slane %v1257_v24, 4  ;;  %v963_v35 = vshll.u32 %v910_v8, 16  ;;  %v969_v44 = vshll.u32 %v3426_v2, 16 }
 0x13f   : > { %v3610_v29 = vpack.c.b16 %v2037_v18, %v2036_v62  ;;  %v1250_v4 = vor.u32 %v1249_v39, %v1246_v28  ;;  %v1265_v54 = vrot.slane %v1263_v5, 5  ;;  %v973_v40 = vshrl.u32 %v3426_v2, 16  ;;  %v1221_v28 = vld [vmem:[#allocation2 + $0x24] sm:$0xf] }
 0x140   : > { %2056 = vrot.lane.b32.xlu2 %v3538_v16, %s3049_s11  ;;  %2182 = vrot.lane.b32.xlu0 %v3555_v45, %s3050_s12  ;;  %v962_v31 = vrot.slane %v960_v33, 4  ;;  %v1260_v59 = vor.u32 %v1259_v34, %v1255_v20  ;;  %v965_v47 = vrot.slane %v963_v35, 5  ;;  %v971_v16 = vrot.slane %v969_v44, 5 }
 0x141   : > { %1930 = vrot.lane.b32.xlu1 %v3519_v17, %s3048_s9  ;;  %v979_v57 = vshll.u32 %v3428_v3, 16  ;;  %v1251_v45 = vrot.slane %v1250_v4, 4  ;;  %v975_v60 = vrot.slane %v973_v40, 4  ;;  %v936_v61 = vshrl.u32 %v908_v46, 16 }
 0x142   : > { %v939_v62 = vshll.u32 %v908_v46, 16  ;;  %v1261_v8 = vrot.slane %v1260_v59, 4  ;;  %v966_v2 = vor.u32 %v965_v47, %v962_v31  ;;  %v945_v17 = vshll.u32 %v3407_v50, 16 }
 0x143   : > { %v981_v0 = vrot.slane %v979_v57, 5  ;;  %v1256_v6 = vsel %vm3622_vm0, %v1251_v45, %v1255_v20  ;;  %v976_v7 = vor.u32 %v975_v60, %v971_v16  ;;  %v938_v18 = vrot.slane %v936_v61, 4  ;;  %v1524_v45 = vld [vmem:[#allocation2 + $0x24] sm:$0xf] }
 0x144   : > { %v941_v24 = vrot.slane %v939_v62, 5  ;;  %v1266_v39 = vsel %vm3622_vm0, %v1261_v8, %v1265_v54  ;;  %v3632_v3 = vunpack.c.l.b16 %v1256_v6  ;;  %v967_v5 = vrot.slane %v966_v2, 4 }
 0x145   : > { %v947_v33 = vrot.slane %v945_v17, 5  ;;  %v3634_v34 = vunpack.c.l.b16 %v1266_v39  ;;  %v977_v35 = vrot.slane %v976_v7, 4  ;;  %v949_v46 = vshrl.u32 %v3407_v50, 16 }
 0x146   : > { %v942_v44 = vor.u32 %v941_v24, %v938_v18  ;;  %v972_v20 = vsel %vm3622_vm0, %v967_v5, %v971_v16  ;;  %v955_v4 = vshll.u32 %v3410_v9, 16  ;;  %v1268_v31 = vshrl.u32 %v1221_v28, 16 }
 0x147   : > { %v1271_v40 = vshll.u32 %v1221_v28, 16  ;;  %v2004_v54 = vpack.c.b16 %v3634_v34, %v3632_v3  ;;  %v982_v59 = vsel %vm3622_vm0, %v977_v35, %v981_v0  ;;  %v3648_v50 = vunpack.c.l.b16 %v972_v20  ;;  %v912_v20 = vld [vmem:[#allocation2 + $0x24] sm:$0xf] }
 0x148   : > { %2184 = vrot.lane.b32.xlu2 %v3572_v11, %s3050_s12  ;;  %1932 = vrot.lane.b32.xlu0 %v3591_v41, %s3048_s9  ;;  %v943_v47 = vrot.slane %v942_v44, 4  ;;  %v3652_v9 = vunpack.c.l.b16 %v982_v59  ;;  %v951_v16 = vrot.slane %v949_v46, 4  ;;  %v957_v57 = vrot.slane %v955_v4, 5 }
 0x149   : > { %2058 = vrot.lane.b32.xlu1 %v3564_v56, %s3049_s11  ;;  %v1270_v11 = vrot.slane %v1268_v31, 4  ;;  %v1273_v60 = vrot.slane %v1271_v40, 5  ;;  %v1277_v61 = vshll.u32 %v3452_v32, 16  ;;  %v1281_v62 = vshrl.u32 %v3452_v32, 16 }
 0x14a   : > { %v948_v41 = vsel %vm3622_vm0, %v943_v47, %v947_v33  ;;  %v1877_v8 = vpack.c.b16 %v3652_v9, %v3648_v50  ;;  %v952_v2 = vor.u32 %v951_v16, %v947_v33  ;;  %v1287_v56 = vshll.u32 %v3458_v37, 16 }
 0x14b   : > { %v1860_v0 = vunpack.c.l.b16 %v948_v41  ;;  %v1274_v17 = vor.u32 %v1273_v60, %v1270_v11  ;;  %v1279_v6 = vrot.slane %v1277_v61, 5  ;;  %v1283_v7 = vrot.slane %v1281_v62, 4 }
 0x14c   : > { %v1549_v18 = vshrl.u32 %v1524_v45, 16  ;;  %v953_v24 = vrot.slane %v952_v2, 4  ;;  %v1289_v28 = vrot.slane %v1287_v56, 5  ;;  %v1552_v39 = vshll.u32 %v1524_v45, 16  ;;  %v1526_v45 = vld [vmem:[#allocation2 + $0x30] sm:$0xf] }
 0x14d   : > { %v1558_v5 = vshll.u32 %v3434_v13, 16  ;;  %v1275_v35 = vrot.slane %v1274_v17, 4  ;;  %v1284_v44 = vor.u32 %v1283_v7, %v1279_v6  ;;  %v1562_v32 = vshrl.u32 %v3434_v13, 16 }
 0x14e   : > { %v1551_v46 = vrot.slane %v1549_v18, 4  ;;  %v958_v33 = vsel %vm3622_vm0, %v953_v24, %v957_v57  ;;  %v1554_v4 = vrot.slane %v1552_v39, 5  ;;  %v1568_v31 = vshll.u32 %v3439_v19, 16 }
 0x14f   : > { %v1560_v37 = vrot.slane %v1558_v5, 5  ;;  %v1861_v40 = vunpack.c.l.b16 %v958_v33  ;;  %v1280_v59 = vsel %vm3622_vm0, %v1275_v35, %v1279_v6  ;;  %v1285_v50 = vrot.slane %v1284_v44, 4  ;;  %v1744_v35 = vld [vmem:[#allocation2 + $0x54] sm:$0xe] }
 0x150   : > { %1936 = vrot.lane.b32.xlu2 %v3604_v15, %s3048_s9  ;;  %2060 = vrot.lane.b32.xlu0 %v3610_v29, %s3049_s11  ;;  %v1564_v13 = vrot.slane %v1562_v32, 4  ;;  %v3674_v47 = vunpack.c.l.b16 %v1280_v59  ;;  %v1555_v9 = vor.u32 %v1554_v4, %v1551_v46  ;;  %v1570_v16 = vrot.slane %v1568_v31, 5  ;;  %v3695_v31 = vld [vmem:[#allocation2 + $0x5c] sm:$0x1] }
 0x151   : > { %2186 = vrot.lane.b32.xlu1 %v3600_v63, %s3050_s12  ;;  %v984_v19 = vshrl.u32 %v912_v20, 16  ;;  %v1876_v57 = vpack.c.b16 %v1861_v40, %v1860_v0  ;;  %v1290_v15 = vsel %vm3622_vm0, %v1285_v50, %v1289_v28  ;;  %v987_v29 = vshll.u32 %v912_v20, 16 }
 0x152   : > { %v1565_v11 = vor.u32 %v1564_v13, %v1560_v37  ;;  %v3678_v41 = vunpack.c.l.b16 %v1290_v15  ;;  %v1556_v60 = vrot.slane %v1555_v9, 4  ;;  %v993_v62 = vshll.u32 %v3443_v25, 16  ;;  %v1223_v13 = vld [vmem:[#allocation2 + $0x30] sm:$0xf] }
 0x153   : > { %v986_v61 = vrot.slane %v984_v19, 4  ;;  %v989_v63 = vrot.slane %v987_v29, 5  ;;  %v997_v56 = vshrl.u32 %v3443_v25, 16  ;;  %v1003_v17 = vshll.u32 %v3445_v26, 16  ;;  %v3689_v26 = vld [vmem:[#allocation2 + $0x58] sm:$0xf] }
 0x154   : > { %v1566_v2 = vrot.slane %v1565_v11, 4  ;;  %v2005_v0 = vpack.c.b16 %v3678_v41, %v3674_v47  ;;  %v1561_v6 = vsel %vm3622_vm0, %v1556_v60, %v1560_v37  ;;  %v995_v7 = vrot.slane %v993_v62, 5 }
 0x155   : > { %v1573_v18 = vshrl.u32 %v1526_v45, 16  ;;  %v2116_v28 = vunpack.c.l.b16 %v1561_v6  ;;  %v990_v39 = vor.u32 %v989_v63, %v986_v61  ;;  %v999_v5 = vrot.slane %v997_v56, 4  ;;  %v2938_v56 = vld [vmem:[#allocation2 + $0x54] sm:$0xff] }
 0x156   : > { %v1571_v24 = vsel %vm3622_vm0, %v1566_v2, %v1570_v16  ;;  %v1005_v46 = vrot.slane %v1003_v17, 5  ;;  %v1576_v32 = vshll.u32 %v1526_v45, 16  ;;  %v1582_v4 = vshll.u32 %v3496_v22, 16 }
 0x157   : > { %v2117_v44 = vunpack.c.l.b16 %v1571_v24  ;;  %v1575_v25 = vrot.slane %v1573_v18, 4  ;;  %v991_v20 = vrot.slane %v990_v39, 4  ;;  %v1000_v33 = vor.u32 %v999_v5, %v995_v7  ;;  %v3721_v24 = vld [vmem:[#allocation2 + $0x64] sm:$0xf] }
 0x158   : > { %1886 = vrot.lane.b32.xlu2 %v1877_v8, %s3051_s13  ;;  %1884 = vrot.lane.b32.xlu0 %v1876_v57, %s3051_s13  ;;  %v1586_v37 = vshrl.u32 %v3496_v22, 16  ;;  %v1578_v59 = vrot.slane %v1576_v32, 5  ;;  %v1592_v8 = vshll.u32 %v3500_v30, 16  ;;  %v2781_v50 = vrot.slane %v1744_v35, 9 }
 0x159   : > { %2012 = vrot.lane.b32.xlu1 %v2004_v54, %s3052_s14  ;;  %v2132_v40 = vpack.c.b16 %v2117_v44, %v2116_v28  ;;  %v996_v47 = vsel %vm3622_vm0, %v991_v20, %v995_v7  ;;  %v1001_v9 = vrot.slane %v1000_v33, 4  ;;  %v1584_v16 = vrot.slane %v1582_v4, 5  ;;  %v1441_v28 = vld [vmem:[#allocation2 + $0x60] sm:$0xe] }
 0x15a   : > { %v1588_v22 = vrot.slane %v1586_v37, 4  ;;  %v3704_v19 = vunpack.c.l.b16 %v996_v47  ;;  %v1579_v57 = vor.u32 %v1578_v59, %v1575_v25  ;;  %v1594_v15 = vrot.slane %v1592_v8, 5 }
 0x15b   : > { %v1802_v11 = vrot.slane %v3689_v26, 5  ;;  %v1006_v3 = vsel %vm3622_vm0, %v1001_v9, %v1005_v46  ;;  %v1805_v30 = vrot.slane %v3695_v31, 5  ;;  %v1292_v54 = vshrl.u32 %v1223_v13, 16  ;;  %v3727_v46 = vld [vmem:[#allocation2 + $0x68] sm:$0x1] }
 0x15c   : > { %v1589_v34 = vor.u32 %v1588_v22, %v1584_v16  ;;  %v3710_v29 = vunpack.c.l.b16 %v1006_v3  ;;  %v1580_v45 = vrot.slane %v1579_v57, 4  ;;  %v1295_v63 = vshll.u32 %v1223_v13, 16 }
 0x15d   : > { %v1803_v41 = vsel %vm3412_vm13, %v2781_v50, %v1802_v11  ;;  %v1804_v60 = vrot.slane %v1802_v11, 4  ;;  %v1294_v2 = vrot.slane %v1292_v54, 4  ;;  %v1301_v18 = vshll.u32 %v3481_v1, 16  ;;  %v1746_v11 = vld [vmem:[#allocation2 + $0x6c] sm:$0xe] }
 0x15e   : > { %v1590_v61 = vrot.slane %v1589_v34, 4  ;;  %v2164_v62 = vunpack.c.l.b16 %v1803_v41  ;;  %v1878_v17 = vpack.c.b16 %v3710_v29, %v3704_v19  ;;  %v1585_v6 = vsel %vm3622_vm0, %v1580_v45, %v1584_v16  ;;  %v3742_v29 = vld [vmem:[#allocation2 + $0x70] sm:$0xf] }
 0x15f   : > { %v1806_v7 = vsel %vm3412_vm13, %v1804_v60, %v1805_v30  ;;  %v2118_v5 = vunpack.c.l.b16 %v1585_v6  ;;  %v1297_v44 = vrot.slane %v1295_v63, 5  ;;  %v1303_v32 = vrot.slane %v1301_v18, 5 }
 0x160   : > { %2014 = vrot.lane.b32.xlu2 %v2005_v0, %s3052_s14  ;;  %2140 = vrot.lane.b32.xlu0 %v2132_v40, %s3053_s15  ;;  %v1595_v39 = vsel %vm3622_vm0, %v1590_v61, %v1594_v15  ;;  %v2165_v35 = vunpack.c.l.b16 %v1806_v7  ;;  %v1305_v20 = vshrl.u32 %v3481_v1, 16  ;;  %v1311_v33 = vshll.u32 %v3488_v14, 16  ;;  %v1528_v0 = vld [vmem:[#allocation2 + $0x3c] sm:$0xf]  ;;  %v914_v7 = vld [vmem:[#allocation2 + $0x30] sm:$0xf] }
 0x161   : > { %2108 = vrot.lane.b32.xlu1 %v2938_v56, %s3046_s24  ;;  %v2119_v25 = vunpack.c.l.b16 %v1595_v39  ;;  %v1298_v37 = vor.u32 %v1297_v44, %v1294_v2  ;;  %v2775_v40 = vrot.slane %v1441_v28, 9  ;;  %v1511_v59 = vrot.slane %v3721_v24, 5 }
 0x162   : > { %v2176_v4 = vpack.c.b16 %v2165_v35, %v2164_v62  ;;  %v1307_v50 = vrot.slane %v1305_v20, 4  ;;  %v1313_v13 = vrot.slane %v1311_v33, 5  ;;  %v1514_v47 = vrot.slane %v3727_v46, 5  ;;  %v3744_v62 = vld [vmem:[#allocation2 + $0x74] sm:$0x1] }
 0x163   : > { %v2133_v8 = vpack.c.b16 %v2119_v25, %v2118_v5  ;;  %v1299_v9 = vrot.slane %v1298_v37, 4  ;;  %v1512_v16 = vsel %vm3412_vm13, %v2775_v40, %v1511_v59  ;;  %v1513_v22 = vrot.slane %v1511_v59, 4 }
 0x164   : > { %v1597_v19 = vshrl.u32 %v1528_v0, 16  ;;  %v1308_v1 = vor.u32 %v1307_v50, %v1303_v32  ;;  %v2040_v57 = vunpack.c.l.b16 %v1512_v16  ;;  %v1600_v14 = vshll.u32 %v1528_v0, 16 }
 0x165   : > { %v1606_v15 = vshll.u32 %v3517_v49, 16  ;;  %v1304_v3 = vsel %vm3622_vm0, %v1299_v9, %v1303_v32  ;;  %v1515_v34 = vsel %vm3412_vm13, %v1513_v22, %v1514_v47  ;;  %v1610_v54 = vshrl.u32 %v3517_v49, 16  ;;  %v1440_v47 = vld [vmem:[#allocation2 + $0x54] sm:$0xe]  ;;  %v2932_v9 = vld [vmem:[#allocation2 + $0x60] sm:$0xff] }
 0x166   : > { %v1599_v30 = vrot.slane %v1597_v19, 4  ;;  %v1309_v45 = vrot.slane %v1308_v1, 4  ;;  %v1992_v41 = vunpack.c.l.b16 %v1304_v3  ;;  %v2041_v60 = vunpack.c.l.b16 %v1515_v34  ;;  %v916_v34 = vld [vmem:[#allocation2 + $0x3c] sm:$0xf] }
 0x167   : > { %v1602_v61 = vrot.slane %v1600_v14, 5  ;;  %v1608_v2 = vrot.slane %v1606_v15, 5  ;;  %v1612_v63 = vrot.slane %v1610_v54, 4  ;;  %v1616_v56 = vshll.u32 %v3525_v58, 16 }
 0x168   : > { %2142 = vrot.lane.b32.xlu2 %v2133_v8, %s3053_s15  ;;  %2188 = vrot.lane.b32.xlu0 %v2176_v4, %s3050_s12  ;;  %v2783_v6 = vrot.slane %v1746_v11, 9  ;;  %v1314_v49 = vsel %vm3622_vm0, %v1309_v45, %v1313_v13  ;;  %v2050_v18 = vpack.c.b16 %v2041_v60, %v2040_v57  ;;  %v1816_v39 = vrot.slane %v3742_v29, 5  ;;  %v3761_v13 = vld [vmem:[#allocation2 + $0x58] sm:$0xf]  ;;  %v3765_v57 = vld [vmem:[#allocation2 + $0x5c] sm:$0x1] }
 0x169   : > { %1888 = vrot.lane.b32.xlu1 %v1878_v17, %s3051_s13  ;;  %v1603_v28 = vor.u32 %v1602_v61, %v1599_v30  ;;  %v1993_v5 = vunpack.c.l.b16 %v1314_v49  ;;  %v1613_v35 = vor.u32 %v1612_v63, %v1608_v2  ;;  %v1618_v44 = vrot.slane %v1616_v56, 5 }
 0x16a   : > { %v1819_v25 = vrot.slane %v3744_v62, 5  ;;  %v1817_v58 = vsel %vm3412_vm13, %v2783_v6, %v1816_v39  ;;  %v1818_v20 = vrot.slane %v1816_v39, 4  ;;  %v1008_v33 = vshrl.u32 %v914_v7, 16 }
 0x16b   : > { %v1604_v32 = vrot.slane %v1603_v28, 4  ;;  %v2006_v0 = vpack.c.b16 %v1993_v5, %v1992_v41  ;;  %v1614_v17 = vrot.slane %v1613_v35, 4  ;;  %v2168_v4 = vunpack.c.l.b16 %v1817_v58  ;;  %v1225_v5 = vld [vmem:[#allocation2 + $0x3c] sm:$0xf] }
 0x16c   : > { %v1011_v37 = vshll.u32 %v914_v7, 16  ;;  %v1820_v59 = vsel %vm3412_vm13, %v1818_v20, %v1819_v25  ;;  %v1010_v8 = vrot.slane %v1008_v33, 4  ;;  %v1017_v50 = vshll.u32 %v3464_v43, 16 }
 0x16d   : > { %v1609_v40 = vsel %vm3622_vm0, %v1604_v32, %v1608_v2  ;;  %v1619_v16 = vsel %vm3622_vm0, %v1614_v17, %v1618_v44  ;;  %v2169_v19 = vunpack.c.l.b16 %v1820_v59  ;;  %v1021_v11 = vshrl.u32 %v3464_v43, 16  ;;  %v2931_v17 = vld [vmem:[#allocation2 + $0x54] sm:$0xff] }
 0x16e   : > { %v2120_v22 = vunpack.c.l.b16 %v1609_v40  ;;  %v1013_v1 = vrot.slane %v1011_v37, 5  ;;  %v2121_v14 = vunpack.c.l.b16 %v1619_v16  ;;  %v1019_v15 = vrot.slane %v1017_v50, 5 }
 0x16f   : > { %v1027_v3 = vshll.u32 %v3474_v52, 16  ;;  %v3771_v30 = vpack.c.b16 %v2169_v19, %v2168_v4  ;;  %v2774_v45 = vrot.slane %v1440_v47, 9  ;;  %v1504_v41 = vrot.slane %v3761_v13, 5  ;;  %v2940_v4 = vld [vmem:[#allocation2 + $0x6c] sm:$0xff] }
 0x170   : > { %2064 = vrot.lane.b32.xlu2 %v2050_v18, %s3049_s11  ;;  %1984 = vrot.lane.b32.xlu0 %v2932_v9, %s3047_s8  ;;  %v1014_v54 = vor.u32 %v1013_v1, %v1010_v8  ;;  %v2134_v60 = vpack.c.b16 %v2121_v14, %v2120_v22  ;;  %v1023_v61 = vrot.slane %v1021_v11, 4  ;;  %v1507_v43 = vrot.slane %v3765_v57, 5  ;;  %v1745_v22 = vld [vmem:[#allocation2 + $0x60] sm:$0xe] }
 0x171   : > { %2016 = vrot.lane.b32.xlu1 %v2006_v0, %s3052_s14  ;;  %v1029_v2 = vrot.slane %v1027_v3, 5  ;;  %v1505_v56 = vsel %vm3412_vm13, %v2774_v45, %v1504_v41  ;;  %v1506_v6 = vrot.slane %v1504_v41, 4  ;;  %v1032_v7 = vshrl.u32 %v916_v34, 16 }
 0x172   : > { %v3776_v63 = vpop.permute.xlu2 %2100  ;;  %v1015_v52 = vrot.slane %v1014_v54, 4  ;;  %v1024_v49 = vor.u32 %v1023_v61, %v1019_v15  ;;  %v2038_v18 = vunpack.c.l.b16 %v1505_v56  ;;  %v1035_v28 = vshll.u32 %v916_v34, 16  ;;  %v3796_v34 = vld [vmem:[#allocation2 + $0x64] sm:$0xf] }
 0x173   : > { %v1041_v39 = vshll.u32 %v3532_v12, 16  ;;  %v1508_v44 = vsel %vm3412_vm13, %v1506_v6, %v1507_v43  ;;  %v1034_v25 = vrot.slane %v1032_v7, 4  ;;  %v1045_v32 = vshrl.u32 %v3532_v12, 16  ;;  %v1227_v7 = vld [vmem:[#allocation2 + $0x48] sm:$0xf] }
 0x174   : > { %v1020_v35 = vsel %vm3622_vm0, %v1015_v52, %v1019_v15  ;;  %v1025_v58 = vrot.slane %v1024_v49, 4  ;;  %v2039_v33 = vunpack.c.l.b16 %v1508_v44  ;;  %v1037_v0 = vrot.slane %v1035_v28, 5  ;;  %v2939_v44 = vld [vmem:[#allocation2 + $0x60] sm:$0xff] }
 0x175   : > { %v1866_v20 = vunpack.c.l.b16 %v1020_v35  ;;  %v1043_v37 = vrot.slane %v1041_v39, 5  ;;  %v1047_v40 = vrot.slane %v1045_v32, 4  ;;  %v1051_v59 = vshll.u32 %v3543_v23, 16 }
 0x176   : > { %v1316_v8 = vshrl.u32 %v1225_v5, 16  ;;  %v1030_v50 = vsel %vm3622_vm0, %v1025_v58, %v1029_v2  ;;  %v3789_v47 = vpack.c.b16 %v2039_v33, %v2038_v18  ;;  %v1038_v9 = vor.u32 %v1037_v0, %v1034_v25  ;;  %v3801_v2 = vld [vmem:[#allocation2 + $0x68] sm:$0x1] }
 0x177   : > { %v1319_v16 = vshll.u32 %v1225_v5, 16  ;;  %v1867_v12 = vunpack.c.l.b16 %v1030_v50  ;;  %v1048_v19 = vor.u32 %v1047_v40, %v1043_v37  ;;  %v1053_v1 = vrot.slane %v1051_v59, 5 }
 0x178   : > { %1982 = vrot.lane.b32.xlu2 %v2931_v17, %s3047_s8  ;;  %2112 = vrot.lane.b32.xlu0 %v2940_v4, %s3046_s24  ;;  %v1318_v14 = vrot.slane %v1316_v8, 4  ;;  %v1039_v23 = vrot.slane %v1038_v9, 4  ;;  %v1325_v11 = vshll.u32 %v3507_v36, 16  ;;  %v1329_v3 = vshrl.u32 %v3507_v36, 16 }
 0x179   : > { %2144 = vrot.lane.b32.xlu1 %v2134_v60, %s3053_s15  ;;  %v1321_v15 = vrot.slane %v1319_v16, 5  ;;  %v1879_v45 = vpack.c.b16 %v1867_v12, %v1866_v20  ;;  %v1049_v41 = vrot.slane %v1048_v19, 4  ;;  %v1335_v61 = vshll.u32 %v3509_v38, 16 }
 0x17a   : > { %v3798_v54 = vpop.permute.xlu2 %1978  ;;  %v2782_v43 = vrot.slane %v1745_v22, 9  ;;  %v1044_v60 = vsel %vm3622_vm0, %v1039_v23, %v1043_v37  ;;  %v1327_v56 = vrot.slane %v1325_v11, 5  ;;  %v1331_v6 = vrot.slane %v1329_v3, 4  ;;  %v1530_v37 = vld [vmem:[#allocation2 + $0x48] sm:$0xf] }
 0x17b   : > { %v1322_v52 = vor.u32 %v1321_v15, %v1318_v14  ;;  %v1054_v36 = vsel %vm3622_vm0, %v1049_v41, %v1053_v1  ;;  %v1868_v49 = vunpack.c.l.b16 %v1044_v60  ;;  %v1337_v18 = vrot.slane %v1335_v61, 5  ;;  %v920_v41 = vld [vmem:[#allocation2 + $0x54] sm:$0xf] }
 0x17c   : > { %v1809_v28 = vrot.slane %v3796_v34, 5  ;;  %v1869_v39 = vunpack.c.l.b16 %v1054_v36  ;;  %v1332_v38 = vor.u32 %v1331_v6, %v1327_v56  ;;  %v1812_v35 = vrot.slane %v3801_v2, 5 }
 0x17d   : > { %v1323_v5 = vrot.slane %v1322_v52, 4  ;;  %v1340_v58 = vshrl.u32 %v1227_v7, 16  ;;  %v1343_v20 = vshll.u32 %v1227_v7, 16  ;;  %v1349_v22 = vshll.u32 %v3570_v10, 16 }
 0x17e   : > { %v1810_v25 = vsel %vm3412_vm13, %v2782_v43, %v1809_v28  ;;  %v1811_v32 = vrot.slane %v1809_v28, 4  ;;  %v1880_v33 = vpack.c.b16 %v1869_v39, %v1868_v49  ;;  %v1333_v17 = vrot.slane %v1332_v38, 4 }
 0x17f   : > { %v1328_v0 = vsel %vm3622_vm0, %v1323_v5, %v1327_v56  ;;  %v2166_v4 = vunpack.c.l.b16 %v1810_v25  ;;  %v1342_v8 = vrot.slane %v1340_v58, 4  ;;  %v1345_v50 = vrot.slane %v1343_v20, 5 }
 0x180   : > { %2110 = vrot.lane.b32.xlu2 %v2939_v44, %s3046_s24  ;;  %1890 = vrot.lane.b32.xlu0 %v1879_v45, %s3051_s13  ;;  %v1994_v40 = vunpack.c.l.b16 %v1328_v0  ;;  %v1813_v59 = vsel %vm3412_vm13, %v1811_v32, %v1812_v35  ;;  %v1338_v9 = vsel %vm3622_vm0, %v1333_v17, %v1337_v18  ;;  %v1353_v12 = vshrl.u32 %v3570_v10, 16 }
 0x181   : > { %2192 = vrot.lane.b32.xlu1 %v3771_v30, %s3050_s12  ;;  %v2167_v16 = vunpack.c.l.b16 %v1813_v59  ;;  %v1995_v1 = vunpack.c.l.b16 %v1338_v9  ;;  %v1346_v14 = vor.u32 %v1345_v50, %v1342_v8  ;;  %v1359_v23 = vshll.u32 %v3578_v21, 16 }
 0x182   : > { %v3823_v19 = vpop.permute.xlu2 %2106  ;;  %v1621_v15 = vshrl.u32 %v1530_v37, 16  ;;  %v1351_v3 = vrot.slane %v1349_v22, 5  ;;  %v1355_v45 = vrot.slane %v1353_v12, 4  ;;  %v1624_v30 = vshll.u32 %v1530_v37, 16 }
 0x183   : > { %v3826_v11 = vpack.c.b16 %v2167_v16, %v2166_v4  ;;  %v2007_v61 = vpack.c.b16 %v1995_v1, %v1994_v40  ;;  %v1347_v43 = vrot.slane %v1346_v14, 4  ;;  %v1361_v60 = vrot.slane %v1359_v23, 5 }
 0x184   : > { %v1623_v52 = vrot.slane %v1621_v15, 4  ;;  %v1356_v56 = vor.u32 %v1355_v45, %v1351_v3  ;;  %v1626_v6 = vrot.slane %v1624_v30, 5  ;;  %v1630_v10 = vshll.u32 %v3550_v27, 16  ;;  %v1132_v45 = vld [vmem:[#allocation2 + $0x48] sm:$0xe] }
 0x185   : > { %v1634_v7 = vshrl.u32 %v3550_v27, 16  ;;  %v1352_v21 = vsel %vm3622_vm0, %v1347_v43, %v1351_v3  ;;  %v1640_v36 = vshll.u32 %v3553_v42, 16  ;;  %v1080_v49 = vshrl.u32 %v920_v41, 16  ;;  %v1532_v27 = vld [vmem:[#allocation2 + $0x54] sm:$0xf] }
 0x186   : > { %v1083_v18 = vshll.u32 %v920_v41, 16  ;;  %v1357_v28 = vrot.slane %v1356_v56, 4  ;;  %v1996_v39 = vunpack.c.l.b16 %v1352_v21  ;;  %v1627_v5 = vor.u32 %v1626_v6, %v1623_v52  ;;  %v3856_v43 = vld [vmem:[#allocation2 + $0x4c] sm:$0xf] }
 0x187   : > { %v1632_v38 = vrot.slane %v1630_v10, 5  ;;  %v1636_v35 = vrot.slane %v1634_v7, 4  ;;  %v1642_v44 = vrot.slane %v1640_v36, 5  ;;  %v1082_v25 = vrot.slane %v1080_v49, 4  ;;  %v3858_v10 = vld [vmem:[#allocation2 + $0x50] sm:$0x1] }
 0x188   : > { %1892 = vrot.lane.b32.xlu2 %v1880_v33, %s3051_s13  ;;  %2018 = vrot.lane.b32.xlu0 %v2007_v61, %s3052_s14  ;;  %v1085_v32 = vrot.slane %v1083_v18, 5  ;;  %v1362_v42 = vsel %vm3622_vm0, %v1357_v28, %v1361_v60  ;;  %v1628_v58 = vrot.slane %v1627_v5, 4  ;;  %v1089_v20 = vshll.u32 %v3560_v48, 16  ;;  %v1231_v18 = vld [vmem:[#allocation2 + $0x60] sm:$0xf] }
 0x189   : > { %2062 = vrot.lane.b32.xlu1 %v3789_v47, %s3049_s11  ;;  %v1093_v0 = vshrl.u32 %v3560_v48, 16  ;;  %v1997_v4 = vunpack.c.l.b16 %v1362_v42  ;;  %v1637_v37 = vor.u32 %v1636_v35, %v1632_v38  ;;  %v1099_v59 = vshll.u32 %v3562_v53, 16 }
 0x18a   : > { %v3841_v17 = vpop.permute.xlu0 %1976  ;;  %v3843_v33 = vpop.permute.xlu2 %2052  ;;  %v1086_v40 = vor.u32 %v1085_v32, %v1082_v25  ;;  %v1633_v47 = vsel %vm3622_vm0, %v1628_v58, %v1632_v38  ;;  %v1091_v50 = vrot.slane %v1089_v20, 5  ;;  %v1645_v16 = vshrl.u32 %v1532_v27, 16 }
 0x18b   : > { %v3846_v8 = vpop.permute.xlu1 %1972  ;;  %v1095_v9 = vrot.slane %v1093_v0, 4  ;;  %v2008_v22 = vpack.c.b16 %v1997_v4, %v1996_v39  ;;  %v1638_v12 = vrot.slane %v1637_v37, 4  ;;  %v2122_v48 = vunpack.c.l.b16 %v1633_v47 }
 0x18c   : > { %v1087_v1 = vrot.slane %v1086_v40, 4  ;;  %v1101_v23 = vrot.slane %v1099_v59, 5  ;;  %v1647_v15 = vrot.slane %v1645_v16, 4  ;;  %v1648_v3 = vshll.u32 %v1532_v27, 16  ;;  %v1536_v16 = vld [vmem:[#allocation2 + $0x6c] sm:$0xf] }
 0x18d   : > { %v1096_v14 = vor.u32 %v1095_v9, %v1091_v50  ;;  %v1643_v53 = vsel %vm3622_vm0, %v1638_v12, %v1642_v44  ;;  %v1654_v41 = vshll.u32 %v3689_v26, 16  ;;  %v1658_v61 = vshrl.u32 %v3689_v26, 16 }
 0x18e   : > { %v1092_v30 = vsel %vm3622_vm0, %v1087_v1, %v1091_v50  ;;  %v2123_v60 = vunpack.c.l.b16 %v1643_v53  ;;  %v1650_v6 = vrot.slane %v1648_v3, 5  ;;  %v1664_v36 = vshll.u32 %v3695_v31, 16 }
 0x18f   : > { %v1097_v52 = vrot.slane %v1096_v14, 4  ;;  %v1872_v56 = vunpack.c.l.b16 %v1092_v30  ;;  %v1656_v7 = vrot.slane %v1654_v41, 5  ;;  %v1660_v21 = vrot.slane %v1658_v61, 4  ;;  %v1134_v61 = vld [vmem:[#allocation2 + $0x60] sm:$0xe] }
 0x190   : > { %2020 = vrot.lane.b32.xlu2 %v2008_v22, %s3052_s14  ;;  %v2766_v49 = vrot.slane %v1132_v45, 9  ;;  %v2135_v26 = vpack.c.b16 %v2123_v60, %v2122_v48  ;;  %v1651_v39 = vor.u32 %v1650_v6, %v1647_v15  ;;  %v1199_v5 = vrot.slane %v3856_v43, 5 }
 0x191   : > { %2190 = vrot.lane.b32.xlu1 %v3826_v11, %s3050_s12  ;;  %v1102_v28 = vsel %vm3622_vm0, %v1097_v52, %v1101_v23  ;;  %v1661_v25 = vor.u32 %v1660_v21, %v1656_v7  ;;  %v1666_v32 = vrot.slane %v1664_v36, 5  ;;  %v1202_v31 = vrot.slane %v3858_v10, 5 }
 0x192   : > { %v3867_v38 = vpop.permute.xlu0 %2104  ;;  %v3869_v35 = vpop.permute.xlu2 %1928  ;;  %v1873_v44 = vunpack.c.l.b16 %v1102_v28  ;;  %2146 = vrot.lane.b32.xlu0 %v2135_v26, %s3053_s15  ;;  %v1652_v11 = vrot.slane %v1651_v39, 4  ;;  %v1200_v42 = vsel %vm3412_vm13, %v2766_v49, %v1199_v5  ;;  %v1201_v58 = vrot.slane %v1199_v5, 4  ;;  %v3895_v26 = vld [vmem:[#allocation2 + $0x68] sm:$0x1] }
 0x193   : > { %v3873_v27 = vpop.permute.xlu1 %1974  ;;  %v1388_v20 = vshrl.u32 %v1231_v18, 16  ;;  %v1662_v4 = vrot.slane %v1661_v25, 4  ;;  %v1910_v37 = vunpack.c.l.b16 %v1200_v42  ;;  %v1391_v40 = vshll.u32 %v1231_v18, 16  ;;  %v918_v42 = vld [vmem:[#allocation2 + $0x48] sm:$0xf] }
 0x194   : > { %v1882_v0 = vpack.c.b16 %v1873_v44, %v1872_v56  ;;  %v1657_v59 = vsel %vm3622_vm0, %v1652_v11, %v1656_v7  ;;  %v1203_v47 = vsel %vm3412_vm13, %v1201_v58, %v1202_v31  ;;  %v1397_v9 = vshll.u32 %v3721_v24, 16  ;;  %v3888_v7 = vld [vmem:[#allocation2 + $0x64] sm:$0xf] }
 0x195   : > { %v1390_v50 = vrot.slane %v1388_v20, 4  ;;  %v1667_v22 = vsel %vm3622_vm0, %v1662_v4, %v1666_v32  ;;  %v2124_v12 = vunpack.c.l.b16 %v1657_v59  ;;  %v1911_v48 = vunpack.c.l.b16 %v1203_v47 }
 0x196   : > { %v1393_v1 = vrot.slane %v1391_v40, 5  ;;  %v2125_v14 = vunpack.c.l.b16 %v1667_v22  ;;  %v1399_v23 = vrot.slane %v1397_v9, 5  ;;  %v1401_v15 = vshrl.u32 %v3721_v24, 16 }
 0x197   : > { %v1407_v3 = vshll.u32 %v3727_v46, 16  ;;  %v1921_v45 = vpack.c.b16 %v1911_v48, %v1910_v37  ;;  %v1693_v30 = vshrl.u32 %v1536_v16, 16  ;;  %v1696_v41 = vshll.u32 %v1536_v16, 16 }
 0x198   : > { %v1394_v53 = vor.u32 %v1393_v1, %v1390_v50  ;;  %v2136_v60 = vpack.c.b16 %v2125_v14, %v2124_v12  ;;  %v1403_v52 = vrot.slane %v1401_v15, 4  ;;  %v1702_v6 = vshll.u32 %v3742_v29, 16 }
 0x199   : > { %1896 = vrot.lane.b32.xlu1 %v1882_v0, %s3051_s13  ;;  %v1409_v56 = vrot.slane %v1407_v3, 5  ;;  %v1695_v46 = vrot.slane %v1693_v30, 4  ;;  %v1698_v49 = vrot.slane %v1696_v41, 5  ;;  %v1706_v18 = vshrl.u32 %v3742_v29, 16 }
 0x19a   : > { %v3890_v21 = vpop.permute.xlu2 %2056  ;;  %v3892_v36 = vpop.permute.xlu0 %1924  ;;  %v1395_v24 = vrot.slane %v1394_v53, 4  ;;  %2148 = vrot.lane.b32.xlu2 %v2136_v60, %s3053_s15  ;;  %1934 = vrot.lane.b32.xlu0 %v1921_v45, %s3048_s9  ;;  %v1404_v39 = vor.u32 %v1403_v52, %v1399_v23  ;;  %v1704_v5 = vrot.slane %v1702_v6, 5  ;;  %v1712_v44 = vshll.u32 %v3744_v62, 16  ;;  %v922_v45 = vld [vmem:[#allocation2 + $0x60] sm:$0xf] }
 0x19b   : > { %v3899_v28 = vpop.permute.xlu1 %2102  ;;  %v2768_v25 = vrot.slane %v1134_v61, 9  ;;  %v1699_v31 = vor.u32 %v1698_v49, %v1695_v46  ;;  %v1708_v11 = vrot.slane %v1706_v18, 4  ;;  %v1213_v29 = vrot.slane %v3888_v7, 5 }
 0x19c   : > { %v1400_v32 = vsel %vm3622_vm0, %v1395_v24, %v1399_v23  ;;  %v1405_v58 = vrot.slane %v1404_v39, 4  ;;  %v1714_v0 = vrot.slane %v1712_v44, 5  ;;  %v1216_v4 = vrot.slane %v3895_v26, 5 }
 0x19d   : > { %v2000_v20 = vunpack.c.l.b16 %v1400_v32  ;;  %v1700_v37 = vrot.slane %v1699_v31, 4  ;;  %v1709_v40 = vor.u32 %v1708_v11, %v1704_v5  ;;  %v1214_v59 = vsel %vm3412_vm13, %v2768_v25, %v1213_v29  ;;  %v1229_v25 = vld [vmem:[#allocation2 + $0x54] sm:$0xf] }
 0x19e   : > { %v1215_v62 = vrot.slane %v1213_v29, 4  ;;  %v1410_v47 = vsel %vm3622_vm0, %v1405_v58, %v1409_v56  ;;  %v1914_v50 = vunpack.c.l.b16 %v1214_v59  ;;  %v1056_v9 = vshrl.u32 %v918_v42, 16 }
 0x19f   : > { %v1059_v16 = vshll.u32 %v918_v42, 16  ;;  %v2001_v22 = vunpack.c.l.b16 %v1410_v47  ;;  %v1705_v12 = vsel %vm3622_vm0, %v1700_v37, %v1704_v5  ;;  %v1710_v48 = vrot.slane %v1709_v40, 4 }
 0x1a0   : > { %v1217_v1 = vsel %vm3412_vm13, %v1215_v62, %v1216_v4  ;;  %v2128_v14 = vunpack.c.l.b16 %v1705_v12  ;;  %v1058_v15 = vrot.slane %v1056_v9, 4  ;;  %v1065_v60 = vshll.u32 %v3856_v43, 16  ;;  %v1233_v12 = vld [vmem:[#allocation2 + $0x6c] sm:$0xf] }
 0x1a1   : > { %v1915_v23 = vunpack.c.l.b16 %v1217_v1  ;;  %v1061_v3 = vrot.slane %v1059_v16, 5  ;;  %v2010_v53 = vpack.c.b16 %v2001_v22, %v2000_v20  ;;  %v1715_v30 = vsel %vm3622_vm0, %v1710_v48, %v1714_v0 }
 0x1a2   : > { %v3916_v41 = vpop.permute.xlu2 %2184  ;;  %v3918_v61 = vpop.permute.xlu0 %1926  ;;  %v1069_v52 = vshrl.u32 %v3856_v43, 16  ;;  %v2129_v56 = vunpack.c.l.b16 %v1715_v30  ;;  %v1075_v49 = vshll.u32 %v3858_v10, 16  ;;  %v1067_v18 = vrot.slane %v1065_v60, 5 }
 0x1a3   : > { %v1923_v6 = vpack.c.b16 %v1915_v23, %v1914_v50  ;;  %v3922_v24 = vpop.permute.xlu1 %1980  ;;  %v1062_v46 = vor.u32 %v1061_v3, %v1058_v15  ;;  %2024 = vrot.lane.b32.xlu1 %v2010_v53, %s3052_s14  ;;  %v1104_v5 = vshrl.u32 %v922_v45, 16  ;;  %v1107_v44 = vshll.u32 %v922_v45, 16 }
 0x1a4   : > { %v1071_v39 = vrot.slane %v1069_v52, 4  ;;  %v2138_v32 = vpack.c.b16 %v2129_v56, %v2128_v14  ;;  %v1077_v11 = vrot.slane %v1075_v49, 5  ;;  %v1113_v43 = vshll.u32 %v3888_v7, 16 }
 0x1a5   : > { %1938 = vrot.lane.b32.xlu0 %v1923_v6, %s3048_s9  ;;  %v1063_v31 = vrot.slane %v1062_v46, 4  ;;  %v1106_v42 = vrot.slane %v1104_v5, 4  ;;  %v1109_v58 = vrot.slane %v1107_v44, 5  ;;  %v1117_v20 = vshrl.u32 %v3888_v7, 16  ;;  %v3946_v6 = vld [vmem:[#allocation2 + $0x70] sm:$0xf] }
 0x1a6   : > { %v1072_v29 = vor.u32 %v1071_v39, %v1067_v18  ;;  %2152 = vrot.lane.b32.xlu2 %v2138_v32, %s3053_s15  ;;  %v1115_v0 = vrot.slane %v1113_v43, 5  ;;  %v1123_v4 = vshll.u32 %v3895_v26, 16  ;;  %v1364_v37 = vshrl.u32 %v1229_v25, 16  ;;  %v3948_v5 = vld [vmem:[#allocation2 + $0x74] sm:$0x1] }
 0x1a7   : > { %v1068_v10 = vsel %vm3622_vm0, %v1063_v31, %v1067_v18  ;;  %v1110_v62 = vor.u32 %v1109_v58, %v1106_v42  ;;  %v1119_v47 = vrot.slane %v1117_v20, 4  ;;  %v1367_v16 = vshll.u32 %v1229_v25, 16  ;;  %v1534_v44 = vld [vmem:[#allocation2 + $0x60] sm:$0xf] }
 0x1a8   : > { %v1073_v40 = vrot.slane %v1072_v29, 4  ;;  %v1870_v59 = vunpack.c.l.b16 %v1068_v10  ;;  %v1125_v50 = vrot.slane %v1123_v4, 5  ;;  %v1366_v9 = vrot.slane %v1364_v37, 4 }
 0x1a9   : > { %v1373_v22 = vshll.u32 %v3761_v13, 16  ;;  %v1111_v48 = vrot.slane %v1110_v62, 4  ;;  %v1120_v1 = vor.u32 %v1119_v47, %v1115_v0  ;;  %v1377_v14 = vshrl.u32 %v3761_v13, 16 }
 0x1aa   : > { %v1078_v7 = vsel %vm3622_vm0, %v1073_v40, %v1077_v11  ;;  %v3937_v23 = vpop.permute.xlu2 %1936  ;;  %v3939_v26 = vpop.permute.xlu0 %2054  ;;  %v1369_v3 = vrot.slane %v1367_v16, 5  ;;  %v1383_v53 = vshll.u32 %v3765_v57, 16  ;;  %v1412_v46 = vshrl.u32 %v1233_v12, 16 }
 0x1ab   : > { %v1871_v15 = vunpack.c.l.b16 %v1078_v7  ;;  %v1375_v45 = vrot.slane %v1373_v22, 5  ;;  %v3942_v30 = vpop.permute.xlu1 %2180  ;;  %v1116_v60 = vsel %vm3622_vm0, %v1111_v48, %v1115_v0  ;;  %v1121_v52 = vrot.slane %v1120_v1, 4 }
 0x1ac   : > { %v1379_v56 = vrot.slane %v1377_v14, 4  ;;  %v1874_v49 = vunpack.c.l.b16 %v1116_v60  ;;  %v1370_v18 = vor.u32 %v1369_v3, %v1366_v9  ;;  %v1385_v39 = vrot.slane %v1383_v53, 5  ;;  %v2933_v60 = vld [vmem:[#allocation2 + $0x6c] sm:$0xff] }
 0x1ad   : > { %v1881_v13 = vpack.c.b16 %v1871_v15, %v1870_v59  ;;  %v1126_v57 = vsel %vm3622_vm0, %v1121_v52, %v1125_v50  ;;  %v1414_v32 = vrot.slane %v1412_v46, 4  ;;  %v1415_v31 = vshll.u32 %v1233_v12, 16 }
 0x1ae   : > { %v1380_v25 = vor.u32 %v1379_v56, %v1375_v45  ;;  %v1875_v11 = vunpack.c.l.b16 %v1126_v57  ;;  %v1371_v43 = vrot.slane %v1370_v18, 4  ;;  %v1421_v29 = vshll.u32 %v3946_v6, 16 }
 0x1af   : > { %1894 = vrot.lane.b32.xlu1 %v1881_v13, %s3051_s13  ;;  %v1425_v42 = vshrl.u32 %v3946_v6, 16  ;;  %v1417_v20 = vrot.slane %v1415_v31, 5  ;;  %v1431_v10 = vshll.u32 %v3948_v5, 16  ;;  %v1669_v0 = vshrl.u32 %v1534_v44, 16  ;;  %v1538_v13 = vld [vmem:[#allocation2 + $0x78] sm:$0xf] }
 0x1b0   : > { %v1381_v58 = vrot.slane %v1380_v25, 4  ;;  %v1883_v4 = vpack.c.b16 %v1875_v11, %v1874_v49  ;;  %v1376_v37 = vsel %vm3622_vm0, %v1371_v43, %v1375_v45  ;;  %v1423_v40 = vrot.slane %v1421_v29, 5 }
 0x1b1   : > { %v1427_v59 = vrot.slane %v1425_v42, 4  ;;  %v1998_v47 = vunpack.c.l.b16 %v1376_v37  ;;  %v1418_v50 = vor.u32 %v1417_v20, %v1414_v32  ;;  %v1671_v7 = vrot.slane %v1669_v0, 4  ;;  %v2919_v32 = vld [vmem:[#allocation2 + $0x18] sm:$0xff] }
 0x1b2   : > { %v1386_v62 = vsel %vm3622_vm0, %v1381_v58, %v1385_v39  ;;  %v1887_v9 = vpop.permute.xlu2 %1886  ;;  %v3960_v16 = vpop.permute.xlu0 %2182  ;;  %1898 = vrot.lane.b32.xlu2 %v1883_v4, %s3051_s13  ;;  %v1672_v48 = vshll.u32 %v1534_v44, 16  ;;  %v1678_v15 = vshll.u32 %v3796_v34, 16  ;;  %v1682_v3 = vshrl.u32 %v3796_v34, 16  ;;  %v3970_v44 = vld [vmem:[#allocation2 + $0x7c] sm:$0xf] }
 0x1b3   : > { %v1999_v22 = vunpack.c.l.b16 %v1386_v62  ;;  %v1428_v12 = vor.u32 %v1427_v59, %v1423_v40  ;;  %v3963_v1 = vpop.permute.xlu1 %1930  ;;  %v1419_v14 = vrot.slane %v1418_v50, 4  ;;  %v1688_v45 = vshll.u32 %v3801_v2, 16  ;;  %v3977_v58 = vld [vmem:[#allocation2 + $0x80] sm:$0x1] }
 0x1b4   : > { %v1433_v56 = vrot.slane %v1431_v10, 5  ;;  %v1674_v46 = vrot.slane %v1672_v48, 5  ;;  %v1680_v18 = vrot.slane %v1678_v15, 5  ;;  %v1684_v39 = vrot.slane %v1682_v3, 4 }
 0x1b5   : > { %v2009_v53 = vpack.c.b16 %v1999_v22, %v1998_v47  ;;  %v1429_v52 = vrot.slane %v1428_v12, 4  ;;  %v1424_v49 = vsel %vm3622_vm0, %v1419_v14, %v1423_v40  ;;  %v1690_v25 = vrot.slane %v1688_v45, 5  ;;  %v1442_v12 = vld [vmem:[#allocation2 + $0x6c] sm:$0xe] }
 0x1b6   : > { %v2002_v2 = vunpack.c.l.b16 %v1424_v49  ;;  %v1675_v57 = vor.u32 %v1674_v46, %v1671_v7  ;;  %v1685_v11 = vor.u32 %v1684_v39, %v1680_v18  ;;  %v1717_v43 = vshrl.u32 %v1538_v13, 16 }
 0x1b7   : > { %2022 = vrot.lane.b32.xlu0 %v2009_v53, %s3052_s14  ;;  %1986 = vrot.lane.b32.xlu1 %v2933_v60, %s3047_s8  ;;  %v1434_v34 = vsel %vm3622_vm0, %v1429_v52, %v1433_v56  ;;  %v2202_v42 = vsel %vm2196_vm1, %v2919_v32, %v1887_v9  ;;  %v1720_v20 = vshll.u32 %v1538_v13, 16  ;;  %v1726_v10 = vshll.u32 %v3970_v44, 16  ;;  %v2941_v53 = vld [vmem:[#allocation2 + $0x78] sm:$0xff] }
 0x1b8   : > { %v2003_v31 = vunpack.c.l.b16 %v1434_v34  ;;  %v1676_v29 = vrot.slane %v1675_v57, 4  ;;  %v1686_v4 = vrot.slane %v1685_v11, 4  ;;  %v1719_v37 = vrot.slane %v1717_v43, 4 }
 0x1b9   : > { %v1730_v40 = vshrl.u32 %v3970_v44, 16  ;;  %v1722_v50 = vrot.slane %v1720_v20, 5  ;;  %v1728_v22 = vrot.slane %v1726_v10, 5  ;;  %v1736_v15 = vshll.u32 %v3977_v58, 16  ;;  %v1747_v10 = vld [vmem:[#allocation2 + $0x78] sm:$0xe] }
 0x1ba   : > { %v2011_v0 = vpack.c.b16 %v2003_v31, %v2002_v2  ;;  %v2015_v59 = vpop.permute.xlu2 %2014  ;;  %v3981_v62 = vpop.permute.xlu0 %1932  ;;  %v1681_v47 = vsel %vm3622_vm0, %v1676_v29, %v1680_v18  ;;  %v1691_v7 = vsel %vm3622_vm0, %v1686_v4, %v1690_v25  ;;  %v2225_v45 = vsel %vm2221_vm2, %v2202_v42, %v3918_v61 }
 0x1bb   : > { %v3985_v9 = vpop.permute.xlu1 %2058  ;;  %v2126_v48 = vunpack.c.l.b16 %v1681_v47  ;;  %v1732_v14 = vrot.slane %v1730_v40, 4  ;;  %v2127_v3 = vunpack.c.l.b16 %v1691_v7  ;;  %v1723_v60 = vor.u32 %v1722_v50, %v1719_v37 }
 0x1bc   : > { %2026 = vrot.lane.b32.xlu2 %v2011_v0, %s3052_s14  ;;  %v1518_v52 = vrot.slane %v3946_v6, 5  ;;  %v2776_v46 = vrot.slane %v1442_v12, 9  ;;  %v1521_v39 = vrot.slane %v3948_v5, 5  ;;  %v1738_v2 = vrot.slane %v1736_v15, 5  ;;  %v2348_v6 = vld [vmem:[%s4233_s3 + $0x20] sm:$0xf] }
 0x1bd   : > { %v1733_v56 = vor.u32 %v1732_v14, %v1728_v22  ;;  %v2137_v13 = vpack.c.b16 %v2127_v3, %v2126_v48  ;;  %v1724_v49 = vrot.slane %v1723_v60, 4  ;;  %v2242_v61 = vsel %vm2238_vm3, %v2225_v45, %v3873_v27  ;;  %v2945_v48 = vld [vmem:[%s4233_s3 + $0x18] sm:$0xff]  ;;  %v2944_v60 = vld [vmem:[%s4233_s3 + $0x10] sm:$0xff]  ;;  %s2690_s14 = sshll.u32 %s4265_s10, 1 }
 0x1be   : > { %v1520_v18 = vrot.slane %v1518_v52, 4  ;;  %v2259_v5 = vsel %vm2255_vm4, %v2242_v61, %v2015_v59  ;;  %v1519_v27 = vsel %vm3412_vm13, %v2776_v46, %v1518_v52  ;;  %v1823_v0 = vrot.slane %v3970_v44, 5 }
 0x1bf   : > { %2114 = vrot.lane.b32.xlu1 %v2941_v53, %s3046_s24  ;;  %v1734_v34 = vrot.slane %v1733_v56, 4  ;;  %2150 = vrot.lane.b32.xlu0 %v2137_v13, %s3053_s15  ;;  %v1729_v57 = vsel %vm3622_vm0, %v1724_v49, %v1728_v22  ;;  %v2276_v20 = vsel %vm2272_vm5, %v2259_v5, %v3939_v26  ;;  %v2370_v4 = vunpack.c.l.b16 %v2348_v6 }
 0x1c0   : > { %v1522_v25 = vsel %vm3412_vm13, %v1520_v18, %v1521_v39  ;;  %v2130_v31 = vunpack.c.l.b16 %v1729_v57  ;;  %v2042_v40 = vunpack.c.l.b16 %v1519_v27  ;;  %v1825_v59 = vrot.slane %v1823_v0, 4  ;;  %v2943_v18 = vld [vmem:[%s4233_s3 + $0x8] sm:$0xff] }
 0x1c1   : > { %v1739_v32 = vsel %vm3622_vm0, %v1734_v34, %v1738_v2  ;;  %v2043_v11 = vunpack.c.l.b16 %v1522_v25  ;;  %v2375_v47 = vpack.c.b16 %v2370_v4, %v2370_v4  ;;  %v2784_v50 = vrot.slane %v1747_v10, 9  ;;  %v2922_v25 = vld [vmem:[#allocation2 + $0x3c] sm:$0xff] }
 0x1c2   : > { %v4011_v43 = vpop.permute.xlu2 %2142  ;;  %v4013_v29 = vpop.permute.xlu0 %2060  ;;  %v2131_v42 = vunpack.c.l.b16 %v1739_v32  ;;  %v1826_v22 = vrot.slane %v3977_v58, 5  ;;  %v2293_v12 = vsel %vm2289_vm7, %v2276_v20, %v3899_v28  ;;  %v2918_v58 = vld [vmem:[#allocation2 + $0xc] sm:$0xff]  ;;  %v2920_v20 = vld [vmem:[#allocation2 + $0x24] sm:$0xff] }
 0x1c3   : > { %v4018_v37 = vpop.permute.xlu1 %2186  ;;  %v2051_v26 = vpack.c.b16 %v2043_v11, %v2042_v40  ;;  %v2399_v44 = vsel %vm2397_vm6, %v2375_v47, 0  ;;  %v1824_v28 = vsel %vm3412_vm13, %v2784_v50, %v1823_v0  ;;  %v2921_v50 = vld [vmem:[#allocation2 + $0x30] sm:$0xff] }
 0x1c4   : > { %v2139_v55 = vpack.c.b16 %v2131_v42, %v2130_v31  ;;  %v1827_v7 = vsel %vm3412_vm13, %v1825_v59, %v1826_v22  ;;  %2404 = vmatpush.bf16.msra.mxu1 %v2399_v44  ;;  %2947 = vmatpush.bf16.msrb.mxu3 %v2399_v44  ;;  %v2170_v56 = vunpack.c.l.b16 %v1824_v28  ;;  %v2310_v42 = vsel %vm2306_vm8, %v2293_v12, %v4011_v43 }
 0x1c5   : > { %v2171_v3 = vunpack.c.l.b16 %v1827_v7  ;;  %v2327_v0 = vsel %vm2323_vm9, %v2310_v42, %v3960_v16  ;;  %v2925_v42 = vld [vmem:[#allocation2 + $0x60] sm:$0xff] }
 0x1c6   : > { %2154 = vrot.lane.b32.xlu2 %v2139_v55, %s3053_s15  ;;  %s2691_s15 = sshll.u32 %s4261_s25, 5 }
 0x1c7   : > { %2066 = vrot.lane.b32.xlu0 %v2051_v26, %s3049_s11  ;;  %v2179_v13 = vpack.c.b16 %v2171_v3, %v2170_v56  ;;  %s300_s16 = sadd.s32 %s2691_s15, %s2690_s14 }
 0x1c8   : > { %2405 = vmatpush.bf16.msra.mxu1 %v2945_v48  ;;  %2948 = vmatpush.bf16.msrb.mxu3 %v2945_v48  ;;  %s2692_s19 = sshll.u32 %s300_s16, 3 }
 0x1c9   : > { %s4166_s22 = scalar_lea.vmem %s4237_s7, %s2692_s19 }
 0x1ca   : > { %v4033_v14 = vpop.permute.xlu2 %2064  ;;  %v1885_v15 = vpop.permute.xlu0 %1884 }
 0x1cb   : > { %v2013_v45 = vpop.permute.xlu1 %2012  ;;  %v2199_v53 = vsel %vm2196_vm1, %v2918_v58, %v1885_v15 }
 0x1cc   : > { %v2223_v52 = vsel %vm2221_vm2, %v2199_v53, %v3892_v36  ;;  %2406 = vmatpush.bf16.msra.mxu1 %v2944_v60  ;;  %2949 = vmatpush.bf16.msrb.mxu3 %v2944_v60  ;;  %v2924_v53 = vld [vmem:[#allocation2 + $0x54] sm:$0xff] }
 0x1cd   : > { %v2240_v51 = vsel %vm2238_vm3, %v2223_v52, %v3846_v8 }
 0x1ce   : > { %v2257_v46 = vsel %vm2255_vm4, %v2240_v51, %v2013_v45 }
 0x1cf   : > { %v2274_v49 = vsel %vm2272_vm5, %v2257_v46, %v3843_v33  ;;  %2194 = vrot.lane.b32.xlu0 %v2179_v13, %s3050_s12  ;;  %v2942_v33 = vld [vmem:[%s4233_s3] sm:$0xff] }
 0x1d0   : > { %v2291_v39 = vsel %vm2289_vm7, %v2274_v49, %v3776_v63  ;;  %2407 = vmatpush.bf16.msra.mxu1 %v2943_v18  ;;  %2950 = vmatpush.bf16.msrb.mxu3 %v2943_v18 }
 0x1d2   : > { %v4052_v36 = vpop.permute.xlu2 %1982  ;;  %v2141_v8 = vpop.permute.xlu0 %2140 }
 0x1d3   : > { %v2109_v34 = vpop.permute.xlu1 %2108  ;;  %v2308_v2 = vsel %vm2306_vm8, %v2291_v39, %v2141_v8 }
 0x1d4   : > { %2408 = vmatpush.bf16.msra.mxu1 %v2942_v33  ;;  %v2325_v63 = vsel %vm2323_vm9, %v2308_v2, %v3942_v30  ;;  %2951 = vmatpush.bf16.msrb.mxu3 %v2942_v33  ;;  %v2923_v2 = vld [vmem:[#allocation2 + $0x48] sm:$0xff] }
 0x1d7   : > { %2897 = vmatmul.msk.bf16.vlgmr.msra.gmra.mxu1 %vm2380_vm10, %v2325_v63 }
 0x1da   : > { %v4060_v61 = vpop.permute.xlu2 %2110  ;;  %v2189_v6 = vpop.permute.xlu0 %2188 }
 0x1db   : > { %v1889_v57 = vpop.permute.xlu1 %1888 }
 0x1dc   : > { %v2205_v10 = vsel %vm2196_vm1, %v2920_v20, %v1889_v57 }
 0x1e2   : > { %v1893_v5 = vpop.permute.xlu2 %1892  ;;  %v1985_v32 = vpop.permute.xlu0 %1984 }
 0x1e3   : > { %v2017_v31 = vpop.permute.xlu1 %2016  ;;  %v2211_v27 = vsel %vm2196_vm1, %v2922_v25, %v1893_v5 }
 0x1e4   : > { %v2231_v11 = vsel %vm2221_vm2, %v2211_v27, %v3981_v62  ;;  %v2227_v62 = vsel %vm2221_vm2, %v2205_v10, %v3869_v35 }
 0x1e5   : > { %v2248_v30 = vsel %vm2238_vm3, %v2231_v11, %v3922_v24  ;;  %v2244_v47 = vsel %vm2238_vm3, %v2227_v62, %v3841_v17 }
 0x1e6   : > { %v2261_v16 = vsel %vm2255_vm4, %v2244_v47, %v2017_v31 }
 0x1e7   : > { %2898 = vmatmul.msk.bf16.gmra.mxu1 %vm2380_vm10, %v2327_v0  ;;  %v2278_v12 = vsel %vm2272_vm5, %v2261_v16, %v3890_v21 }
 0x1e8   : > { %v2295_v35 = vsel %vm2289_vm7, %v2278_v12, %v3867_v38 }
 0x1ea   : > { %v2021_v4 = vpop.permute.xlu2 %2020  ;;  %v2113_v55 = vpop.permute.xlu0 %2112 }
 0x1eb   : > { %v2145_v40 = vpop.permute.xlu1 %2144  ;;  %v2265_v59 = vsel %vm2255_vm4, %v2248_v30, %v2021_v4 }
 0x1ec   : > { %v2282_v24 = vsel %vm2272_vm5, %v2265_v59, %v4013_v29  ;;  %v2312_v29 = vsel %vm2306_vm8, %v2295_v35, %v2145_v40 }
 0x1ed   : > { %v2299_v43 = vsel %vm2289_vm7, %v2282_v24, %v2109_v34  ;;  %v2329_v17 = vsel %vm2323_vm9, %v2312_v29, %v3916_v41 }
 0x1f2   : > { %v1891_v22 = vpop.permute.xlu0 %1890 }
 0x1f3   : > { %v2193_v26 = vpop.permute.xlu1 %2192  ;;  %v2208_v44 = vsel %vm2196_vm1, %v2921_v50, %v1891_v22  ;;  %v2474_v50 = vld [vmem:[%s4235_s5] sm:$0xf] }
 0x1f4   : > { %v2229_v7 = vsel %vm2221_vm2, %v2208_v44, %v3963_v1  ;;  %v2149_v60 = vpop.permute.xlu2 %2148  ;;  %v2504_v22 = vsel %vm2397_vm6, %v2474_v50, 0 }
 0x1f5   : > { %v2246_v48 = vsel %vm2238_vm3, %v2229_v7, %v3798_v54  ;;  %v2316_v46 = vsel %vm2306_vm8, %v2299_v43, %v2149_v60  ;;  %2513 = vmatpush.bf16.msra.mxu2 %v2504_v22  ;;  %2952 = vmatpush.bf16.msra.mxu3 %v2504_v22 }
 0x1f6   : > { %v2333_v39 = vsel %vm2323_vm9, %v2316_v46, %v2189_v6 }
 0x1f7   : > { %2899 = vmatmul.msk.bf16.gmra.mxu1 %vm2380_vm10, %v2329_v17 }
 0x1fa   : > { %v2019_v58 = vpop.permute.xlu0 %2018 }
 0x1fb   : > { %v2063_v21 = vpop.permute.xlu1 %2062  ;;  %v2263_v28 = vsel %vm2255_vm4, %v2246_v48, %v2019_v58 }
 0x1fc   : > { %v2280_v38 = vsel %vm2272_vm5, %v2263_v28, %v3985_v9 }
 0x1fd   : > { %v2297_v3 = vsel %vm2289_vm7, %v2280_v38, %v3823_v19 }
 0x200   : > { %v2153_v49 = vpop.permute.xlu2 %2152 }
 0x203   : > { %v2191_v15 = vpop.permute.xlu1 %2190 }
 0x204   : > { %v2147_v1 = vpop.permute.xlu0 %2146 }
 0x205   : > { %v2314_v45 = vsel %vm2306_vm8, %v2297_v3, %v2147_v1 }
 0x206   : > { %v2331_v41 = vsel %vm2323_vm9, %v2314_v45, %v4018_v37 }
 0x207   : > { %2900 = vmatmul.msk.bf16.gmra.mxu1 %vm2380_vm10, %v2331_v41 }
 0x20b   : > { %v1897_v54 = vpop.permute.xlu1 %1896 }
 0x20c   : > { %v2217_v52 = vsel %vm2196_vm1, %v2924_v53, %v1897_v54  ;;  %v1935_v56 = vpop.permute.xlu0 %1934  ;;  %v1899_v5 = vpop.permute.xlu2 %1898 }
 0x20d   : > { %v2235_v9 = vsel %vm2221_vm2, %v2217_v52, %v3937_v23  ;;  %v2220_v10 = vsel %vm2196_vm1, %v2925_v42, %v1899_v5 }
 0x20e   : > { %v2252_v19 = vsel %vm2238_vm3, %v2235_v9, %v1985_v32 }
 0x215   : > { %v2025_v51 = vpop.permute.xlu1 %2024 }
 0x216   : > { %v2269_v13 = vsel %vm2255_vm4, %v2252_v19, %v2025_v51 }
 0x217   : > { %v2286_v37 = vsel %vm2272_vm5, %v2269_v13, %v4033_v14  ;;  %2901 = vmatmul.msk.bf16.gmra.mxu1 %vm2380_vm10, %v2333_v39  ;;  %v1939_v34 = vpop.permute.xlu0 %1938 }
 0x218   : > { %v2303_v18 = vsel %vm2289_vm7, %v2286_v37, %v2113_v55  ;;  %v2237_v0 = vsel %vm2221_vm2, %v2220_v10, %v1939_v34 }
 0x219   : > { %v2320_v8 = vsel %vm2306_vm8, %v2303_v18, %v2153_v49 }
 0x21a   : > { %v2337_v23 = vsel %vm2323_vm9, %v2320_v8, %v2193_v26  ;;  %v3003_v26 = vld [vmem:[%s4234_s4] ss:$0 sm:$0xff] }
 0x21b   : > { %2903 = vmatmul.msk.bf16.vlgmr.msrb.gmra.mxu3 %vm2380_vm10, %v2337_v23 }
 0x221   : > { %v1895_v33 = vpop.permute.xlu1 %1894 }
 0x222   : > { %v2214_v63 = vsel %vm2196_vm1, %v2923_v2, %v1895_v33 }
 0x223   : > { %v2233_v14 = vsel %vm2221_vm2, %v2214_v63, %v1935_v56 }
 0x224   : > { %v2250_v25 = vsel %vm2238_vm3, %v2233_v14, %v4052_v36  ;;  %v2027_v36 = vpop.permute.xlu2 %2026 }
 0x229   : > { %v2023_v57 = vpop.permute.xlu0 %2022  ;;  %v1987_v31 = vpop.permute.xlu1 %1986 }
 0x22a   : > { %v2267_v6 = vsel %vm2255_vm4, %v2250_v25, %v2023_v57  ;;  %v2254_v4 = vsel %vm2238_vm3, %v2237_v0, %v1987_v31 }
 0x22b   : > { %v2284_v32 = vsel %vm2272_vm5, %v2267_v6, %v2063_v21  ;;  %v2271_v40 = vsel %vm2255_vm4, %v2254_v4, %v2027_v36 }
 0x22c   : > { %v2301_v27 = vsel %vm2289_vm7, %v2284_v32, %v4060_v61  ;;  %v2155_v24 = vpop.permute.xlu2 %2154 }
 0x231   : > { %v2151_v11 = vpop.permute.xlu0 %2150  ;;  %v2115_v59 = vpop.permute.xlu1 %2114 }
 0x232   : > { %v2318_v30 = vsel %vm2306_vm8, %v2301_v27, %v2151_v11 }
 0x233   : > { %v2335_v20 = vsel %vm2323_vm9, %v2318_v30, %v2191_v15 }
 0x234   : > { %2902 = vmatmul.msk.bf16.gmra.mxu1 %vm2380_vm10, %v2335_v20 }
 0x239   : > { %v2067_v55 = vpop.permute.xlu0 %2066 }
 0x23a   : > { %v2288_v61 = vsel %vm2272_vm5, %v2271_v40, %v2067_v55 }
 0x23b   : > { %v2305_v62 = vsel %vm2289_vm7, %v2288_v61, %v2115_v59 }
 0x23c   : > { %v2322_v47 = vsel %vm2306_vm8, %v2305_v62, %v2155_v24  ;;  %v4160_v62 = vld [vmem:[%s4236_s6] ss:$0 sm:$0xff] }
 0x241   : > { %v2195_v43 = vpop.permute.xlu0 %2194 }
 0x242   : > { %v2339_v16 = vsel %vm2323_vm9, %v2322_v47, %v2195_v43 }
 0x243   : > { %2904 = vmatmul.msk.bf16.gmra.mxu3 %vm2380_vm10, %v2339_v16 }
 0x254   : > { %v2410_v12 = vpop.f32.mrf.mxu1 }
 0x255   : > { %v2411_v44 = vadd.f32 %v3003_v26, %v2410_v12 }
 0x257   : > { %v2450_v7 = vmax.f32 %v2411_v44, 0.0 }
 0x25c   : > { %v2412_v35 = vpop.f32.mrf.mxu1 }
 0x25d   : > { %v2413_v29 = vadd.f32 %v3003_v26, %v2412_v35 }
 0x25f   : > { %v2451_v17 = vmax.f32 %v2413_v29, 0.0 }
 0x261   : > { %v2466_v48 = vpack.c.bf16 %v2451_v17, %v2450_v7 }
 0x263   : > { %2905 = vmatmul.msk.bf16.vlgmr.msra.gmra.mxu2 %vm2196_vm1, %v2466_v48 }
 0x264   : > { %v2415_v58 = vpop.f32.mrf.mxu1 }
 0x265   : > { %v2416_v21 = vadd.f32 %v3003_v26, %v2415_v58 }
 0x267   : > { %v2452_v15 = vmax.f32 %v2416_v21, 0.0 }
 0x26c   : > { %v2417_v28 = vpop.f32.mrf.mxu1 }
 0x26d   : > { %v2418_v38 = vadd.f32 %v3003_v26, %v2417_v28 }
 0x26f   : > { %v2453_v3 = vmax.f32 %v2418_v38, 0.0 }
 0x271   : > { %v2467_v1 = vpack.c.bf16 %v2453_v3, %v2452_v15 }
 0x273   : > { %2906 = vmatmul.msk.bf16.gmra.mxu2 %vm2196_vm1, %v2467_v1 }
 0x274   : > { %v2420_v45 = vpop.f32.mrf.mxu1 }
 0x275   : > { %v2421_v41 = vadd.f32 %v3003_v26, %v2420_v45 }
 0x277   : > { %v2454_v60 = vmax.f32 %v2421_v41, 0.0 }
 0x27c   : > { %v2422_v54 = vpop.f32.mrf.mxu1 }
 0x27d   : > { %v2423_v53 = vadd.f32 %v3003_v26, %v2422_v54 }
 0x27f   : > { %v2455_v52 = vmax.f32 %v2423_v53, 0.0 }
 0x281   : > { %v2468_v9 = vpack.c.bf16 %v2455_v52, %v2454_v60 }
 0x283   : > { %2907 = vmatmul.msk.bf16.gmra.mxu2 %vm2196_vm1, %v2468_v9 }
 0x284   : > { %v2425_v56 = vpop.f32.mrf.mxu1 }
 0x285   : > { %v2426_v51 = vadd.f32 %v3003_v26, %v2425_v56 }
 0x287   : > { %v2456_v13 = vmax.f32 %v2426_v51, 0.0 }
 0x28c   : > { %v2427_v19 = vpop.f32.mrf.mxu1 }
 0x28d   : > { %v2428_v46 = vadd.f32 %v3003_v26, %v2427_v19 }
 0x28f   : > { %v2457_v37 = vmax.f32 %v2428_v46, 0.0 }
 0x291   : > { %v2469_v49 = vpack.c.bf16 %v2457_v37, %v2456_v13 }
 0x293   : > { %2908 = vmatmul.msk.bf16.gmra.mxu2 %vm2196_vm1, %v2469_v49 }
 0x294   : > { %v2430_v18 = vpop.f32.mrf.mxu1 }
 0x295   : > { %v2431_v39 = vadd.f32 %v3003_v26, %v2430_v18 }
 0x297   : > { %v2458_v34 = vmax.f32 %v2431_v39, 0.0 }
 0x29c   : > { %v2432_v8 = vpop.f32.mrf.mxu1 }
 0x29d   : > { %v2433_v23 = vadd.f32 %v3003_v26, %v2432_v8 }
 0x29e   : > { %v2440_v14 = vpop.f32.mrf.mxu3 }
 0x29f   : > { %v2459_v33 = vmax.f32 %v2433_v23, 0.0  ;;  %v2441_v42 = vadd.f32 %v3003_v26, %v2440_v14 }
 0x2a1   : > { %v2470_v2 = vpack.c.bf16 %v2459_v33, %v2458_v34  ;;  %v2462_v10 = vmax.f32 %v2441_v42, 0.0 }
 0x2a3   : > { %2909 = vmatmul.msk.bf16.gmra.mxu2 %vm2196_vm1, %v2470_v2 }
 0x2a6   : > { %v2442_v31 = vpop.f32.mrf.mxu3 }
 0x2a7   : > { %v2443_v11 = vadd.f32 %v3003_v26, %v2442_v31 }
 0x2a9   : > { %v2463_v20 = vmax.f32 %v2443_v11, 0.0 }
 0x2ab   : > { %v2472_v0 = vpack.c.bf16 %v2463_v20, %v2462_v10 }
 0x2b1   : > { %v2435_v63 = vpop.f32.mrf.mxu1 }
 0x2b2   : > { %v2436_v57 = vadd.f32 %v3003_v26, %v2435_v63 }
 0x2b4   : > { %v2460_v5 = vmax.f32 %v2436_v57, 0.0 }
 0x2b9   : > { %v2437_v25 = vpop.f32.mrf.mxu1 }
 0x2ba   : > { %v2438_v6 = vadd.f32 %v3003_v26, %v2437_v25 }
 0x2bc   : > { %v2461_v32 = vmax.f32 %v2438_v6, 0.0 }
 0x2be   : > { %v2471_v27 = vpack.c.bf16 %v2461_v32, %v2460_v5 }
 0x2c0   : > { %2910 = vmatmul.msk.bf16.gmra.mxu2 %vm2196_vm1, %v2471_v27 }
 0x2c6   : > { %v2445_v30 = vpop.f32.mrf.mxu3 }
 0x2c7   : > { %v2446_v36 = vadd.f32 %v3003_v26, %v2445_v30 }
 0x2c9   : > { %v2464_v40 = vmax.f32 %v2446_v36, 0.0 }
 0x2ce   : > { %v2447_v4 = vpop.f32.mrf.mxu3 }
 0x2cf   : > { %v2448_v55 = vadd.f32 %v3003_v26, %v2447_v4 }
 0x2d0   : > { %2911 = vmatmul.msk.bf16.gmra.mxu2 %vm2196_vm1, %v2472_v0 }
 0x2d1   : > { %v2465_v59 = vmax.f32 %v2448_v55, 0.0 }
 0x2d3   : > { %v2473_v61 = vpack.c.bf16 %v2465_v59, %v2464_v40 }
 0x2d5   : > { %2912 = vmatmul.msk.bf16.vlgmr.msra.gmra.mxu3 %vm2196_vm1, %v2473_v61 }
 0x2e6   : > { %v2515_v24 = vpop.f32.mrf.mxu2 }
 0x2e7   : > { %v2516_v43 = vadd.f32 %v4160_v62, %v2515_v24 }
 0x2e9   : > { %v2555_v47 = vmax.f32 %v2516_v43, 0.0 }
 0x2eb   : > { %2571 = vst.msk [vmem:[%s4166_s22] sm:$0xff] %vm2196_vm1, %v2555_v47 }
 0x2ee   : > { %v2517_v16 = vpop.f32.mrf.mxu2 }
 0x2ef   : > { %v2518_v50 = vadd.f32 %v4160_v62, %v2517_v16 }
 0x2f1   : > { %v2556_v22 = vmax.f32 %v2518_v50, 0.0 }
 0x2f3   : > { %2572 = vst.msk [vmem:[%s4166_s22 + $0x8] sm:$0xff] %vm2196_vm1, %v2556_v22 }
 0x2f6   : > { %v2520_v12 = vpop.f32.mrf.mxu2 }
 0x2f7   : > { %v2521_v26 = vadd.f32 %v4160_v62, %v2520_v12 }
 0x2f9   : > { %v2557_v44 = vmax.f32 %v2521_v26, 0.0 }
 0x2fb   : > { %2573 = vst.msk [vmem:[%s4166_s22 + $0x10] sm:$0xff] %vm2196_vm1, %v2557_v44 }
 0x2fe   : > { %v2522_v35 = vpop.f32.mrf.mxu2 }
 0x2ff   : > { %v2523_v29 = vadd.f32 %v4160_v62, %v2522_v35 }
 0x301   : > { %v2558_v7 = vmax.f32 %v2523_v29, 0.0 }
 0x303   : > { %2574 = vst.msk [vmem:[%s4166_s22 + $0x18] sm:$0xff] %vm2196_vm1, %v2558_v7 }
 0x306   : > { %v2525_v17 = vpop.f32.mrf.mxu2 }
 0x307   : > { %v2526_v48 = vadd.f32 %v4160_v62, %v2525_v17 }
 0x309   : > { %v2559_v58 = vmax.f32 %v2526_v48, 0.0 }
 0x30b   : > { %2575 = vst.msk [vmem:[%s4166_s22 + $0x20] sm:$0xff] %vm2196_vm1, %v2559_v58 }
 0x30e   : > { %v2527_v21 = vpop.f32.mrf.mxu2 }
 0x30f   : > { %v2528_v28 = vadd.f32 %v4160_v62, %v2527_v21 }
 0x311   : > { %v2560_v38 = vmax.f32 %v2528_v28, 0.0 }
 0x313   : > { %2576 = vst.msk [vmem:[%s4166_s22 + $0x28] sm:$0xff] %vm2196_vm1, %v2560_v38 }
 0x316   : > { %v2530_v15 = vpop.f32.mrf.mxu2 }
 0x317   : > { %v2531_v3 = vadd.f32 %v4160_v62, %v2530_v15 }
 0x319   : > { %v2561_v1 = vmax.f32 %v2531_v3, 0.0 }
 0x31b   : > { %2577 = vst.msk [vmem:[%s4166_s22 + $0x30] sm:$0xff] %vm2196_vm1, %v2561_v1 }
 0x31e   : > { %v2532_v45 = vpop.f32.mrf.mxu2 }
 0x31f   : > { %v2533_v41 = vadd.f32 %v4160_v62, %v2532_v45 }
 0x321   : > { %v2562_v54 = vmax.f32 %v2533_v41, 0.0 }
 0x323   : > { %2578 = vst.msk [vmem:[%s4166_s22 + $0x38] sm:$0xff] %vm2196_vm1, %v2562_v54 }
 0x326   : > { %v2535_v53 = vpop.f32.mrf.mxu2 }
 0x327   : > { %v2536_v60 = vadd.f32 %v4160_v62, %v2535_v53 }
 0x329   : > { %v2563_v52 = vmax.f32 %v2536_v60, 0.0 }
 0x32b   : > { %2579 = vst.msk [vmem:[%s4166_s22 + $0x40] sm:$0xff] %vm2196_vm1, %v2563_v52 }
 0x32e   : > { %v2537_v9 = vpop.f32.mrf.mxu2 }
 0x32f   : > { %v2538_v56 = vadd.f32 %v4160_v62, %v2537_v9 }
 0x331   : > { %v2564_v51 = vmax.f32 %v2538_v56, 0.0 }
 0x333   : > { %2580 = vst.msk [vmem:[%s4166_s22 + $0x48] sm:$0xff] %vm2196_vm1, %v2564_v51 }
 0x343   : > { %v2540_v19 = vpop.f32.mrf.mxu2 }
 0x344   : > { %v2541_v46 = vadd.f32 %v4160_v62, %v2540_v19 }
 0x346   : > { %v2565_v13 = vmax.f32 %v2541_v46, 0.0 }
 0x348   : > { %2581 = vst.msk [vmem:[%s4166_s22 + $0x50] sm:$0xff] %vm2196_vm1, %v2565_v13 }
 0x34b   : > { %v2542_v37 = vpop.f32.mrf.mxu2 }
 0x34c   : > { %v2543_v49 = vadd.f32 %v4160_v62, %v2542_v37 }
 0x34e   : > { %v2566_v18 = vmax.f32 %v2543_v49, 0.0 }
 0x350   : > { %2582 = vst.msk [vmem:[%s4166_s22 + $0x58] sm:$0xff] %vm2196_vm1, %v2566_v18 }
 0x353   : > { %v2545_v39 = vpop.f32.mrf.mxu2 }
 0x354   : > { %v2546_v8 = vadd.f32 %v4160_v62, %v2545_v39 }
 0x356   : > { %v2567_v23 = vmax.f32 %v2546_v8, 0.0 }
 0x358   : > { %2583 = vst.msk [vmem:[%s4166_s22 + $0x60] sm:$0xff] %vm2196_vm1, %v2567_v23  ;;  %v2550_v34 = vpop.f32.mrf.mxu3 }
 0x359   : > { %v2551_v33 = vadd.f32 %v4160_v62, %v2550_v34 }
 0x35b   : > { %v2569_v2 = vmax.f32 %v2551_v33, 0.0  ;;  %v2547_v63 = vpop.f32.mrf.mxu2 }
 0x35c   : > { %v2548_v14 = vadd.f32 %v4160_v62, %v2547_v63 }
 0x35d   : > { %2585 = vst.msk [vmem:[%s4166_s22 + $0x70] sm:$0xff] %vm2196_vm1, %v2569_v2 }
 0x35e   : > { %v2568_v57 = vmax.f32 %v2548_v14, 0.0 }
 0x360   : > { %2584 = vst.msk [vmem:[%s4166_s22 + $0x68] sm:$0xff] %vm2196_vm1, %v2568_v57  ;;  %v2552_v25 = vpop.f32.mrf.mxu3 }
 0x361   : > { %v2553_v6 = vadd.f32 %v4160_v62, %v2552_v25 }
 0x363   : > { %v2570_v5 = vmax.f32 %v2553_v6, 0.0 }
 0x365   : > { %2586 = vst.msk [vmem:[%s4166_s22 + $0x78] sm:$0xff] %vm2196_vm1, %v2570_v5 }
 0x366 PF: > { %s17_s28 = sadd.s32 1, %s3043_s28   ;;  %s4250_s24 = smov %s3035_s26 }
 0x367   : > { %p14_p9 = scmp.ge.s32.totalorder %s17_s28, 6   ;;  %s4251_s25 = smov %s3039_s27 }
 0x368   : > { %s4252_s26 = smov %s4255_s29  ;;  %s4253_s27 = smov %s4259_s30 }
 0x369   :  { %16 = sbr.rel (!%p14_p9) target bundleno = 3 (0x3), region = 84 }

// kernel: tpu_custom_call.1
= control target key start
LH: loop header
LB: loop body
LE: loop exit
PB: predicated region body
PF: predicated region fallthrough
CT: control target
= control target key end

     0   :  { %s3094_s24 = smov 0   ;;  %s3096_s25 = smov 0   ;;  %s4230_s0 = inlined_call_operand.vmem [shape: f32[2,16,16,4], index: 0, kind: input, shape index: {}]   ;;  %s4231_s1 = inlined_call_operand.vmem [shape: bf16[4,8], index: 1, kind: input, shape index: {}]   ;;  %s4232_s2 = inlined_call_operand.vmem [shape: f32[1,8], index: 2, kind: input, shape index: {}]   ;;  %s4233_s3 = inlined_call_operand.vmem [shape: bf16[72,8], index: 3, kind: input, shape index: {}]   ;;  %s4234_s4 = inlined_call_operand.vmem [shape: f32[1,8], index: 4, kind: input, shape index: {}]   ;;  %s4235_s5 = inlined_call_operand.vmem [shape: bf16[8,8], index: 5, kind: input, shape index: {}]   ;;  %s4236_s6 = inlined_call_operand.vmem [shape: f32[1,8], index: 6, kind: input, shape index: {}]   ;;  %s4237_s7 = inlined_call_operand.vmem [shape: f32[2,16,16,8], index: 7, kind: output, shape index: {}]  }
   0x1   :  { %s3098_s26 = smov 0   ;;  %s3100_s27 = smov 0  }
   0x2   :  { %s3102_s28 = smov 0  }
   0x3 LB: > { %s26_s29 = sadd.s32 1, %s3035_s26  ;;  %s29_s30 = sadd.s32 1, %s3039_s27  ;;  %s3043_s28 = sphi %s3102_s28, %s17_s28   ;;  %s3039_s27 = sphi %s3100_s27, %s4253_s27   ;;  %s3035_s26 = sphi %s3098_s26, %s4252_s26   ;;  %s3031_s25 = sphi %s3096_s25, %s4251_s25   ;;  %s3027_s24 = sphi %s3094_s24, %s4250_s24  }
   0x4   : > { %p27_p0 = scmp.ge.s32.totalorder %s26_s29, 2  ;;  %p2686_p1 = scmp.ge.s32.totalorder %s3043_s28, 1 }
   0x5   : > { %p251_p2 = scmp.lt.s32.totalorder %s3043_s28, 5 }
   0x6   : > { %s4255_s29 = smov (%p27_p0, %s26_s29), 0  ;;  %s4257_s30 = smov (!%p27_p0, %s29_s30), %s3039_s27 }
   0x7   : > { %p252_p3 = pnand %p2686_p1, %p251_p2  ;;  %p31_p4 = scmp.ge.s32.totalorder %s4257_s30, 2 }
   0x8   : > { %p288_p5 = scmp.lt.s32.totalorder (!%p252_p3), %s3031_s25, 1  ;;  %s3127_s10 = sshll.u32 (!%p252_p3), %s3027_s24, 3 }
   0x9   : > { %s4259_s30 = smov (%p31_p4, %s4257_s30), 0  ;;  %255 = sbr.rel (%p252_p3) target bundleno = 870 (0x366), region = 48 }
   0xa   : > { %s3130_s11 = sadd.s32 (!%p252_p3), 4294967295, %s3127_s10  ;;  %s3046_s24 = smov (!%p252_p3), 48  }
   0xb   : > { %p307_p6 = scmp.gt.s32.totalorder (!%p252_p3), %s3130_s11, 0  ;;  %p2695_p7 = scmp.lt.s32.totalorder (!%p252_p3), %s3130_s11, 6 }
   0xc   : > { %s3047_s8 = smov (!%p252_p3), 24   ;;  %s3048_s9 = smov (!%p252_p3), 16  }
   0xd   : > { %s3052_s14 = smov (!%p252_p3), 32   ;;  %s3053_s15 = smov (!%p252_p3), 56  }
   0xe   : > { %v355_v0 = vld [vmem:[%s4231_s1] sm:$0x3]  ;;  %vm441_vm0 = vcmask 1041408   ;;  %s4261_s25 = smov (!%p288_p5, %s3031_s25), 1  ;;  %vm410_vm1 = vcmask 31744   ;;  %vm545_vm2 = vcmask 60416  }
   0xf   : > { %v443_v1 = vsel %vm441_vm0, %v355_v0, 0  ;;  %s2915_s12 = sshll.u32 %s4261_s25, 8  ;;  %vm548_vm3 = vcmask 57344   ;;  %vm555_vm4 = vsmask.f32 256  ;;  %vm1159_vm11 = vcmask 1042432  }
  0x10   : > { %452 = vmatpush.bf16.msra.mxu0 %v443_v1  ;;  %2946 = vmatpush.bf16.msra.mxu3 %v443_v1  ;;  %s308_s13 = scalar_select %p307_p6, %s3130_s11, 0  ;;  %vm3186_vm5 = vmand %vm548_vm3, %vm555_vm4  ;;  %vm593_vm6 = vsmask.f32 7938  ;;  %vm631_vm9 = vsmask.f32 4368  ;;  %vm1160_vm12 = vcmask 1046532  }
  0x11   : > { %s292_s16 = scalar_lea.vmem %s4230_s0, %s2915_s12  ;;  %vm3212_vm7 = vmand %vm548_vm3, %vm593_vm6  ;;  %s3050_s12 = smov 64   ;;  %vm932_vm14 = vsmask.f32 3328  ;;  %vm933_vm15 = vsmask.f32 7440 }
  0x12   : > { %s4263_s13 = smov (!%p2695_p7, %s308_s13), 6  ;;  %vm3256_vm8 = vmand %vm545_vm2, %vm593_vm6  ;;  %vm2397_vm6 = vcmask 1043456   ;;  %p296_p8 = scmp.lt.s32.totalorder %s3127_s10, 15 }
  0x13   : > { %s311_s17 = ssub.s32 %s4263_s13, %s3130_s11  ;;  %s2700_s18 = sshll.u32 %s4263_s13, 4  ;;  %vm3268_vm10 = vmor %vm555_vm4, %vm631_vm9  ;;  %vm2255_vm4 = vcmask 261120   ;;  %vm2323_vm9 = vcmask 523264  }
  0x14   : > { %s3146_s19 = scalar_lea.vmem %s292_s16, %s2700_s18  ;;  %s2637_s22 = smul.u32 12, %s311_s17  ;;  %vm3412_vm13 = vmor %vm1159_vm11, %vm1160_vm12 }
  0x15   : > { %v315_v2 = vld [vmem:[%s3146_s19] sm:$0xff]  ;;  %v316_v3 = vld [vmem:[%s3146_s19 + $0x8] sm:$0xff]  ;;  %v317_v9 = vld [vmem:[%s3146_s19 + $0x10] sm:$0xff]  ;;  %s3049_s11 = smov 40   ;;  %s3051_s13 = smov 8  }
  0x16   : > { %v335_v4 = vpack.c.bf16 %v315_v2, %v315_v2  ;;  %v336_v5 = vpack.c.bf16 %v316_v3, %v316_v3  ;;  %v318_v10 = vld [vmem:[%s3146_s19 + $0x18] sm:$0xff]  ;;  %v337_v11 = vpack.c.bf16 %v317_v9, %v317_v9  ;;  %v329_v15 = vld [vmem:[%s3146_s19 + $0x70] sm:$0xff]  ;;  %v319_v23 = vld [vmem:[%s3146_s19 + $0x20] sm:$0xff]  ;;  %s3260_s23 = scalar_lea.vmem [#allocation2], %s2637_s22  ;;  %s4265_s10 = smov (!%p296_p8, %s3127_s10), 15 }
  0x17   : > { %v338_v12 = vpack.c.bf16 %v318_v10, %v318_v10  ;;  %v330_v16 = vld [vmem:[%s3146_s19 + $0x78] sm:$0xff]  ;;  %v349_v17 = vpack.c.bf16 %v329_v15, %v329_v15  ;;  %v320_v24 = vld [vmem:[%s3146_s19 + $0x28] sm:$0xff]  ;;  %v339_v25 = vpack.c.bf16 %v319_v23, %v319_v23  ;;  %v331_v29 = vld [vmem:[%s3146_s19 + $0x80] sm:$0xff] }
  0x18   : > { %v380_v6 = vunpack.c.l.b16 %v335_v4  ;;  %v381_v7 = vunpack.c.l.b16 %v336_v5  ;;  %v382_v13 = vunpack.c.l.b16 %v337_v11  ;;  %v350_v18 = vpack.c.bf16 %v330_v16, %v330_v16  ;;  %v332_v30 = vld [vmem:[%s3146_s19 + $0x88] sm:$0xff]  ;;  %v321_v37 = vld [vmem:[%s3146_s19 + $0x30] sm:$0xff]  ;;  %v322_v38 = vld [vmem:[%s3146_s19 + $0x38] sm:$0xff] }
  0x19   : > { %v383_v14 = vunpack.c.l.b16 %v338_v12  ;;  %v394_v20 = vunpack.c.l.b16 %v349_v17  ;;  %v340_v26 = vpack.c.bf16 %v320_v24, %v320_v24  ;;  %v384_v27 = vunpack.c.l.b16 %v339_v25  ;;  %v333_v43 = vld [vmem:[%s3146_s19 + $0x90] sm:$0xff]  ;;  %v334_v44 = vld [vmem:[%s3146_s19 + $0x98] sm:$0xff]  ;;  %v323_v51 = vld [vmem:[%s3146_s19 + $0x40] sm:$0xff] }
  0x1a   : > { %v400_v8 = vpack.c.b16 %v381_v7, %v380_v6  ;;  %v395_v21 = vunpack.c.l.b16 %v350_v18  ;;  %v351_v31 = vpack.c.bf16 %v331_v29, %v331_v29  ;;  %v352_v32 = vpack.c.bf16 %v332_v30, %v332_v30  ;;  %v324_v52 = vld [vmem:[%s3146_s19 + $0x48] sm:$0xff]  ;;  %v325_v58 = vld [vmem:[%s3146_s19 + $0x50] sm:$0xff]  ;;  %v326_v59 = vld [vmem:[%s3146_s19 + $0x58] sm:$0xff] }
  0x1b   : > { %v401_v19 = vpack.c.b16 %v383_v14, %v382_v13  ;;  %v385_v28 = vunpack.c.l.b16 %v340_v26  ;;  %v341_v39 = vpack.c.bf16 %v321_v37, %v321_v37  ;;  %v342_v40 = vpack.c.bf16 %v322_v38, %v322_v38  ;;  %v327_v1 = vld [vmem:[%s3146_s19 + $0x60] sm:$0xff]  ;;  %v328_v2 = vld [vmem:[%s3146_s19 + $0x68] sm:$0xff]  ;;  %v563_v14 = vld [vmem:[#allocation2 + $0x18] sm:$0x1] }
  0x1c   : > { %2701 = vmatmul.msk.bf16.vlgmr.msra.gmra.mxu0 %vm410_vm1, %v400_v8  ;;  %v407_v22 = vpack.c.b16 %v395_v21, %v394_v20  ;;  %v396_v34 = vunpack.c.l.b16 %v351_v31  ;;  %v397_v35 = vunpack.c.l.b16 %v352_v32  ;;  %v353_v45 = vpack.c.bf16 %v333_v43, %v333_v43  ;;  %v557_v10 = vld [vmem:[#allocation2] sm:$0x1]  ;;  %v566_v15 = vld [vmem:[#allocation2 + $0x24] sm:$0x1]  ;;  %v569_v18 = vld [vmem:[#allocation2 + $0x30] sm:$0x1] }
  0x1d   : > { %v402_v33 = vpack.c.b16 %v385_v28, %v384_v27  ;;  %v386_v41 = vunpack.c.l.b16 %v341_v39  ;;  %v387_v42 = vunpack.c.l.b16 %v342_v40  ;;  %v354_v46 = vpack.c.bf16 %v334_v44, %v334_v44  ;;  %v572_v20 = vld [vmem:[#allocation2 + $0x3c] sm:$0x1]  ;;  %v578_v24 = vld [vmem:[#allocation2 + $0x54] sm:$0x1]  ;;  %v581_v26 = vld [vmem:[#allocation2 + $0x60] sm:$0x1] }
  0x1e   : > { %2708 = vmatmul.msk.bf16.vlgmr.msra.gmra.mxu3 %vm410_vm1, %v407_v22  ;;  %v408_v36 = vpack.c.b16 %v397_v35, %v396_v34  ;;  %v398_v48 = vunpack.c.l.b16 %v353_v45  ;;  %v343_v53 = vpack.c.bf16 %v323_v51, %v323_v51  ;;  %v344_v54 = vpack.c.bf16 %v324_v52, %v324_v52  ;;  %v575_v22 = vld [vmem:[#allocation2 + $0x48] sm:$0x1]  ;;  %v584_v28 = vld [vmem:[#allocation2 + $0x6c] sm:$0x1]  ;;  %v601_v39 = vld [vmem:[#allocation2 + $0x20] sm:$0x1] }
  0x1f   : > { %v403_v47 = vpack.c.b16 %v387_v42, %v386_v41  ;;  %v399_v49 = vunpack.c.l.b16 %v354_v46  ;;  %v345_v60 = vpack.c.bf16 %v325_v58, %v325_v58  ;;  %v346_v61 = vpack.c.bf16 %v326_v59, %v326_v59  ;;  %v595_v35 = vld [vmem:[#allocation2 + $0x8] sm:$0x1]  ;;  %v604_v41 = vld [vmem:[#allocation2 + $0x2c] sm:$0x1]  ;;  %v607_v43 = vld [vmem:[#allocation2 + $0x38] sm:$0x1] }
  0x20   : > { %v388_v55 = vunpack.c.l.b16 %v343_v53  ;;  %v389_v56 = vunpack.c.l.b16 %v344_v54  ;;  %v347_v3 = vpack.c.bf16 %v327_v1, %v327_v1  ;;  %v348_v4 = vpack.c.bf16 %v328_v2, %v328_v2  ;;  %v610_v45 = vld [vmem:[#allocation2 + $0x44] sm:$0x1]  ;;  %v619_v51 = vld [vmem:[#allocation2 + $0x68] sm:$0x1]  ;;  %v622_v53 = vld [vmem:[#allocation2 + $0x74] sm:$0x1] }
  0x21   : > { %v409_v50 = vpack.c.b16 %v399_v49, %v398_v48  ;;  %v390_v62 = vunpack.c.l.b16 %v345_v60  ;;  %v391_v63 = vunpack.c.l.b16 %v346_v61  ;;  %v3045_v7 = vmov 0   ;;  %v616_v49 = vld [vmem:[#allocation2 + $0x5c] sm:$0x1]  ;;  %v3247_v59 = vld [vmem:[%s4232_s2] ss:$0 sm:$0xff]  ;;  %vm3622_vm0 = vmor %vm932_vm14, %vm933_vm15 }
  0x22   : > { %v404_v57 = vpack.c.b16 %v389_v56, %v388_v55  ;;  %v392_v5 = vunpack.c.l.b16 %v347_v3  ;;  %v393_v6 = vunpack.c.l.b16 %v348_v4  ;;  %546 = vst.msk [vmem:[#allocation2 + $0xc] sm:$0xf] %vm545_vm2, %v3045_v7  ;;  %v558_v12 = vsel %vm3186_vm5, 0, %v557_v10 }
  0x23   : > { %v405_v0 = vpack.c.b16 %v391_v63, %v390_v62  ;;  %547 = vst.msk [vmem:[#allocation2 + $0x10] sm:$0xf] %vm545_vm2, %v3045_v7  ;;  %v564_v16 = vsel %vm3186_vm5, 0, %v563_v14  ;;  %v567_v17 = vsel %vm3186_vm5, 0, %v566_v15  ;;  %v573_v21 = vsel %vm3186_vm5, 0, %v572_v20 }
  0x24   : > { %549 = vst.msk [vmem:[#allocation2 + $0x14] sm:$0x1] %vm548_vm3, %v3045_v7  ;;  %v406_v8 = vpack.c.b16 %v393_v6, %v392_v5  ;;  %v576_v23 = vsel %vm3186_vm5, 0, %v575_v22  ;;  %v579_v25 = vsel %vm3186_vm5, 0, %v578_v24  ;;  %v582_v27 = vsel %vm3186_vm5, 0, %v581_v26 }
  0x25   : > { %551 = vst.msk [vmem:[#allocation2 + $0x78] sm:$0xf] %vm545_vm2, %v3045_v7  ;;  %v585_v29 = vsel %vm3186_vm5, 0, %v584_v28  ;;  %v602_v40 = vsel %vm3212_vm7, 0, %v601_v39  ;;  %v605_v42 = vsel %vm3212_vm7, 0, %v604_v41  ;;  %v608_v44 = vsel %vm3212_vm7, 0, %v607_v43 }
  0x26   : > { %552 = vst.msk [vmem:[#allocation2 + $0x7c] sm:$0xf] %vm545_vm2, %v3045_v7  ;;  %v611_v46 = vsel %vm3212_vm7, 0, %v610_v45  ;;  %v620_v52 = vsel %vm3212_vm7, 0, %v619_v51  ;;  %v623_v54 = vsel %vm3212_vm7, 0, %v622_v53 }
  0x27   : > { %553 = vst.msk [vmem:[#allocation2 + $0x80] sm:$0x1] %vm548_vm3, %v3045_v7  ;;  %vm2238_vm3 = vcmask 195584  }
  0x28   : > { %559 = vst [vmem:[#allocation2] sm:$0x1] %v558_v12 }
  0x29   : > { %v560_v11 = vld [vmem:[#allocation2 + $0xc] sm:$0x1]  ;;  %565 = vst [vmem:[#allocation2 + $0x18] sm:$0x1] %v564_v16 }
  0x2a   : > { %v561_v13 = vsel %vm3186_vm5, 0, %v560_v11  ;;  %568 = vst [vmem:[#allocation2 + $0x24] sm:$0x1] %v567_v17 }
  0x2b   : > { %562 = vst [vmem:[#allocation2 + $0xc] sm:$0x1] %v561_v13  ;;  %v598_v37 = vld [vmem:[#allocation2 + $0x14] sm:$0x1] }
  0x2c   : > { %2702 = vmatmul.msk.bf16.gmra.mxu0 %vm410_vm1, %v401_v19  ;;  %v570_v19 = vsel %vm3186_vm5, 0, %v569_v18  ;;  %574 = vst [vmem:[#allocation2 + $0x3c] sm:$0x1] %v573_v21  ;;  %v587_v30 = vld [vmem:[#allocation2 + $0x78] sm:$0x1]  ;;  %v599_v38 = vsel %vm3212_vm7, 0, %v598_v37 }
  0x2d   : > { %571 = vst [vmem:[#allocation2 + $0x30] sm:$0x1] %v570_v19  ;;  %v588_v32 = vsel %vm3186_vm5, 0, %v587_v30 }
  0x2e   : > { %2709 = vmatmul.msk.bf16.gmra.mxu3 %vm410_vm1, %v408_v36  ;;  %577 = vst [vmem:[#allocation2 + $0x48] sm:$0x1] %v576_v23  ;;  %v596_v36 = vsel %vm3212_vm7, 0, %v595_v35  ;;  %v625_v55 = vld [vmem:[#allocation2 + $0x80] sm:$0x1] }
  0x2f   : > { %580 = vst [vmem:[#allocation2 + $0x54] sm:$0x1] %v579_v25  ;;  %v626_v56 = vsel %vm3212_vm7, 0, %v625_v55 }
  0x30   : > { %583 = vst [vmem:[#allocation2 + $0x60] sm:$0x1] %v582_v27 }
  0x31   : > { %586 = vst [vmem:[#allocation2 + $0x6c] sm:$0x1] %v585_v29 }
  0x32   : > { %589 = vst [vmem:[#allocation2 + $0x78] sm:$0x1] %v588_v32 }
  0x33   : > { %597 = vst [vmem:[#allocation2 + $0x8] sm:$0x1] %v596_v36 }
  0x34   : > { %600 = vst [vmem:[#allocation2 + $0x14] sm:$0x1] %v599_v38 }
  0x35   : > { %603 = vst [vmem:[#allocation2 + $0x20] sm:$0x1] %v602_v40 }
  0x36   : > { %606 = vst [vmem:[#allocation2 + $0x2c] sm:$0x1] %v605_v42 }
  0x37   : > { %609 = vst [vmem:[#allocation2 + $0x38] sm:$0x1] %v608_v44 }
  0x38   : > { %612 = vst [vmem:[#allocation2 + $0x44] sm:$0x1] %v611_v46 }
  0x39   : > { %621 = vst [vmem:[#allocation2 + $0x68] sm:$0x1] %v620_v52 }
  0x3a   : > { %624 = vst [vmem:[#allocation2 + $0x74] sm:$0x1] %v623_v54 }
  0x3b   : > { %627 = vst [vmem:[#allocation2 + $0x80] sm:$0x1] %v626_v56 }
  0x3c   : > { %2703 = vmatmul.msk.bf16.gmra.mxu0 %vm410_vm1, %v402_v33  ;;  %v590_v33 = vld [vmem:[#allocation2 + $0x84] sm:$0x1] }
  0x3d   : > { %v591_v34 = vsel %vm3186_vm5, 0, %v590_v33 }
  0x3e   : > { %2710 = vmatmul.msk.bf16.gmra.mxu3 %vm410_vm1, %v409_v50  ;;  %592 = vst [vmem:[#allocation2 + $0x84] sm:$0x1] %v591_v34  ;;  %v617_v50 = vsel %vm3212_vm7, 0, %v616_v49 }
  0x3f   : > { %618 = vst [vmem:[#allocation2 + $0x5c] sm:$0x1] %v617_v50 }
  0x4c   : > { %2704 = vmatmul.msk.bf16.gmra.mxu0 %vm410_vm1, %v403_v47  ;;  %v613_v47 = vld [vmem:[#allocation2 + $0x50] sm:$0x1] }
  0x4d   : > { %v614_v48 = vsel %vm3212_vm7, 0, %v613_v47 }
  0x4e   : > { %615 = vst [vmem:[#allocation2 + $0x50] sm:$0x1] %v614_v48 }
  0x5c   : > { %2705 = vmatmul.msk.bf16.gmra.mxu0 %vm410_vm1, %v404_v57  ;;  %v628_v57 = vld [vmem:[#allocation2 + $0x8c] sm:$0x1] }
  0x5d   : > { %v629_v58 = vsel %vm3212_vm7, 0, %v628_v57  ;;  %vm2289_vm7 = vcmask 392192  }
  0x5e   : > { %630 = vst [vmem:[#allocation2 + $0x8c] sm:$0x1] %v629_v58 }
  0x65   : > { %v2711_v6 = vld [vmem:[%s3260_s23 + $0xc] sm:$0xf]  ;;  %v2714_v18 = vld [vmem:[%s3260_s23 + $0x14] sm:$0x1]  ;;  %v2716_v32 = vld [vmem:[%s3260_s23 + $0x18] sm:$0xf] }
  0x66   : > { %v2719_v46 = vld [vmem:[%s3260_s23 + $0x20] sm:$0x1] }
  0x6c   : > { %2706 = vmatmul.msk.bf16.gmra.mxu0 %vm410_vm1, %v405_v0 }
  0x7c   : > { %2707 = vmatmul.msk.bf16.gmra.mxu0 %vm410_vm1, %v406_v8  ;;  %vm2196_vm1 = vcmask 64512  }
  0x99   : > { %v454_v60 = vpop.f32.mrf.mxu0 }
  0x9a   : > { %v455_v61 = vadd.f32 %v3247_v59, %v454_v60 }
  0x9c   : > { %v504_v62 = vmax.f32 %v455_v61, 0.0 }
  0x9e   : > { %v524_v63 = vpack.c.bf16 %v504_v62, %v504_v62 }
  0xa0   : > { %v634_v0 = vshrl.u32 %v524_v63, 16  ;;  %v637_v3 = vshll.u32 %v524_v63, 16  ;;  %v2746_v63 = vld [vmem:[%s3260_s23 + $0x60] sm:$0xf] }
  0xa1   : > { %v456_v1 = vpop.f32.mrf.mxu0  ;;  %v489_v27 = vpop.f32.mrf.mxu3 }
  0xa2   : > { %v636_v2 = vrot.slane %v634_v0, 7  ;;  %v457_v4 = vadd.f32 %v3247_v59, %v456_v1  ;;  %v490_v37 = vadd.f32 %v3247_v59, %v489_v27 }
  0xa4   : > { %v639_v7 = vor.u32 %v637_v3, %v636_v2  ;;  %v505_v8 = vmax.f32 %v457_v4, 0.0  ;;  %v640_v19 = vrot.slane %v636_v2, 4  ;;  %v518_v41 = vmax.f32 %v490_v37, 0.0 }
  0xa6   : > { %v839_v10 = vsel %vm3256_vm8, %v639_v7, %v2711_v6  ;;  %v525_v11 = vpack.c.bf16 %v505_v8, %v505_v8  ;;  %v538_v47 = vpack.c.bf16 %v518_v41, %v518_v41 }
  0xa7   : > { %2712 = vst [vmem:[%s3260_s23 + $0xc] sm:$0xf] %v839_v10 }
  0xa8   : > { %v642_v12 = vshrl.u32 %v525_v11, 16  ;;  %v645_v15 = vshll.u32 %v525_v11, 16  ;;  %v753_v53 = vshrl.u32 %v538_v47, 16  ;;  %v756_v54 = vshll.u32 %v538_v47, 16  ;;  %v2749_v11 = vld [vmem:[%s3260_s23 + $0x68] sm:$0x1] }
  0xa9   : > { %v459_v13 = vpop.f32.mrf.mxu0  ;;  %v491_v39 = vpop.f32.mrf.mxu3 }
  0xaa   : > { %v644_v14 = vrot.slane %v642_v12, 7  ;;  %v460_v16 = vadd.f32 %v3247_v59, %v459_v13  ;;  %v492_v42 = vadd.f32 %v3247_v59, %v491_v39  ;;  %v755_v60 = vrot.slane %v753_v53, 7  ;;  %v2721_v12 = vld [vmem:[%s3260_s23 + $0x24] sm:$0xf] }
  0xac   : > { %v647_v20 = vor.u32 %v645_v15, %v644_v14  ;;  %v649_v21 = vrot.slane %v644_v14, 4  ;;  %v506_v22 = vmax.f32 %v460_v16, 0.0  ;;  %v519_v48 = vmax.f32 %v492_v42, 0.0 }
  0xad   : > { %v758_v3 = vor.u32 %v756_v54, %v755_v60  ;;  %v759_v4 = vrot.slane %v755_v60, 4  ;;  %v2726_v60 = vld [vmem:[%s3260_s23 + $0x30] sm:$0xf] }
  0xae   : > { %v648_v23 = vsel %vm3268_vm10, %v640_v19, %v647_v20  ;;  %v843_v24 = vsel %vm3186_vm5, %v649_v21, %v2714_v18  ;;  %v526_v25 = vpack.c.bf16 %v506_v22, %v506_v22  ;;  %v539_v55 = vpack.c.bf16 %v519_v48, %v519_v48  ;;  %v2751_v48 = vld [vmem:[%s3260_s23 + $0x6c] sm:$0xf] }
  0xaf   : > { %2713 = vst.msk [vmem:[%s3260_s23 + $0x10] sm:$0xf] %vm545_vm2, %v648_v23  ;;  %v888_v13 = vsel %vm3256_vm8, %v758_v3, %v2746_v63 }
  0xb0   : > { %2715 = vst [vmem:[%s3260_s23 + $0x14] sm:$0x1] %v843_v24  ;;  %v651_v26 = vshrl.u32 %v526_v25, 16  ;;  %v654_v30 = vshll.u32 %v526_v25, 16  ;;  %v761_v61 = vshrl.u32 %v539_v55, 16  ;;  %v764_v0 = vshll.u32 %v539_v55, 16 }
  0xb1   : > { %v461_v28 = vpop.f32.mrf.mxu0  ;;  %v494_v1 = vpop.f32.mrf.mxu3  ;;  %2747 = vst [vmem:[%s3260_s23 + $0x60] sm:$0xf] %v888_v13 }
  0xb2   : > { %v653_v29 = vrot.slane %v651_v26, 7  ;;  %v462_v31 = vadd.f32 %v3247_v59, %v461_v28  ;;  %v763_v6 = vrot.slane %v761_v61, 7  ;;  %v495_v23 = vadd.f32 %v3247_v59, %v494_v1 }
  0xb4   : > { %v656_v33 = vor.u32 %v654_v30, %v653_v29  ;;  %v507_v34 = vmax.f32 %v462_v31, 0.0  ;;  %v657_v49 = vrot.slane %v653_v29, 4  ;;  %v766_v14 = vor.u32 %v764_v0, %v763_v6 }
  0xb5   : > { %v768_v15 = vrot.slane %v763_v6, 4  ;;  %v520_v27 = vmax.f32 %v495_v23, 0.0 }
  0xb6   : > { %v846_v35 = vsel %vm3256_vm8, %v656_v33, %v2716_v32  ;;  %v527_v36 = vpack.c.bf16 %v507_v34, %v507_v34  ;;  %v767_v19 = vsel %vm3268_vm10, %v759_v4, %v766_v14  ;;  %v2724_v32 = vld [vmem:[%s3260_s23 + $0x2c] sm:$0x1] }
  0xb7   : > { %2717 = vst [vmem:[%s3260_s23 + $0x18] sm:$0xf] %v846_v35  ;;  %v892_v20 = vsel %vm3186_vm5, %v768_v15, %v2749_v11  ;;  %v540_v33 = vpack.c.bf16 %v520_v27, %v520_v27 }
  0xb8   : > { %v659_v38 = vshrl.u32 %v527_v36, 16  ;;  %v662_v44 = vshll.u32 %v527_v36, 16  ;;  %2748 = vst.msk [vmem:[%s3260_s23 + $0x64] sm:$0xf] %vm545_vm2, %v767_v19 }
  0xb9   : > { %v464_v40 = vpop.f32.mrf.mxu0  ;;  %2750 = vst [vmem:[%s3260_s23 + $0x68] sm:$0x1] %v892_v20  ;;  %v496_v25 = vpop.f32.mrf.mxu3  ;;  %v770_v39 = vshrl.u32 %v540_v33, 16 }
  0xba   : > { %v661_v43 = vrot.slane %v659_v38, 7  ;;  %v465_v45 = vadd.f32 %v3247_v59, %v464_v40  ;;  %v497_v28 = vadd.f32 %v3247_v59, %v496_v25  ;;  %v773_v40 = vshll.u32 %v540_v33, 16 }
  0xbc   : > { %v664_v50 = vor.u32 %v662_v44, %v661_v43  ;;  %v666_v51 = vrot.slane %v661_v43, 4  ;;  %v508_v52 = vmax.f32 %v465_v45, 0.0  ;;  %v521_v34 = vmax.f32 %v497_v28, 0.0 }
  0xbd   : > { %v772_v45 = vrot.slane %v770_v39, 7 }
  0xbe   : > { %v665_v56 = vsel %vm3268_vm10, %v657_v49, %v664_v50  ;;  %v850_v57 = vsel %vm3186_vm5, %v666_v51, %v2719_v46  ;;  %v528_v58 = vpack.c.bf16 %v508_v52, %v508_v52  ;;  %v541_v41 = vpack.c.bf16 %v521_v34, %v521_v34  ;;  %v2756_v34 = vld [vmem:[%s3260_s23 + $0x78] sm:$0xf] }
  0xbf   : > { %2718 = vst.msk [vmem:[%s3260_s23 + $0x1c] sm:$0xf] %vm545_vm2, %v665_v56  ;;  %v775_v52 = vor.u32 %v773_v40, %v772_v45  ;;  %v776_v53 = vrot.slane %v772_v45, 4 }
  0xc0   : > { %2720 = vst [vmem:[%s3260_s23 + $0x20] sm:$0x1] %v850_v57  ;;  %v668_v62 = vshrl.u32 %v528_v58, 16  ;;  %v671_v8 = vshll.u32 %v528_v58, 16  ;;  %v778_v46 = vshrl.u32 %v541_v41, 16  ;;  %v781_v49 = vshll.u32 %v541_v41, 16 }
  0xc1   : > { %v466_v2 = vpop.f32.mrf.mxu0  ;;  %v499_v50 = vpop.f32.mrf.mxu3  ;;  %v2754_v58 = vld [vmem:[%s3260_s23 + $0x74] sm:$0x1]  ;;  %v895_v61 = vsel %vm3256_vm8, %v775_v52, %v2751_v48 }
  0xc2   : > { %v670_v7 = vrot.slane %v668_v62, 7  ;;  %v467_v10 = vadd.f32 %v3247_v59, %v466_v2  ;;  %v780_v54 = vrot.slane %v778_v46, 7  ;;  %2752 = vst [vmem:[%s3260_s23 + $0x6c] sm:$0xf] %v895_v61 }
  0xc4   : > { %v673_v16 = vor.u32 %v671_v8, %v670_v7  ;;  %v509_v18 = vmax.f32 %v467_v10, 0.0  ;;  %v674_v35 = vrot.slane %v670_v7, 4  ;;  %v783_v62 = vor.u32 %v781_v49, %v780_v54 }
  0xc5   : > { %v785_v63 = vrot.slane %v780_v54, 4  ;;  %v500_v7 = vadd.f32 %v3247_v59, %v499_v50 }
  0xc6   : > { %v853_v21 = vsel %vm3256_vm8, %v673_v16, %v2721_v12  ;;  %v529_v22 = vpack.c.bf16 %v509_v18, %v509_v18  ;;  %v784_v2 = vsel %vm3268_vm10, %v776_v53, %v783_v62  ;;  %v2729_v18 = vld [vmem:[%s3260_s23 + $0x38] sm:$0x1] }
  0xc7   : > { %2722 = vst [vmem:[%s3260_s23 + $0x24] sm:$0xf] %v853_v21  ;;  %v899_v3 = vsel %vm3186_vm5, %v785_v63, %v2754_v58  ;;  %v522_v12 = vmax.f32 %v500_v7, 0.0 }
  0xc8   : > { %v676_v24 = vshrl.u32 %v529_v22, 16  ;;  %v679_v30 = vshll.u32 %v529_v22, 16  ;;  %2753 = vst.msk [vmem:[%s3260_s23 + $0x70] sm:$0xf] %vm545_vm2, %v784_v2 }
  0xc9   : > { %v469_v26 = vpop.f32.mrf.mxu0  ;;  %2755 = vst [vmem:[%s3260_s23 + $0x74] sm:$0x1] %v899_v3  ;;  %v501_v10 = vpop.f32.mrf.mxu3  ;;  %v542_v19 = vpack.c.bf16 %v522_v12, %v522_v12 }
  0xca   : > { %v678_v29 = vrot.slane %v676_v24, 7  ;;  %v470_v31 = vadd.f32 %v3247_v59, %v469_v26  ;;  %v502_v13 = vadd.f32 %v3247_v59, %v501_v10 }
  0xcb   : > { %v787_v25 = vshrl.u32 %v542_v19, 16  ;;  %v790_v26 = vshll.u32 %v542_v19, 16 }
  0xcc   : > { %v681_v36 = vor.u32 %v679_v30, %v678_v29  ;;  %v683_v37 = vrot.slane %v678_v29, 4  ;;  %v510_v38 = vmax.f32 %v470_v31, 0.0  ;;  %v523_v20 = vmax.f32 %v502_v13, 0.0 }
  0xcd   : > { %v789_v31 = vrot.slane %v787_v25, 7 }
  0xce   : > { %v682_v42 = vsel %vm3268_vm10, %v674_v35, %v681_v36  ;;  %v857_v43 = vsel %vm3186_vm5, %v683_v37, %v2724_v32  ;;  %v530_v44 = vpack.c.bf16 %v510_v38, %v510_v38  ;;  %v543_v27 = vpack.c.bf16 %v523_v20, %v523_v20 }
  0xcf   : > { %2723 = vst.msk [vmem:[%s3260_s23 + $0x28] sm:$0xf] %vm545_vm2, %v682_v42  ;;  %v792_v37 = vor.u32 %v790_v26, %v789_v31  ;;  %v793_v38 = vrot.slane %v789_v31, 4 }
  0xd0   : > { %2725 = vst [vmem:[%s3260_s23 + $0x2c] sm:$0x1] %v857_v43  ;;  %v685_v47 = vshrl.u32 %v530_v44, 16  ;;  %v688_v56 = vshll.u32 %v530_v44, 16  ;;  %v795_v32 = vshrl.u32 %v543_v27, 16  ;;  %v798_v35 = vshll.u32 %v543_v27, 16 }
  0xd1   : > { %v471_v51 = vpop.f32.mrf.mxu0  ;;  %v2759_v43 = vld [vmem:[%s3260_s23 + $0x80] sm:$0x1]  ;;  %v2731_v44 = vld [vmem:[%s3260_s23 + $0x3c] sm:$0xf]  ;;  %v902_v45 = vsel %vm3256_vm8, %v792_v37, %v2756_v34 }
  0xd2   : > { %v687_v55 = vrot.slane %v685_v47, 7  ;;  %v472_v57 = vadd.f32 %v3247_v59, %v471_v51  ;;  %v797_v39 = vrot.slane %v795_v32, 7  ;;  %2757 = vst [vmem:[%s3260_s23 + $0x78] sm:$0xf] %v902_v45 }
  0xd4   : > { %v690_v0 = vor.u32 %v688_v56, %v687_v55  ;;  %v511_v1 = vmax.f32 %v472_v57, 0.0  ;;  %v691_v21 = vrot.slane %v687_v55, 4  ;;  %v800_v46 = vor.u32 %v798_v35, %v797_v39  ;;  %v2741_v35 = vld [vmem:[%s3260_s23 + $0x54] sm:$0xf] }
  0xd5   : > { %v802_v47 = vrot.slane %v797_v39, 4 }
  0xd6   : > { %v860_v4 = vsel %vm3256_vm8, %v690_v0, %v2726_v60  ;;  %v531_v6 = vpack.c.bf16 %v511_v1, %v511_v1  ;;  %v801_v50 = vsel %vm3268_vm10, %v793_v38, %v800_v46  ;;  %v2734_v60 = vld [vmem:[%s3260_s23 + $0x44] sm:$0x1] }
  0xd7   : > { %2727 = vst [vmem:[%s3260_s23 + $0x30] sm:$0xf] %v860_v4  ;;  %v906_v51 = vsel %vm3186_vm5, %v802_v47, %v2759_v43  ;;  %v2744_v43 = vld [vmem:[%s3260_s23 + $0x5c] sm:$0x1] }
  0xd8   : > { %v693_v8 = vshrl.u32 %v531_v6, 16  ;;  %v696_v15 = vshll.u32 %v531_v6, 16  ;;  %2758 = vst.msk [vmem:[%s3260_s23 + $0x7c] sm:$0xf] %vm545_vm2, %v801_v50 }
  0xd9   : > { %v474_v11 = vpop.f32.mrf.mxu0  ;;  %2760 = vst [vmem:[%s3260_s23 + $0x80] sm:$0x1] %v906_v51 }
  0xda   : > { %v695_v14 = vrot.slane %v693_v8, 7  ;;  %v475_v16 = vadd.f32 %v3247_v59, %v474_v11  ;;  %v2736_v11 = vld [vmem:[%s3260_s23 + $0x48] sm:$0xf] }
  0xdc   : > { %v698_v22 = vor.u32 %v696_v15, %v695_v14  ;;  %v700_v23 = vrot.slane %v695_v14, 4  ;;  %v512_v24 = vmax.f32 %v475_v16, 0.0 }
  0xde   : > { %v699_v28 = vsel %vm3268_vm10, %v691_v21, %v698_v22  ;;  %v864_v29 = vsel %vm3186_vm5, %v700_v23, %v2729_v18  ;;  %v532_v30 = vpack.c.bf16 %v512_v24, %v512_v24  ;;  %v2739_v22 = vld [vmem:[%s3260_s23 + $0x50] sm:$0x1] }
  0xdf   : > { %2728 = vst.msk [vmem:[%s3260_s23 + $0x34] sm:$0xf] %vm545_vm2, %v699_v28 }
  0xe0   : > { %2730 = vst [vmem:[%s3260_s23 + $0x38] sm:$0x1] %v864_v29  ;;  %v702_v33 = vshrl.u32 %v532_v30, 16  ;;  %v705_v41 = vshll.u32 %v532_v30, 16 }
  0xe1   : > { %v476_v36 = vpop.f32.mrf.mxu0 }
  0xe2   : > { %v704_v40 = vrot.slane %v702_v33, 7  ;;  %v477_v42 = vadd.f32 %v3247_v59, %v476_v36 }
  0xe4   : > { %v707_v48 = vor.u32 %v705_v41, %v704_v40  ;;  %v513_v49 = vmax.f32 %v477_v42, 0.0  ;;  %v708_v61 = vrot.slane %v704_v40, 4 }
  0xe6   : > { %v867_v52 = vsel %vm3256_vm8, %v707_v48, %v2731_v44  ;;  %v533_v53 = vpack.c.bf16 %v513_v49, %v513_v49 }
  0xe7   : > { %2732 = vst [vmem:[%s3260_s23 + $0x3c] sm:$0xf] %v867_v52 }
  0xe8   : > { %v710_v54 = vshrl.u32 %v533_v53, 16  ;;  %v713_v57 = vshll.u32 %v533_v53, 16 }
  0xe9   : > { %v479_v55 = vpop.f32.mrf.mxu0 }
  0xea   : > { %v712_v56 = vrot.slane %v710_v54, 7  ;;  %v480_v58 = vadd.f32 %v3247_v59, %v479_v55 }
  0xec   : > { %v715_v62 = vor.u32 %v713_v57, %v712_v56  ;;  %v717_v63 = vrot.slane %v712_v56, 4  ;;  %v514_v0 = vmax.f32 %v480_v58, 0.0 }
  0xee   : > { %v716_v1 = vsel %vm3268_vm10, %v708_v61, %v715_v62  ;;  %v871_v2 = vsel %vm3186_vm5, %v717_v63, %v2734_v60  ;;  %v534_v3 = vpack.c.bf16 %v514_v0, %v514_v0 }
  0xef   : > { %2733 = vst.msk [vmem:[%s3260_s23 + $0x40] sm:$0xf] %vm545_vm2, %v716_v1 }
  0xf0   : > { %2735 = vst [vmem:[%s3260_s23 + $0x44] sm:$0x1] %v871_v2  ;;  %v719_v4 = vshrl.u32 %v534_v3, 16  ;;  %v722_v8 = vshll.u32 %v534_v3, 16 }
  0xf1   : > { %v481_v6 = vpop.f32.mrf.mxu0 }
  0xf2   : > { %v721_v7 = vrot.slane %v719_v4, 7  ;;  %v482_v10 = vadd.f32 %v3247_v59, %v481_v6 }
  0xf4   : > { %v724_v12 = vor.u32 %v722_v8, %v721_v7  ;;  %v515_v13 = vmax.f32 %v482_v10, 0.0  ;;  %v725_v23 = vrot.slane %v721_v7, 4 }
  0xf6   : > { %v874_v14 = vsel %vm3256_vm8, %v724_v12, %v2736_v11  ;;  %v535_v15 = vpack.c.bf16 %v515_v13, %v515_v13 }
  0xf7   : > { %2737 = vst [vmem:[%s3260_s23 + $0x48] sm:$0xf] %v874_v14 }
  0xf8   : > { %v727_v16 = vshrl.u32 %v535_v15, 16  ;;  %v730_v20 = vshll.u32 %v535_v15, 16 }
  0xf9   : > { %v484_v18 = vpop.f32.mrf.mxu0 }
  0xfa   : > { %v729_v19 = vrot.slane %v727_v16, 7  ;;  %v485_v21 = vadd.f32 %v3247_v59, %v484_v18 }
  0xfc   : > { %v732_v24 = vor.u32 %v730_v20, %v729_v19  ;;  %v734_v25 = vrot.slane %v729_v19, 4  ;;  %v516_v26 = vmax.f32 %v485_v21, 0.0 }
  0xfe   : > { %v733_v27 = vsel %vm3268_vm10, %v725_v23, %v732_v24  ;;  %v878_v28 = vsel %vm3186_vm5, %v734_v25, %v2739_v22  ;;  %v536_v29 = vpack.c.bf16 %v516_v26, %v516_v26 }
  0xff   : > { %2738 = vst.msk [vmem:[%s3260_s23 + $0x4c] sm:$0xf] %vm545_vm2, %v733_v27 }
 0x100   : > { %2740 = vst [vmem:[%s3260_s23 + $0x50] sm:$0x1] %v878_v28  ;;  %v736_v30 = vshrl.u32 %v536_v29, 16  ;;  %v739_v33 = vshll.u32 %v536_v29, 16 }
 0x101   : > { %v486_v31 = vpop.f32.mrf.mxu0 }
 0x102   : > { %v738_v32 = vrot.slane %v736_v30, 7  ;;  %v487_v34 = vadd.f32 %v3247_v59, %v486_v31 }
 0x104   : > { %v741_v36 = vor.u32 %v739_v33, %v738_v32  ;;  %v517_v37 = vmax.f32 %v487_v34, 0.0  ;;  %v742_v44 = vrot.slane %v738_v32, 4 }
 0x106   : > { %v881_v38 = vsel %vm3256_vm8, %v741_v36, %v2741_v35  ;;  %v537_v39 = vpack.c.bf16 %v517_v37, %v517_v37  ;;  %vm2306_vm8 = vcmask 457728  }
 0x107   : > { %2742 = vst [vmem:[%s3260_s23 + $0x54] sm:$0xf] %v881_v38 }
 0x108   : > { %v744_v40 = vshrl.u32 %v537_v39, 16  ;;  %v747_v42 = vshll.u32 %v537_v39, 16 }
 0x10a   : > { %v746_v41 = vrot.slane %v744_v40, 7 }
 0x10c   : > { %v749_v45 = vor.u32 %v747_v42, %v746_v41  ;;  %v751_v46 = vrot.slane %v746_v41, 4 }
 0x10e   : > { %v750_v59 = vsel %vm3268_vm10, %v742_v44, %v749_v45  ;;  %v885_v47 = vsel %vm3186_vm5, %v751_v46, %v2744_v43  ;;  %vm2272_vm5 = vcmask 326656   ;;  %vm2380_vm10 = vcmask 588800  }
 0x10f   : > { %2743 = vst.msk [vmem:[%s3260_s23 + $0x58] sm:$0xf] %vm545_vm2, %v750_v59  ;;  %vm2221_vm2 = vcmask 130048  }
 0x110   : > { %2745 = vst [vmem:[%s3260_s23 + $0x5c] sm:$0x1] %v885_v47 }
 0x117   : > { %v2934_v5 = vld [vmem:[#allocation2 + $0x24] sm:$0xff]  ;;  %v2928_v48 = vld [vmem:[#allocation2 + $0x30] sm:$0xff]  ;;  %v2926_v49 = vld [vmem:[#allocation2 + $0x18] sm:$0xff] }
 0x118   : > { %2100 = vrot.lane.b32.xlu2 %v2934_v5, %s3046_s24  ;;  %1976 = vrot.lane.b32.xlu0 %v2928_v48, %s3047_s8  ;;  %v3407_v50 = vld [vmem:[#allocation2 + $0x10] sm:$0xf]  ;;  %v3410_v9 = vld [vmem:[#allocation2 + $0x14] sm:$0x1]  ;;  %v1127_v17 = vld [vmem:[#allocation2 + $0xc] sm:$0xe] }
 0x119   : > { %1972 = vrot.lane.b32.xlu1 %v2926_v49, %s3047_s8  ;;  %v1164_v52 = vrot.slane %v3407_v50, 5  ;;  %v2761_v53 = vrot.slane %v1127_v17, 9  ;;  %v3417_v54 = vld [vmem:[#allocation2 + $0x1c] sm:$0xf]  ;;  %v3419_v55 = vld [vmem:[#allocation2 + $0x20] sm:$0x1] }
 0x11a   : > { %v1167_v57 = vrot.slane %v3410_v9, 5  ;;  %v1435_v58 = vld [vmem:[#allocation2 + $0x18] sm:$0xe]  ;;  %v1469_v60 = vrot.slane %v3417_v54, 5  ;;  %v1472_v61 = vrot.slane %v3419_v55, 5  ;;  %v2929_v62 = vld [vmem:[#allocation2 + $0x3c] sm:$0xff] }
 0x11b   : > { %v1166_v56 = vrot.slane %v1164_v52, 4  ;;  %v2936_v63 = vld [vmem:[#allocation2 + $0x3c] sm:$0xff]  ;;  %v1165_v0 = vsel %vm3412_vm13, %v2761_v53, %v1164_v52  ;;  %v2769_v1 = vrot.slane %v1435_v58, 9  ;;  %v1253_v4 = vshll.u32 %v3417_v54, 16  ;;  %v2927_v6 = vld [vmem:[#allocation2 + $0x24] sm:$0xff] }
 0x11c   : > { %v3426_v2 = vld [vmem:[#allocation2 + $0x1c] sm:$0xf]  ;;  %v3428_v3 = vld [vmem:[#allocation2 + $0x20] sm:$0x1]  ;;  %v1900_v8 = vunpack.c.l.b16 %v1165_v0  ;;  %v1471_v10 = vrot.slane %v1469_v60, 4  ;;  %v2937_v53 = vld [vmem:[#allocation2 + $0x48] sm:$0xff] }
 0x11d   : > { %v1168_v7 = vsel %vm3412_vm13, %v1166_v56, %v1167_v57  ;;  %v1128_v11 = vld [vmem:[#allocation2 + $0x18] sm:$0xe]  ;;  %v1171_v12 = vrot.slane %v3426_v2, 5  ;;  %v3434_v13 = vld [vmem:[#allocation2 + $0x28] sm:$0xf]  ;;  %v1470_v15 = vsel %vm3412_vm13, %v2769_v1, %v1469_v60  ;;  %v1174_v18 = vrot.slane %v3428_v3, 5 }
 0x11e   : > { %v1901_v14 = vunpack.c.l.b16 %v1168_v7  ;;  %v2762_v16 = vrot.slane %v1128_v11, 9  ;;  %v3439_v19 = vld [vmem:[#allocation2 + $0x2c] sm:$0x1]  ;;  %v1740_v20 = vld [vmem:[#allocation2 + $0x24] sm:$0xe]  ;;  %v1473_v21 = vsel %vm3412_vm13, %v1471_v10, %v1472_v61  ;;  %v2028_v22 = vunpack.c.l.b16 %v1470_v15  ;;  %v2935_v7 = vld [vmem:[#allocation2 + $0x30] sm:$0xff] }
 0x11f   : > { %v1173_v23 = vrot.slane %v1171_v12, 4  ;;  %v2777_v24 = vrot.slane %v1740_v20, 9  ;;  %v3443_v25 = vld [vmem:[#allocation2 + $0x28] sm:$0xf]  ;;  %v3445_v26 = vld [vmem:[#allocation2 + $0x2c] sm:$0x1]  ;;  %v2029_v28 = vunpack.c.l.b16 %v1473_v21 }
 0x120   : > { %1978 = vrot.lane.b32.xlu2 %v2929_v62, %s3047_s8  ;;  %2104 = vrot.lane.b32.xlu0 %v2936_v63, %s3046_s24  ;;  %v1916_v27 = vpack.c.b16 %v1901_v14, %v1900_v8  ;;  %v1172_v29 = vsel %vm3412_vm13, %v2762_v16, %v1171_v12  ;;  %v1774_v30 = vrot.slane %v3434_v13, 5  ;;  %v1129_v31 = vld [vmem:[#allocation2 + $0x24] sm:$0xe]  ;;  %v3452_v32 = vld [vmem:[#allocation2 + $0x28] sm:$0xf]  ;;  %v1777_v35 = vrot.slane %v3439_v19, 5 }
 0x121   : > { %1974 = vrot.lane.b32.xlu1 %v2927_v6, %s3047_s8  ;;  %v1175_v33 = vsel %vm3412_vm13, %v1173_v23, %v1174_v18  ;;  %v1902_v34 = vunpack.c.l.b16 %v1172_v29  ;;  %v2763_v36 = vrot.slane %v1129_v31, 9  ;;  %v3458_v37 = vld [vmem:[#allocation2 + $0x2c] sm:$0x1]  ;;  %v1436_v38 = vld [vmem:[#allocation2 + $0x24] sm:$0xe]  ;;  %v3460_v39 = vpack.c.b16 %v2029_v28, %v2028_v22 }
 0x122   : > { %v1903_v40 = vunpack.c.l.b16 %v1175_v33  ;;  %v1775_v41 = vsel %vm3412_vm13, %v2777_v24, %v1774_v30  ;;  %v1776_v42 = vrot.slane %v1774_v30, 4  ;;  %v3464_v43 = vld [vmem:[#allocation2 + $0x34] sm:$0xf]  ;;  %v1178_v45 = vrot.slane %v3443_v25, 5  ;;  %v1130_v47 = vld [vmem:[#allocation2 + $0x30] sm:$0xe] }
 0x123   : > { %v2156_v44 = vunpack.c.l.b16 %v1775_v41  ;;  %v1181_v46 = vrot.slane %v3445_v26, 5  ;;  %v2770_v59 = vrot.slane %v1436_v38, 9  ;;  %v1476_v49 = vrot.slane %v3452_v32, 5  ;;  %v3474_v52 = vld [vmem:[#allocation2 + $0x38] sm:$0x1] }
 0x124   : > { %v3468_v5 = vpack.c.b16 %v1903_v40, %v1902_v34  ;;  %v1778_v48 = vsel %vm3412_vm13, %v1776_v42, %v1777_v35  ;;  %v1479_v17 = vrot.slane %v3458_v37, 5  ;;  %v1179_v57 = vsel %vm3412_vm13, %v2763_v36, %v1178_v45  ;;  %v3481_v1 = vld [vmem:[#allocation2 + $0x34] sm:$0xf]  ;;  %v1437_v6 = vld [vmem:[#allocation2 + $0x30] sm:$0xe] }
 0x125   : > { %v2157_v56 = vunpack.c.l.b16 %v1778_v48  ;;  %v1180_v58 = vrot.slane %v1178_v45, 4  ;;  %v2764_v60 = vrot.slane %v1130_v47, 9  ;;  %v1904_v61 = vunpack.c.l.b16 %v1179_v57  ;;  %v3488_v14 = vld [vmem:[#allocation2 + $0x38] sm:$0x1]  ;;  %v1741_v15 = vld [vmem:[#allocation2 + $0x30] sm:$0xe] }
 0x126   : > { %v1477_v62 = vsel %vm3412_vm13, %v2770_v59, %v1476_v49  ;;  %v1478_v63 = vrot.slane %v1476_v49, 4  ;;  %v1185_v0 = vrot.slane %v3464_v43, 5  ;;  %v1188_v12 = vrot.slane %v3474_v52, 5  ;;  %v3496_v22 = vld [vmem:[#allocation2 + $0x34] sm:$0xf] }
 0x127   : > { %v3483_v8 = vpack.c.b16 %v2157_v56, %v2156_v44  ;;  %v1182_v10 = vsel %vm3412_vm13, %v1180_v58, %v1181_v46  ;;  %v2030_v11 = vunpack.c.l.b16 %v1477_v62  ;;  %v2771_v28 = vrot.slane %v1437_v6, 9  ;;  %v3500_v30 = vld [vmem:[#allocation2 + $0x38] sm:$0x1]  ;;  %v3507_v36 = vld [vmem:[#allocation2 + $0x40] sm:$0xf] }
 0x128   : > { %2106 = vrot.lane.b32.xlu2 %v2937_v53, %s3046_s24  ;;  %1924 = vrot.lane.b32.xlu0 %v1916_v27, %s3048_s9  ;;  %v1905_v16 = vunpack.c.l.b16 %v1182_v10  ;;  %v1480_v18 = vsel %vm3412_vm13, %v1478_v63, %v1479_v17  ;;  %v1186_v20 = vsel %vm3412_vm13, %v2764_v60, %v1185_v0  ;;  %v1187_v21 = vrot.slane %v1185_v0, 4  ;;  %v1438_v27 = vld [vmem:[#allocation2 + $0x3c] sm:$0xe]  ;;  %v3509_v38 = vld [vmem:[#allocation2 + $0x44] sm:$0x1]  ;;  %v2930_v60 = vld [vmem:[#allocation2 + $0x48] sm:$0xff] }
 0x129   : > { %2102 = vrot.lane.b32.xlu1 %v2935_v7, %s3046_s24  ;;  %v2031_v23 = vunpack.c.l.b16 %v1480_v18  ;;  %v1906_v24 = vunpack.c.l.b16 %v1186_v20  ;;  %v1483_v29 = vrot.slane %v3481_v1, 5  ;;  %v1486_v34 = vrot.slane %v3488_v14, 5  ;;  %v1742_v45 = vld [vmem:[#allocation2 + $0x3c] sm:$0xe]  ;;  %v3517_v49 = vld [vmem:[#allocation2 + $0x40] sm:$0xf] }
 0x12a   : > { %v3502_v31 = vpack.c.b16 %v1905_v16, %v1904_v61  ;;  %v1189_v33 = vsel %vm3412_vm13, %v1187_v21, %v1188_v12  ;;  %v2778_v35 = vrot.slane %v1741_v15, 9  ;;  %v1781_v59 = vrot.slane %v3496_v22, 5  ;;  %v3525_v58 = vld [vmem:[#allocation2 + $0x44] sm:$0x1]  ;;  %v3532_v12 = vld [vmem:[#allocation2 + $0x40] sm:$0xf] }
 0x12b   : > { %v3511_v40 = vpack.c.b16 %v2031_v23, %v2030_v11  ;;  %v1907_v41 = vunpack.c.l.b16 %v1189_v33  ;;  %v1484_v42 = vsel %vm3412_vm13, %v2771_v28, %v1483_v29  ;;  %v1485_v44 = vrot.slane %v1483_v29, 4  ;;  %v1131_v15 = vld [vmem:[#allocation2 + $0x3c] sm:$0xe]  ;;  %v3543_v23 = vld [vmem:[#allocation2 + $0x44] sm:$0x1] }
 0x12c   : > { %v2032_v46 = vunpack.c.l.b16 %v1484_v42  ;;  %v1784_v47 = vrot.slane %v3500_v30, 5  ;;  %v2772_v48 = vrot.slane %v1438_v27, 9  ;;  %v1490_v56 = vrot.slane %v3507_v36, 5  ;;  %v3550_v27 = vld [vmem:[#allocation2 + $0x4c] sm:$0xf] }
 0x12d   : > { %v3519_v17 = vpack.c.b16 %v1907_v41, %v1906_v24  ;;  %v1487_v53 = vsel %vm3412_vm13, %v1485_v44, %v1486_v34  ;;  %v1493_v57 = vrot.slane %v3509_v38, 5  ;;  %v1782_v62 = vsel %vm3412_vm13, %v2778_v35, %v1781_v59  ;;  %v1743_v24 = vld [vmem:[#allocation2 + $0x48] sm:$0xe]  ;;  %v3553_v42 = vld [vmem:[#allocation2 + $0x50] sm:$0x1] }
 0x12e   : > { %v2033_v61 = vunpack.c.l.b16 %v1487_v53  ;;  %v1783_v63 = vrot.slane %v1781_v59, 4  ;;  %v2779_v0 = vrot.slane %v1742_v45, 9  ;;  %v2158_v6 = vunpack.c.l.b16 %v1782_v62  ;;  %v1133_v44 = vld [vmem:[#allocation2 + $0x54] sm:$0xe]  ;;  %v3562_v53 = vld [vmem:[#allocation2 + $0x5c] sm:$0x1] }
 0x12f   : > { %v1491_v7 = vsel %vm3412_vm13, %v2772_v48, %v1490_v56  ;;  %v1492_v10 = vrot.slane %v1490_v56, 4  ;;  %v1788_v11 = vrot.slane %v3517_v49, 5  ;;  %v1791_v21 = vrot.slane %v3525_v58, 5  ;;  %v3560_v48 = vld [vmem:[#allocation2 + $0x58] sm:$0xf] }
 0x130   : > { %2052 = vrot.lane.b32.xlu2 %v3460_v39, %s3049_s11  ;;  %1926 = vrot.lane.b32.xlu0 %v3468_v5, %s3048_s9  ;;  %v3538_v16 = vpack.c.b16 %v2033_v61, %v2032_v46  ;;  %v1785_v18 = vsel %vm3412_vm13, %v1783_v63, %v1784_v47  ;;  %v2034_v20 = vunpack.c.l.b16 %v1491_v7  ;;  %v2765_v35 = vrot.slane %v1131_v15, 9  ;;  %v1439_v62 = vld [vmem:[#allocation2 + $0x48] sm:$0xe] }
 0x131   : > { %1980 = vrot.lane.b32.xlu1 %v2930_v60, %s3047_s8  ;;  %v2159_v28 = vunpack.c.l.b16 %v1785_v18  ;;  %v1494_v39 = vsel %vm3412_vm13, %v1492_v10, %v1493_v57  ;;  %v1789_v5 = vsel %vm3412_vm13, %v2779_v0, %v1788_v11  ;;  %v1790_v29 = vrot.slane %v1788_v11, 4  ;;  %v3570_v10 = vld [vmem:[#allocation2 + $0x4c] sm:$0xf] }
 0x132   : > { %v2035_v33 = vunpack.c.l.b16 %v1494_v39  ;;  %v2160_v34 = vunpack.c.l.b16 %v1789_v5  ;;  %v1192_v41 = vrot.slane %v3532_v12, 5  ;;  %v1195_v59 = vrot.slane %v3543_v23, 5 }
 0x133   : > { %v3555_v45 = vpack.c.b16 %v2159_v28, %v2158_v6  ;;  %v1792_v46 = vsel %vm3412_vm13, %v1790_v29, %v1791_v21  ;;  %v2780_v47 = vrot.slane %v1743_v24, 9  ;;  %v1795_v0 = vrot.slane %v3550_v27, 5  ;;  %v3578_v21 = vld [vmem:[#allocation2 + $0x50] sm:$0x1] }
 0x134   : > { %v3564_v56 = vpack.c.b16 %v2035_v33, %v2034_v20  ;;  %v2161_v57 = vunpack.c.l.b16 %v1792_v46  ;;  %v1193_v60 = vsel %vm3412_vm13, %v2765_v35, %v1192_v41  ;;  %v1194_v61 = vrot.slane %v1192_v41, 4 }
 0x135   : > { %v1908_v63 = vunpack.c.l.b16 %v1193_v60  ;;  %v1798_v6 = vrot.slane %v3553_v42, 5  ;;  %v2767_v7 = vrot.slane %v1133_v44, 9  ;;  %v1206_v18 = vrot.slane %v3560_v48, 5 }
 0x136   : > { %v3572_v11 = vpack.c.b16 %v2161_v57, %v2160_v34  ;;  %v1196_v15 = vsel %vm3412_vm13, %v1194_v61, %v1195_v59  ;;  %v1209_v20 = vrot.slane %v3562_v53, 5  ;;  %v1796_v28 = vsel %vm3412_vm13, %v2780_v47, %v1795_v0 }
 0x137   : > { %v1909_v24 = vunpack.c.l.b16 %v1196_v15  ;;  %v1797_v39 = vrot.slane %v1795_v0, 4  ;;  %v2773_v5 = vrot.slane %v1439_v62, 9  ;;  %v2162_v29 = vunpack.c.l.b16 %v1796_v28 }
 0x138   : > { %1928 = vrot.lane.b32.xlu2 %v3502_v31, %s3048_s9  ;;  %2054 = vrot.lane.b32.xlu0 %v3511_v40, %s3049_s11  ;;  %v1207_v33 = vsel %vm3412_vm13, %v2767_v7, %v1206_v18  ;;  %v1208_v34 = vrot.slane %v1206_v18, 4  ;;  %v1497_v35 = vrot.slane %v3570_v10, 5  ;;  %v1500_v46 = vrot.slane %v3578_v21, 5  ;;  %v1219_v40 = vld [vmem:[#allocation2 + $0x18] sm:$0xf] }
 0x139   : > { %2180 = vrot.lane.b32.xlu1 %v3483_v8, %s3050_s12  ;;  %v3591_v41 = vpack.c.b16 %v1909_v24, %v1908_v63  ;;  %v1799_v44 = vsel %vm3412_vm13, %v1797_v39, %v1798_v6  ;;  %v1912_v31 = vunpack.c.l.b16 %v1207_v33  ;;  %v910_v8 = vld [vmem:[#allocation2 + $0x18] sm:$0xf]  ;;  %v1244_v6 = vshrl.u32 %v1219_v40, 16 }
 0x13a   : > { %v2163_v59 = vunpack.c.l.b16 %v1799_v44  ;;  %v1210_v47 = vsel %vm3412_vm13, %v1208_v34, %v1209_v20  ;;  %v1498_v57 = vsel %vm3412_vm13, %v2773_v5, %v1497_v35  ;;  %v1499_v60 = vrot.slane %v1497_v35, 4 }
 0x13b   : > { %v1913_v61 = vunpack.c.l.b16 %v1210_v47  ;;  %v2036_v62 = vunpack.c.l.b16 %v1498_v57  ;;  %v1247_v7 = vshll.u32 %v1219_v40, 16  ;;  %v1255_v20 = vrot.slane %v1253_v4, 5 }
 0x13c   : > { %v3600_v63 = vpack.c.b16 %v2163_v59, %v2162_v29  ;;  %v1501_v0 = vsel %vm3412_vm13, %v1499_v60, %v1500_v46  ;;  %v1257_v24 = vshrl.u32 %v3417_v54, 16  ;;  %v1246_v28 = vrot.slane %v1244_v6, 4  ;;  %v908_v46 = vld [vmem:[#allocation2 + $0xc] sm:$0xf] }
 0x13d   : > { %v3604_v15 = vpack.c.b16 %v1913_v61, %v1912_v31  ;;  %v2037_v18 = vunpack.c.l.b16 %v1501_v0  ;;  %v1249_v39 = vrot.slane %v1247_v7, 5  ;;  %v1263_v5 = vshll.u32 %v3419_v55, 16 }
 0x13e   : > { %v960_v33 = vshrl.u32 %v910_v8, 16  ;;  %v1259_v34 = vrot.slane %v1257_v24, 4  ;;  %v963_v35 = vshll.u32 %v910_v8, 16  ;;  %v969_v44 = vshll.u32 %v3426_v2, 16 }
 0x13f   : > { %v3610_v29 = vpack.c.b16 %v2037_v18, %v2036_v62  ;;  %v1250_v4 = vor.u32 %v1249_v39, %v1246_v28  ;;  %v1265_v54 = vrot.slane %v1263_v5, 5  ;;  %v973_v40 = vshrl.u32 %v3426_v2, 16  ;;  %v1221_v28 = vld [vmem:[#allocation2 + $0x24] sm:$0xf] }
 0x140   : > { %2056 = vrot.lane.b32.xlu2 %v3538_v16, %s3049_s11  ;;  %2182 = vrot.lane.b32.xlu0 %v3555_v45, %s3050_s12  ;;  %v962_v31 = vrot.slane %v960_v33, 4  ;;  %v1260_v59 = vor.u32 %v1259_v34, %v1255_v20  ;;  %v965_v47 = vrot.slane %v963_v35, 5  ;;  %v971_v16 = vrot.slane %v969_v44, 5 }
 0x141   : > { %1930 = vrot.lane.b32.xlu1 %v3519_v17, %s3048_s9  ;;  %v979_v57 = vshll.u32 %v3428_v3, 16  ;;  %v1251_v45 = vrot.slane %v1250_v4, 4  ;;  %v975_v60 = vrot.slane %v973_v40, 4  ;;  %v936_v61 = vshrl.u32 %v908_v46, 16 }
 0x142   : > { %v939_v62 = vshll.u32 %v908_v46, 16  ;;  %v1261_v8 = vrot.slane %v1260_v59, 4  ;;  %v966_v2 = vor.u32 %v965_v47, %v962_v31  ;;  %v945_v17 = vshll.u32 %v3407_v50, 16 }
 0x143   : > { %v981_v0 = vrot.slane %v979_v57, 5  ;;  %v1256_v6 = vsel %vm3622_vm0, %v1251_v45, %v1255_v20  ;;  %v976_v7 = vor.u32 %v975_v60, %v971_v16  ;;  %v938_v18 = vrot.slane %v936_v61, 4  ;;  %v1524_v45 = vld [vmem:[#allocation2 + $0x24] sm:$0xf] }
 0x144   : > { %v941_v24 = vrot.slane %v939_v62, 5  ;;  %v1266_v39 = vsel %vm3622_vm0, %v1261_v8, %v1265_v54  ;;  %v3632_v3 = vunpack.c.l.b16 %v1256_v6  ;;  %v967_v5 = vrot.slane %v966_v2, 4 }
 0x145   : > { %v947_v33 = vrot.slane %v945_v17, 5  ;;  %v3634_v34 = vunpack.c.l.b16 %v1266_v39  ;;  %v977_v35 = vrot.slane %v976_v7, 4  ;;  %v949_v46 = vshrl.u32 %v3407_v50, 16 }
 0x146   : > { %v942_v44 = vor.u32 %v941_v24, %v938_v18  ;;  %v972_v20 = vsel %vm3622_vm0, %v967_v5, %v971_v16  ;;  %v955_v4 = vshll.u32 %v3410_v9, 16  ;;  %v1268_v31 = vshrl.u32 %v1221_v28, 16 }
 0x147   : > { %v1271_v40 = vshll.u32 %v1221_v28, 16  ;;  %v2004_v54 = vpack.c.b16 %v3634_v34, %v3632_v3  ;;  %v982_v59 = vsel %vm3622_vm0, %v977_v35, %v981_v0  ;;  %v3648_v50 = vunpack.c.l.b16 %v972_v20  ;;  %v912_v20 = vld [vmem:[#allocation2 + $0x24] sm:$0xf] }
 0x148   : > { %2184 = vrot.lane.b32.xlu2 %v3572_v11, %s3050_s12  ;;  %1932 = vrot.lane.b32.xlu0 %v3591_v41, %s3048_s9  ;;  %v943_v47 = vrot.slane %v942_v44, 4  ;;  %v3652_v9 = vunpack.c.l.b16 %v982_v59  ;;  %v951_v16 = vrot.slane %v949_v46, 4  ;;  %v957_v57 = vrot.slane %v955_v4, 5 }
 0x149   : > { %2058 = vrot.lane.b32.xlu1 %v3564_v56, %s3049_s11  ;;  %v1270_v11 = vrot.slane %v1268_v31, 4  ;;  %v1273_v60 = vrot.slane %v1271_v40, 5  ;;  %v1277_v61 = vshll.u32 %v3452_v32, 16  ;;  %v1281_v62 = vshrl.u32 %v3452_v32, 16 }
 0x14a   : > { %v948_v41 = vsel %vm3622_vm0, %v943_v47, %v947_v33  ;;  %v1877_v8 = vpack.c.b16 %v3652_v9, %v3648_v50  ;;  %v952_v2 = vor.u32 %v951_v16, %v947_v33  ;;  %v1287_v56 = vshll.u32 %v3458_v37, 16 }
 0x14b   : > { %v1860_v0 = vunpack.c.l.b16 %v948_v41  ;;  %v1274_v17 = vor.u32 %v1273_v60, %v1270_v11  ;;  %v1279_v6 = vrot.slane %v1277_v61, 5  ;;  %v1283_v7 = vrot.slane %v1281_v62, 4 }
 0x14c   : > { %v1549_v18 = vshrl.u32 %v1524_v45, 16  ;;  %v953_v24 = vrot.slane %v952_v2, 4  ;;  %v1289_v28 = vrot.slane %v1287_v56, 5  ;;  %v1552_v39 = vshll.u32 %v1524_v45, 16  ;;  %v1526_v45 = vld [vmem:[#allocation2 + $0x30] sm:$0xf] }
 0x14d   : > { %v1558_v5 = vshll.u32 %v3434_v13, 16  ;;  %v1275_v35 = vrot.slane %v1274_v17, 4  ;;  %v1284_v44 = vor.u32 %v1283_v7, %v1279_v6  ;;  %v1562_v32 = vshrl.u32 %v3434_v13, 16 }
 0x14e   : > { %v1551_v46 = vrot.slane %v1549_v18, 4  ;;  %v958_v33 = vsel %vm3622_vm0, %v953_v24, %v957_v57  ;;  %v1554_v4 = vrot.slane %v1552_v39, 5  ;;  %v1568_v31 = vshll.u32 %v3439_v19, 16 }
 0x14f   : > { %v1560_v37 = vrot.slane %v1558_v5, 5  ;;  %v1861_v40 = vunpack.c.l.b16 %v958_v33  ;;  %v1280_v59 = vsel %vm3622_vm0, %v1275_v35, %v1279_v6  ;;  %v1285_v50 = vrot.slane %v1284_v44, 4  ;;  %v1744_v35 = vld [vmem:[#allocation2 + $0x54] sm:$0xe] }
 0x150   : > { %1936 = vrot.lane.b32.xlu2 %v3604_v15, %s3048_s9  ;;  %2060 = vrot.lane.b32.xlu0 %v3610_v29, %s3049_s11  ;;  %v1564_v13 = vrot.slane %v1562_v32, 4  ;;  %v3674_v47 = vunpack.c.l.b16 %v1280_v59  ;;  %v1555_v9 = vor.u32 %v1554_v4, %v1551_v46  ;;  %v1570_v16 = vrot.slane %v1568_v31, 5  ;;  %v3695_v31 = vld [vmem:[#allocation2 + $0x5c] sm:$0x1] }
 0x151   : > { %2186 = vrot.lane.b32.xlu1 %v3600_v63, %s3050_s12  ;;  %v984_v19 = vshrl.u32 %v912_v20, 16  ;;  %v1876_v57 = vpack.c.b16 %v1861_v40, %v1860_v0  ;;  %v1290_v15 = vsel %vm3622_vm0, %v1285_v50, %v1289_v28  ;;  %v987_v29 = vshll.u32 %v912_v20, 16 }
 0x152   : > { %v1565_v11 = vor.u32 %v1564_v13, %v1560_v37  ;;  %v3678_v41 = vunpack.c.l.b16 %v1290_v15  ;;  %v1556_v60 = vrot.slane %v1555_v9, 4  ;;  %v993_v62 = vshll.u32 %v3443_v25, 16  ;;  %v1223_v13 = vld [vmem:[#allocation2 + $0x30] sm:$0xf] }
 0x153   : > { %v986_v61 = vrot.slane %v984_v19, 4  ;;  %v989_v63 = vrot.slane %v987_v29, 5  ;;  %v997_v56 = vshrl.u32 %v3443_v25, 16  ;;  %v1003_v17 = vshll.u32 %v3445_v26, 16  ;;  %v3689_v26 = vld [vmem:[#allocation2 + $0x58] sm:$0xf] }
 0x154   : > { %v1566_v2 = vrot.slane %v1565_v11, 4  ;;  %v2005_v0 = vpack.c.b16 %v3678_v41, %v3674_v47  ;;  %v1561_v6 = vsel %vm3622_vm0, %v1556_v60, %v1560_v37  ;;  %v995_v7 = vrot.slane %v993_v62, 5 }
 0x155   : > { %v1573_v18 = vshrl.u32 %v1526_v45, 16  ;;  %v2116_v28 = vunpack.c.l.b16 %v1561_v6  ;;  %v990_v39 = vor.u32 %v989_v63, %v986_v61  ;;  %v999_v5 = vrot.slane %v997_v56, 4  ;;  %v2938_v56 = vld [vmem:[#allocation2 + $0x54] sm:$0xff] }
 0x156   : > { %v1571_v24 = vsel %vm3622_vm0, %v1566_v2, %v1570_v16  ;;  %v1005_v46 = vrot.slane %v1003_v17, 5  ;;  %v1576_v32 = vshll.u32 %v1526_v45, 16  ;;  %v1582_v4 = vshll.u32 %v3496_v22, 16 }
 0x157   : > { %v2117_v44 = vunpack.c.l.b16 %v1571_v24  ;;  %v1575_v25 = vrot.slane %v1573_v18, 4  ;;  %v991_v20 = vrot.slane %v990_v39, 4  ;;  %v1000_v33 = vor.u32 %v999_v5, %v995_v7  ;;  %v3721_v24 = vld [vmem:[#allocation2 + $0x64] sm:$0xf] }
 0x158   : > { %1886 = vrot.lane.b32.xlu2 %v1877_v8, %s3051_s13  ;;  %1884 = vrot.lane.b32.xlu0 %v1876_v57, %s3051_s13  ;;  %v1586_v37 = vshrl.u32 %v3496_v22, 16  ;;  %v1578_v59 = vrot.slane %v1576_v32, 5  ;;  %v1592_v8 = vshll.u32 %v3500_v30, 16  ;;  %v2781_v50 = vrot.slane %v1744_v35, 9 }
 0x159   : > { %2012 = vrot.lane.b32.xlu1 %v2004_v54, %s3052_s14  ;;  %v2132_v40 = vpack.c.b16 %v2117_v44, %v2116_v28  ;;  %v996_v47 = vsel %vm3622_vm0, %v991_v20, %v995_v7  ;;  %v1001_v9 = vrot.slane %v1000_v33, 4  ;;  %v1584_v16 = vrot.slane %v1582_v4, 5  ;;  %v1441_v28 = vld [vmem:[#allocation2 + $0x60] sm:$0xe] }
 0x15a   : > { %v1588_v22 = vrot.slane %v1586_v37, 4  ;;  %v3704_v19 = vunpack.c.l.b16 %v996_v47  ;;  %v1579_v57 = vor.u32 %v1578_v59, %v1575_v25  ;;  %v1594_v15 = vrot.slane %v1592_v8, 5 }
 0x15b   : > { %v1802_v11 = vrot.slane %v3689_v26, 5  ;;  %v1006_v3 = vsel %vm3622_vm0, %v1001_v9, %v1005_v46  ;;  %v1805_v30 = vrot.slane %v3695_v31, 5  ;;  %v1292_v54 = vshrl.u32 %v1223_v13, 16  ;;  %v3727_v46 = vld [vmem:[#allocation2 + $0x68] sm:$0x1] }
 0x15c   : > { %v1589_v34 = vor.u32 %v1588_v22, %v1584_v16  ;;  %v3710_v29 = vunpack.c.l.b16 %v1006_v3  ;;  %v1580_v45 = vrot.slane %v1579_v57, 4  ;;  %v1295_v63 = vshll.u32 %v1223_v13, 16 }
 0x15d   : > { %v1803_v41 = vsel %vm3412_vm13, %v2781_v50, %v1802_v11  ;;  %v1804_v60 = vrot.slane %v1802_v11, 4  ;;  %v1294_v2 = vrot.slane %v1292_v54, 4  ;;  %v1301_v18 = vshll.u32 %v3481_v1, 16  ;;  %v1746_v11 = vld [vmem:[#allocation2 + $0x6c] sm:$0xe] }
 0x15e   : > { %v1590_v61 = vrot.slane %v1589_v34, 4  ;;  %v2164_v62 = vunpack.c.l.b16 %v1803_v41  ;;  %v1878_v17 = vpack.c.b16 %v3710_v29, %v3704_v19  ;;  %v1585_v6 = vsel %vm3622_vm0, %v1580_v45, %v1584_v16  ;;  %v3742_v29 = vld [vmem:[#allocation2 + $0x70] sm:$0xf] }
 0x15f   : > { %v1806_v7 = vsel %vm3412_vm13, %v1804_v60, %v1805_v30  ;;  %v2118_v5 = vunpack.c.l.b16 %v1585_v6  ;;  %v1297_v44 = vrot.slane %v1295_v63, 5  ;;  %v1303_v32 = vrot.slane %v1301_v18, 5 }
 0x160   : > { %2014 = vrot.lane.b32.xlu2 %v2005_v0, %s3052_s14  ;;  %2140 = vrot.lane.b32.xlu0 %v2132_v40, %s3053_s15  ;;  %v1595_v39 = vsel %vm3622_vm0, %v1590_v61, %v1594_v15  ;;  %v2165_v35 = vunpack.c.l.b16 %v1806_v7  ;;  %v1305_v20 = vshrl.u32 %v3481_v1, 16  ;;  %v1311_v33 = vshll.u32 %v3488_v14, 16  ;;  %v1528_v0 = vld [vmem:[#allocation2 + $0x3c] sm:$0xf]  ;;  %v914_v7 = vld [vmem:[#allocation2 + $0x30] sm:$0xf] }
 0x161   : > { %2108 = vrot.lane.b32.xlu1 %v2938_v56, %s3046_s24  ;;  %v2119_v25 = vunpack.c.l.b16 %v1595_v39  ;;  %v1298_v37 = vor.u32 %v1297_v44, %v1294_v2  ;;  %v2775_v40 = vrot.slane %v1441_v28, 9  ;;  %v1511_v59 = vrot.slane %v3721_v24, 5 }
 0x162   : > { %v2176_v4 = vpack.c.b16 %v2165_v35, %v2164_v62  ;;  %v1307_v50 = vrot.slane %v1305_v20, 4  ;;  %v1313_v13 = vrot.slane %v1311_v33, 5  ;;  %v1514_v47 = vrot.slane %v3727_v46, 5  ;;  %v3744_v62 = vld [vmem:[#allocation2 + $0x74] sm:$0x1] }
 0x163   : > { %v2133_v8 = vpack.c.b16 %v2119_v25, %v2118_v5  ;;  %v1299_v9 = vrot.slane %v1298_v37, 4  ;;  %v1512_v16 = vsel %vm3412_vm13, %v2775_v40, %v1511_v59  ;;  %v1513_v22 = vrot.slane %v1511_v59, 4 }
 0x164   : > { %v1597_v19 = vshrl.u32 %v1528_v0, 16  ;;  %v1308_v1 = vor.u32 %v1307_v50, %v1303_v32  ;;  %v2040_v57 = vunpack.c.l.b16 %v1512_v16  ;;  %v1600_v14 = vshll.u32 %v1528_v0, 16 }
 0x165   : > { %v1606_v15 = vshll.u32 %v3517_v49, 16  ;;  %v1304_v3 = vsel %vm3622_vm0, %v1299_v9, %v1303_v32  ;;  %v1515_v34 = vsel %vm3412_vm13, %v1513_v22, %v1514_v47  ;;  %v1610_v54 = vshrl.u32 %v3517_v49, 16  ;;  %v1440_v47 = vld [vmem:[#allocation2 + $0x54] sm:$0xe]  ;;  %v2932_v9 = vld [vmem:[#allocation2 + $0x60] sm:$0xff] }
 0x166   : > { %v1599_v30 = vrot.slane %v1597_v19, 4  ;;  %v1309_v45 = vrot.slane %v1308_v1, 4  ;;  %v1992_v41 = vunpack.c.l.b16 %v1304_v3  ;;  %v2041_v60 = vunpack.c.l.b16 %v1515_v34  ;;  %v916_v34 = vld [vmem:[#allocation2 + $0x3c] sm:$0xf] }
 0x167   : > { %v1602_v61 = vrot.slane %v1600_v14, 5  ;;  %v1608_v2 = vrot.slane %v1606_v15, 5  ;;  %v1612_v63 = vrot.slane %v1610_v54, 4  ;;  %v1616_v56 = vshll.u32 %v3525_v58, 16 }
 0x168   : > { %2142 = vrot.lane.b32.xlu2 %v2133_v8, %s3053_s15  ;;  %2188 = vrot.lane.b32.xlu0 %v2176_v4, %s3050_s12  ;;  %v2783_v6 = vrot.slane %v1746_v11, 9  ;;  %v1314_v49 = vsel %vm3622_vm0, %v1309_v45, %v1313_v13  ;;  %v2050_v18 = vpack.c.b16 %v2041_v60, %v2040_v57  ;;  %v1816_v39 = vrot.slane %v3742_v29, 5  ;;  %v3761_v13 = vld [vmem:[#allocation2 + $0x58] sm:$0xf]  ;;  %v3765_v57 = vld [vmem:[#allocation2 + $0x5c] sm:$0x1] }
 0x169   : > { %1888 = vrot.lane.b32.xlu1 %v1878_v17, %s3051_s13  ;;  %v1603_v28 = vor.u32 %v1602_v61, %v1599_v30  ;;  %v1993_v5 = vunpack.c.l.b16 %v1314_v49  ;;  %v1613_v35 = vor.u32 %v1612_v63, %v1608_v2  ;;  %v1618_v44 = vrot.slane %v1616_v56, 5 }
 0x16a   : > { %v1819_v25 = vrot.slane %v3744_v62, 5  ;;  %v1817_v58 = vsel %vm3412_vm13, %v2783_v6, %v1816_v39  ;;  %v1818_v20 = vrot.slane %v1816_v39, 4  ;;  %v1008_v33 = vshrl.u32 %v914_v7, 16 }
 0x16b   : > { %v1604_v32 = vrot.slane %v1603_v28, 4  ;;  %v2006_v0 = vpack.c.b16 %v1993_v5, %v1992_v41  ;;  %v1614_v17 = vrot.slane %v1613_v35, 4  ;;  %v2168_v4 = vunpack.c.l.b16 %v1817_v58  ;;  %v1225_v5 = vld [vmem:[#allocation2 + $0x3c] sm:$0xf] }
 0x16c   : > { %v1011_v37 = vshll.u32 %v914_v7, 16  ;;  %v1820_v59 = vsel %vm3412_vm13, %v1818_v20, %v1819_v25  ;;  %v1010_v8 = vrot.slane %v1008_v33, 4  ;;  %v1017_v50 = vshll.u32 %v3464_v43, 16 }
 0x16d   : > { %v1609_v40 = vsel %vm3622_vm0, %v1604_v32, %v1608_v2  ;;  %v1619_v16 = vsel %vm3622_vm0, %v1614_v17, %v1618_v44  ;;  %v2169_v19 = vunpack.c.l.b16 %v1820_v59  ;;  %v1021_v11 = vshrl.u32 %v3464_v43, 16  ;;  %v2931_v17 = vld [vmem:[#allocation2 + $0x54] sm:$0xff] }
 0x16e   : > { %v2120_v22 = vunpack.c.l.b16 %v1609_v40  ;;  %v1013_v1 = vrot.slane %v1011_v37, 5  ;;  %v2121_v14 = vunpack.c.l.b16 %v1619_v16  ;;  %v1019_v15 = vrot.slane %v1017_v50, 5 }
 0x16f   : > { %v1027_v3 = vshll.u32 %v3474_v52, 16  ;;  %v3771_v30 = vpack.c.b16 %v2169_v19, %v2168_v4  ;;  %v2774_v45 = vrot.slane %v1440_v47, 9  ;;  %v1504_v41 = vrot.slane %v3761_v13, 5  ;;  %v2940_v4 = vld [vmem:[#allocation2 + $0x6c] sm:$0xff] }
 0x170   : > { %2064 = vrot.lane.b32.xlu2 %v2050_v18, %s3049_s11  ;;  %1984 = vrot.lane.b32.xlu0 %v2932_v9, %s3047_s8  ;;  %v1014_v54 = vor.u32 %v1013_v1, %v1010_v8  ;;  %v2134_v60 = vpack.c.b16 %v2121_v14, %v2120_v22  ;;  %v1023_v61 = vrot.slane %v1021_v11, 4  ;;  %v1507_v43 = vrot.slane %v3765_v57, 5  ;;  %v1745_v22 = vld [vmem:[#allocation2 + $0x60] sm:$0xe] }
 0x171   : > { %2016 = vrot.lane.b32.xlu1 %v2006_v0, %s3052_s14  ;;  %v1029_v2 = vrot.slane %v1027_v3, 5  ;;  %v1505_v56 = vsel %vm3412_vm13, %v2774_v45, %v1504_v41  ;;  %v1506_v6 = vrot.slane %v1504_v41, 4  ;;  %v1032_v7 = vshrl.u32 %v916_v34, 16 }
 0x172   : > { %v3776_v63 = vpop.permute.xlu2 %2100  ;;  %v1015_v52 = vrot.slane %v1014_v54, 4  ;;  %v1024_v49 = vor.u32 %v1023_v61, %v1019_v15  ;;  %v2038_v18 = vunpack.c.l.b16 %v1505_v56  ;;  %v1035_v28 = vshll.u32 %v916_v34, 16  ;;  %v3796_v34 = vld [vmem:[#allocation2 + $0x64] sm:$0xf] }
 0x173   : > { %v1041_v39 = vshll.u32 %v3532_v12, 16  ;;  %v1508_v44 = vsel %vm3412_vm13, %v1506_v6, %v1507_v43  ;;  %v1034_v25 = vrot.slane %v1032_v7, 4  ;;  %v1045_v32 = vshrl.u32 %v3532_v12, 16  ;;  %v1227_v7 = vld [vmem:[#allocation2 + $0x48] sm:$0xf] }
 0x174   : > { %v1020_v35 = vsel %vm3622_vm0, %v1015_v52, %v1019_v15  ;;  %v1025_v58 = vrot.slane %v1024_v49, 4  ;;  %v2039_v33 = vunpack.c.l.b16 %v1508_v44  ;;  %v1037_v0 = vrot.slane %v1035_v28, 5  ;;  %v2939_v44 = vld [vmem:[#allocation2 + $0x60] sm:$0xff] }
 0x175   : > { %v1866_v20 = vunpack.c.l.b16 %v1020_v35  ;;  %v1043_v37 = vrot.slane %v1041_v39, 5  ;;  %v1047_v40 = vrot.slane %v1045_v32, 4  ;;  %v1051_v59 = vshll.u32 %v3543_v23, 16 }
 0x176   : > { %v1316_v8 = vshrl.u32 %v1225_v5, 16  ;;  %v1030_v50 = vsel %vm3622_vm0, %v1025_v58, %v1029_v2  ;;  %v3789_v47 = vpack.c.b16 %v2039_v33, %v2038_v18  ;;  %v1038_v9 = vor.u32 %v1037_v0, %v1034_v25  ;;  %v3801_v2 = vld [vmem:[#allocation2 + $0x68] sm:$0x1] }
 0x177   : > { %v1319_v16 = vshll.u32 %v1225_v5, 16  ;;  %v1867_v12 = vunpack.c.l.b16 %v1030_v50  ;;  %v1048_v19 = vor.u32 %v1047_v40, %v1043_v37  ;;  %v1053_v1 = vrot.slane %v1051_v59, 5 }
 0x178   : > { %1982 = vrot.lane.b32.xlu2 %v2931_v17, %s3047_s8  ;;  %2112 = vrot.lane.b32.xlu0 %v2940_v4, %s3046_s24  ;;  %v1318_v14 = vrot.slane %v1316_v8, 4  ;;  %v1039_v23 = vrot.slane %v1038_v9, 4  ;;  %v1325_v11 = vshll.u32 %v3507_v36, 16  ;;  %v1329_v3 = vshrl.u32 %v3507_v36, 16 }
 0x179   : > { %2144 = vrot.lane.b32.xlu1 %v2134_v60, %s3053_s15  ;;  %v1321_v15 = vrot.slane %v1319_v16, 5  ;;  %v1879_v45 = vpack.c.b16 %v1867_v12, %v1866_v20  ;;  %v1049_v41 = vrot.slane %v1048_v19, 4  ;;  %v1335_v61 = vshll.u32 %v3509_v38, 16 }
 0x17a   : > { %v3798_v54 = vpop.permute.xlu2 %1978  ;;  %v2782_v43 = vrot.slane %v1745_v22, 9  ;;  %v1044_v60 = vsel %vm3622_vm0, %v1039_v23, %v1043_v37  ;;  %v1327_v56 = vrot.slane %v1325_v11, 5  ;;  %v1331_v6 = vrot.slane %v1329_v3, 4  ;;  %v1530_v37 = vld [vmem:[#allocation2 + $0x48] sm:$0xf] }
 0x17b   : > { %v1322_v52 = vor.u32 %v1321_v15, %v1318_v14  ;;  %v1054_v36 = vsel %vm3622_vm0, %v1049_v41, %v1053_v1  ;;  %v1868_v49 = vunpack.c.l.b16 %v1044_v60  ;;  %v1337_v18 = vrot.slane %v1335_v61, 5  ;;  %v920_v41 = vld [vmem:[#allocation2 + $0x54] sm:$0xf] }
 0x17c   : > { %v1809_v28 = vrot.slane %v3796_v34, 5  ;;  %v1869_v39 = vunpack.c.l.b16 %v1054_v36  ;;  %v1332_v38 = vor.u32 %v1331_v6, %v1327_v56  ;;  %v1812_v35 = vrot.slane %v3801_v2, 5 }
 0x17d   : > { %v1323_v5 = vrot.slane %v1322_v52, 4  ;;  %v1340_v58 = vshrl.u32 %v1227_v7, 16  ;;  %v1343_v20 = vshll.u32 %v1227_v7, 16  ;;  %v1349_v22 = vshll.u32 %v3570_v10, 16 }
 0x17e   : > { %v1810_v25 = vsel %vm3412_vm13, %v2782_v43, %v1809_v28  ;;  %v1811_v32 = vrot.slane %v1809_v28, 4  ;;  %v1880_v33 = vpack.c.b16 %v1869_v39, %v1868_v49  ;;  %v1333_v17 = vrot.slane %v1332_v38, 4 }
 0x17f   : > { %v1328_v0 = vsel %vm3622_vm0, %v1323_v5, %v1327_v56  ;;  %v2166_v4 = vunpack.c.l.b16 %v1810_v25  ;;  %v1342_v8 = vrot.slane %v1340_v58, 4  ;;  %v1345_v50 = vrot.slane %v1343_v20, 5 }
 0x180   : > { %2110 = vrot.lane.b32.xlu2 %v2939_v44, %s3046_s24  ;;  %1890 = vrot.lane.b32.xlu0 %v1879_v45, %s3051_s13  ;;  %v1994_v40 = vunpack.c.l.b16 %v1328_v0  ;;  %v1813_v59 = vsel %vm3412_vm13, %v1811_v32, %v1812_v35  ;;  %v1338_v9 = vsel %vm3622_vm0, %v1333_v17, %v1337_v18  ;;  %v1353_v12 = vshrl.u32 %v3570_v10, 16 }
 0x181   : > { %2192 = vrot.lane.b32.xlu1 %v3771_v30, %s3050_s12  ;;  %v2167_v16 = vunpack.c.l.b16 %v1813_v59  ;;  %v1995_v1 = vunpack.c.l.b16 %v1338_v9  ;;  %v1346_v14 = vor.u32 %v1345_v50, %v1342_v8  ;;  %v1359_v23 = vshll.u32 %v3578_v21, 16 }
 0x182   : > { %v3823_v19 = vpop.permute.xlu2 %2106  ;;  %v1621_v15 = vshrl.u32 %v1530_v37, 16  ;;  %v1351_v3 = vrot.slane %v1349_v22, 5  ;;  %v1355_v45 = vrot.slane %v1353_v12, 4  ;;  %v1624_v30 = vshll.u32 %v1530_v37, 16 }
 0x183   : > { %v3826_v11 = vpack.c.b16 %v2167_v16, %v2166_v4  ;;  %v2007_v61 = vpack.c.b16 %v1995_v1, %v1994_v40  ;;  %v1347_v43 = vrot.slane %v1346_v14, 4  ;;  %v1361_v60 = vrot.slane %v1359_v23, 5 }
 0x184   : > { %v1623_v52 = vrot.slane %v1621_v15, 4  ;;  %v1356_v56 = vor.u32 %v1355_v45, %v1351_v3  ;;  %v1626_v6 = vrot.slane %v1624_v30, 5  ;;  %v1630_v10 = vshll.u32 %v3550_v27, 16  ;;  %v1132_v45 = vld [vmem:[#allocation2 + $0x48] sm:$0xe] }
 0x185   : > { %v1634_v7 = vshrl.u32 %v3550_v27, 16  ;;  %v1352_v21 = vsel %vm3622_vm0, %v1347_v43, %v1351_v3  ;;  %v1640_v36 = vshll.u32 %v3553_v42, 16  ;;  %v1080_v49 = vshrl.u32 %v920_v41, 16  ;;  %v1532_v27 = vld [vmem:[#allocation2 + $0x54] sm:$0xf] }
 0x186   : > { %v1083_v18 = vshll.u32 %v920_v41, 16  ;;  %v1357_v28 = vrot.slane %v1356_v56, 4  ;;  %v1996_v39 = vunpack.c.l.b16 %v1352_v21  ;;  %v1627_v5 = vor.u32 %v1626_v6, %v1623_v52  ;;  %v3856_v43 = vld [vmem:[#allocation2 + $0x4c] sm:$0xf] }
 0x187   : > { %v1632_v38 = vrot.slane %v1630_v10, 5  ;;  %v1636_v35 = vrot.slane %v1634_v7, 4  ;;  %v1642_v44 = vrot.slane %v1640_v36, 5  ;;  %v1082_v25 = vrot.slane %v1080_v49, 4  ;;  %v3858_v10 = vld [vmem:[#allocation2 + $0x50] sm:$0x1] }
 0x188   : > { %1892 = vrot.lane.b32.xlu2 %v1880_v33, %s3051_s13  ;;  %2018 = vrot.lane.b32.xlu0 %v2007_v61, %s3052_s14  ;;  %v1085_v32 = vrot.slane %v1083_v18, 5  ;;  %v1362_v42 = vsel %vm3622_vm0, %v1357_v28, %v1361_v60  ;;  %v1628_v58 = vrot.slane %v1627_v5, 4  ;;  %v1089_v20 = vshll.u32 %v3560_v48, 16  ;;  %v1231_v18 = vld [vmem:[#allocation2 + $0x60] sm:$0xf] }
 0x189   : > { %2062 = vrot.lane.b32.xlu1 %v3789_v47, %s3049_s11  ;;  %v1093_v0 = vshrl.u32 %v3560_v48, 16  ;;  %v1997_v4 = vunpack.c.l.b16 %v1362_v42  ;;  %v1637_v37 = vor.u32 %v1636_v35, %v1632_v38  ;;  %v1099_v59 = vshll.u32 %v3562_v53, 16 }
 0x18a   : > { %v3841_v17 = vpop.permute.xlu0 %1976  ;;  %v3843_v33 = vpop.permute.xlu2 %2052  ;;  %v1086_v40 = vor.u32 %v1085_v32, %v1082_v25  ;;  %v1633_v47 = vsel %vm3622_vm0, %v1628_v58, %v1632_v38  ;;  %v1091_v50 = vrot.slane %v1089_v20, 5  ;;  %v1645_v16 = vshrl.u32 %v1532_v27, 16 }
 0x18b   : > { %v3846_v8 = vpop.permute.xlu1 %1972  ;;  %v1095_v9 = vrot.slane %v1093_v0, 4  ;;  %v2008_v22 = vpack.c.b16 %v1997_v4, %v1996_v39  ;;  %v1638_v12 = vrot.slane %v1637_v37, 4  ;;  %v2122_v48 = vunpack.c.l.b16 %v1633_v47 }
 0x18c   : > { %v1087_v1 = vrot.slane %v1086_v40, 4  ;;  %v1101_v23 = vrot.slane %v1099_v59, 5  ;;  %v1647_v15 = vrot.slane %v1645_v16, 4  ;;  %v1648_v3 = vshll.u32 %v1532_v27, 16  ;;  %v1536_v16 = vld [vmem:[#allocation2 + $0x6c] sm:$0xf] }
 0x18d   : > { %v1096_v14 = vor.u32 %v1095_v9, %v1091_v50  ;;  %v1643_v53 = vsel %vm3622_vm0, %v1638_v12, %v1642_v44  ;;  %v1654_v41 = vshll.u32 %v3689_v26, 16  ;;  %v1658_v61 = vshrl.u32 %v3689_v26, 16 }
 0x18e   : > { %v1092_v30 = vsel %vm3622_vm0, %v1087_v1, %v1091_v50  ;;  %v2123_v60 = vunpack.c.l.b16 %v1643_v53  ;;  %v1650_v6 = vrot.slane %v1648_v3, 5  ;;  %v1664_v36 = vshll.u32 %v3695_v31, 16 }
 0x18f   : > { %v1097_v52 = vrot.slane %v1096_v14, 4  ;;  %v1872_v56 = vunpack.c.l.b16 %v1092_v30  ;;  %v1656_v7 = vrot.slane %v1654_v41, 5  ;;  %v1660_v21 = vrot.slane %v1658_v61, 4  ;;  %v1134_v61 = vld [vmem:[#allocation2 + $0x60] sm:$0xe] }
 0x190   : > { %2020 = vrot.lane.b32.xlu2 %v2008_v22, %s3052_s14  ;;  %v2766_v49 = vrot.slane %v1132_v45, 9  ;;  %v2135_v26 = vpack.c.b16 %v2123_v60, %v2122_v48  ;;  %v1651_v39 = vor.u32 %v1650_v6, %v1647_v15  ;;  %v1199_v5 = vrot.slane %v3856_v43, 5 }
 0x191   : > { %2190 = vrot.lane.b32.xlu1 %v3826_v11, %s3050_s12  ;;  %v1102_v28 = vsel %vm3622_vm0, %v1097_v52, %v1101_v23  ;;  %v1661_v25 = vor.u32 %v1660_v21, %v1656_v7  ;;  %v1666_v32 = vrot.slane %v1664_v36, 5  ;;  %v1202_v31 = vrot.slane %v3858_v10, 5 }
 0x192   : > { %v3867_v38 = vpop.permute.xlu0 %2104  ;;  %v3869_v35 = vpop.permute.xlu2 %1928  ;;  %v1873_v44 = vunpack.c.l.b16 %v1102_v28  ;;  %2146 = vrot.lane.b32.xlu0 %v2135_v26, %s3053_s15  ;;  %v1652_v11 = vrot.slane %v1651_v39, 4  ;;  %v1200_v42 = vsel %vm3412_vm13, %v2766_v49, %v1199_v5  ;;  %v1201_v58 = vrot.slane %v1199_v5, 4  ;;  %v3895_v26 = vld [vmem:[#allocation2 + $0x68] sm:$0x1] }
 0x193   : > { %v3873_v27 = vpop.permute.xlu1 %1974  ;;  %v1388_v20 = vshrl.u32 %v1231_v18, 16  ;;  %v1662_v4 = vrot.slane %v1661_v25, 4  ;;  %v1910_v37 = vunpack.c.l.b16 %v1200_v42  ;;  %v1391_v40 = vshll.u32 %v1231_v18, 16  ;;  %v918_v42 = vld [vmem:[#allocation2 + $0x48] sm:$0xf] }
 0x194   : > { %v1882_v0 = vpack.c.b16 %v1873_v44, %v1872_v56  ;;  %v1657_v59 = vsel %vm3622_vm0, %v1652_v11, %v1656_v7  ;;  %v1203_v47 = vsel %vm3412_vm13, %v1201_v58, %v1202_v31  ;;  %v1397_v9 = vshll.u32 %v3721_v24, 16  ;;  %v3888_v7 = vld [vmem:[#allocation2 + $0x64] sm:$0xf] }
 0x195   : > { %v1390_v50 = vrot.slane %v1388_v20, 4  ;;  %v1667_v22 = vsel %vm3622_vm0, %v1662_v4, %v1666_v32  ;;  %v2124_v12 = vunpack.c.l.b16 %v1657_v59  ;;  %v1911_v48 = vunpack.c.l.b16 %v1203_v47 }
 0x196   : > { %v1393_v1 = vrot.slane %v1391_v40, 5  ;;  %v2125_v14 = vunpack.c.l.b16 %v1667_v22  ;;  %v1399_v23 = vrot.slane %v1397_v9, 5  ;;  %v1401_v15 = vshrl.u32 %v3721_v24, 16 }
 0x197   : > { %v1407_v3 = vshll.u32 %v3727_v46, 16  ;;  %v1921_v45 = vpack.c.b16 %v1911_v48, %v1910_v37  ;;  %v1693_v30 = vshrl.u32 %v1536_v16, 16  ;;  %v1696_v41 = vshll.u32 %v1536_v16, 16 }
 0x198   : > { %v1394_v53 = vor.u32 %v1393_v1, %v1390_v50  ;;  %v2136_v60 = vpack.c.b16 %v2125_v14, %v2124_v12  ;;  %v1403_v52 = vrot.slane %v1401_v15, 4  ;;  %v1702_v6 = vshll.u32 %v3742_v29, 16 }
 0x199   : > { %1896 = vrot.lane.b32.xlu1 %v1882_v0, %s3051_s13  ;;  %v1409_v56 = vrot.slane %v1407_v3, 5  ;;  %v1695_v46 = vrot.slane %v1693_v30, 4  ;;  %v1698_v49 = vrot.slane %v1696_v41, 5  ;;  %v1706_v18 = vshrl.u32 %v3742_v29, 16 }
 0x19a   : > { %v3890_v21 = vpop.permute.xlu2 %2056  ;;  %v3892_v36 = vpop.permute.xlu0 %1924  ;;  %v1395_v24 = vrot.slane %v1394_v53, 4  ;;  %2148 = vrot.lane.b32.xlu2 %v2136_v60, %s3053_s15  ;;  %1934 = vrot.lane.b32.xlu0 %v1921_v45, %s3048_s9  ;;  %v1404_v39 = vor.u32 %v1403_v52, %v1399_v23  ;;  %v1704_v5 = vrot.slane %v1702_v6, 5  ;;  %v1712_v44 = vshll.u32 %v3744_v62, 16  ;;  %v922_v45 = vld [vmem:[#allocation2 + $0x60] sm:$0xf] }
 0x19b   : > { %v3899_v28 = vpop.permute.xlu1 %2102  ;;  %v2768_v25 = vrot.slane %v1134_v61, 9  ;;  %v1699_v31 = vor.u32 %v1698_v49, %v1695_v46  ;;  %v1708_v11 = vrot.slane %v1706_v18, 4  ;;  %v1213_v29 = vrot.slane %v3888_v7, 5 }
 0x19c   : > { %v1400_v32 = vsel %vm3622_vm0, %v1395_v24, %v1399_v23  ;;  %v1405_v58 = vrot.slane %v1404_v39, 4  ;;  %v1714_v0 = vrot.slane %v1712_v44, 5  ;;  %v1216_v4 = vrot.slane %v3895_v26, 5 }
 0x19d   : > { %v2000_v20 = vunpack.c.l.b16 %v1400_v32  ;;  %v1700_v37 = vrot.slane %v1699_v31, 4  ;;  %v1709_v40 = vor.u32 %v1708_v11, %v1704_v5  ;;  %v1214_v59 = vsel %vm3412_vm13, %v2768_v25, %v1213_v29  ;;  %v1229_v25 = vld [vmem:[#allocation2 + $0x54] sm:$0xf] }
 0x19e   : > { %v1215_v62 = vrot.slane %v1213_v29, 4  ;;  %v1410_v47 = vsel %vm3622_vm0, %v1405_v58, %v1409_v56  ;;  %v1914_v50 = vunpack.c.l.b16 %v1214_v59  ;;  %v1056_v9 = vshrl.u32 %v918_v42, 16 }
 0x19f   : > { %v1059_v16 = vshll.u32 %v918_v42, 16  ;;  %v2001_v22 = vunpack.c.l.b16 %v1410_v47  ;;  %v1705_v12 = vsel %vm3622_vm0, %v1700_v37, %v1704_v5  ;;  %v1710_v48 = vrot.slane %v1709_v40, 4 }
 0x1a0   : > { %v1217_v1 = vsel %vm3412_vm13, %v1215_v62, %v1216_v4  ;;  %v2128_v14 = vunpack.c.l.b16 %v1705_v12  ;;  %v1058_v15 = vrot.slane %v1056_v9, 4  ;;  %v1065_v60 = vshll.u32 %v3856_v43, 16  ;;  %v1233_v12 = vld [vmem:[#allocation2 + $0x6c] sm:$0xf] }
 0x1a1   : > { %v1915_v23 = vunpack.c.l.b16 %v1217_v1  ;;  %v1061_v3 = vrot.slane %v1059_v16, 5  ;;  %v2010_v53 = vpack.c.b16 %v2001_v22, %v2000_v20  ;;  %v1715_v30 = vsel %vm3622_vm0, %v1710_v48, %v1714_v0 }
 0x1a2   : > { %v3916_v41 = vpop.permute.xlu2 %2184  ;;  %v3918_v61 = vpop.permute.xlu0 %1926  ;;  %v1069_v52 = vshrl.u32 %v3856_v43, 16  ;;  %v2129_v56 = vunpack.c.l.b16 %v1715_v30  ;;  %v1075_v49 = vshll.u32 %v3858_v10, 16  ;;  %v1067_v18 = vrot.slane %v1065_v60, 5 }
 0x1a3   : > { %v1923_v6 = vpack.c.b16 %v1915_v23, %v1914_v50  ;;  %v3922_v24 = vpop.permute.xlu1 %1980  ;;  %v1062_v46 = vor.u32 %v1061_v3, %v1058_v15  ;;  %2024 = vrot.lane.b32.xlu1 %v2010_v53, %s3052_s14  ;;  %v1104_v5 = vshrl.u32 %v922_v45, 16  ;;  %v1107_v44 = vshll.u32 %v922_v45, 16 }
 0x1a4   : > { %v1071_v39 = vrot.slane %v1069_v52, 4  ;;  %v2138_v32 = vpack.c.b16 %v2129_v56, %v2128_v14  ;;  %v1077_v11 = vrot.slane %v1075_v49, 5  ;;  %v1113_v43 = vshll.u32 %v3888_v7, 16 }
 0x1a5   : > { %1938 = vrot.lane.b32.xlu0 %v1923_v6, %s3048_s9  ;;  %v1063_v31 = vrot.slane %v1062_v46, 4  ;;  %v1106_v42 = vrot.slane %v1104_v5, 4  ;;  %v1109_v58 = vrot.slane %v1107_v44, 5  ;;  %v1117_v20 = vshrl.u32 %v3888_v7, 16  ;;  %v3946_v6 = vld [vmem:[#allocation2 + $0x70] sm:$0xf] }
 0x1a6   : > { %v1072_v29 = vor.u32 %v1071_v39, %v1067_v18  ;;  %2152 = vrot.lane.b32.xlu2 %v2138_v32, %s3053_s15  ;;  %v1115_v0 = vrot.slane %v1113_v43, 5  ;;  %v1123_v4 = vshll.u32 %v3895_v26, 16  ;;  %v1364_v37 = vshrl.u32 %v1229_v25, 16  ;;  %v3948_v5 = vld [vmem:[#allocation2 + $0x74] sm:$0x1] }
 0x1a7   : > { %v1068_v10 = vsel %vm3622_vm0, %v1063_v31, %v1067_v18  ;;  %v1110_v62 = vor.u32 %v1109_v58, %v1106_v42  ;;  %v1119_v47 = vrot.slane %v1117_v20, 4  ;;  %v1367_v16 = vshll.u32 %v1229_v25, 16  ;;  %v1534_v44 = vld [vmem:[#allocation2 + $0x60] sm:$0xf] }
 0x1a8   : > { %v1073_v40 = vrot.slane %v1072_v29, 4  ;;  %v1870_v59 = vunpack.c.l.b16 %v1068_v10  ;;  %v1125_v50 = vrot.slane %v1123_v4, 5  ;;  %v1366_v9 = vrot.slane %v1364_v37, 4 }
 0x1a9   : > { %v1373_v22 = vshll.u32 %v3761_v13, 16  ;;  %v1111_v48 = vrot.slane %v1110_v62, 4  ;;  %v1120_v1 = vor.u32 %v1119_v47, %v1115_v0  ;;  %v1377_v14 = vshrl.u32 %v3761_v13, 16 }
 0x1aa   : > { %v1078_v7 = vsel %vm3622_vm0, %v1073_v40, %v1077_v11  ;;  %v3937_v23 = vpop.permute.xlu2 %1936  ;;  %v3939_v26 = vpop.permute.xlu0 %2054  ;;  %v1369_v3 = vrot.slane %v1367_v16, 5  ;;  %v1383_v53 = vshll.u32 %v3765_v57, 16  ;;  %v1412_v46 = vshrl.u32 %v1233_v12, 16 }
 0x1ab   : > { %v1871_v15 = vunpack.c.l.b16 %v1078_v7  ;;  %v1375_v45 = vrot.slane %v1373_v22, 5  ;;  %v3942_v30 = vpop.permute.xlu1 %2180  ;;  %v1116_v60 = vsel %vm3622_vm0, %v1111_v48, %v1115_v0  ;;  %v1121_v52 = vrot.slane %v1120_v1, 4 }
 0x1ac   : > { %v1379_v56 = vrot.slane %v1377_v14, 4  ;;  %v1874_v49 = vunpack.c.l.b16 %v1116_v60  ;;  %v1370_v18 = vor.u32 %v1369_v3, %v1366_v9  ;;  %v1385_v39 = vrot.slane %v1383_v53, 5  ;;  %v2933_v60 = vld [vmem:[#allocation2 + $0x6c] sm:$0xff] }
 0x1ad   : > { %v1881_v13 = vpack.c.b16 %v1871_v15, %v1870_v59  ;;  %v1126_v57 = vsel %vm3622_vm0, %v1121_v52, %v1125_v50  ;;  %v1414_v32 = vrot.slane %v1412_v46, 4  ;;  %v1415_v31 = vshll.u32 %v1233_v12, 16 }
 0x1ae   : > { %v1380_v25 = vor.u32 %v1379_v56, %v1375_v45  ;;  %v1875_v11 = vunpack.c.l.b16 %v1126_v57  ;;  %v1371_v43 = vrot.slane %v1370_v18, 4  ;;  %v1421_v29 = vshll.u32 %v3946_v6, 16 }
 0x1af   : > { %1894 = vrot.lane.b32.xlu1 %v1881_v13, %s3051_s13  ;;  %v1425_v42 = vshrl.u32 %v3946_v6, 16  ;;  %v1417_v20 = vrot.slane %v1415_v31, 5  ;;  %v1431_v10 = vshll.u32 %v3948_v5, 16  ;;  %v1669_v0 = vshrl.u32 %v1534_v44, 16  ;;  %v1538_v13 = vld [vmem:[#allocation2 + $0x78] sm:$0xf] }
 0x1b0   : > { %v1381_v58 = vrot.slane %v1380_v25, 4  ;;  %v1883_v4 = vpack.c.b16 %v1875_v11, %v1874_v49  ;;  %v1376_v37 = vsel %vm3622_vm0, %v1371_v43, %v1375_v45  ;;  %v1423_v40 = vrot.slane %v1421_v29, 5 }
 0x1b1   : > { %v1427_v59 = vrot.slane %v1425_v42, 4  ;;  %v1998_v47 = vunpack.c.l.b16 %v1376_v37  ;;  %v1418_v50 = vor.u32 %v1417_v20, %v1414_v32  ;;  %v1671_v7 = vrot.slane %v1669_v0, 4  ;;  %v2919_v32 = vld [vmem:[#allocation2 + $0x18] sm:$0xff] }
 0x1b2   : > { %v1386_v62 = vsel %vm3622_vm0, %v1381_v58, %v1385_v39  ;;  %v1887_v9 = vpop.permute.xlu2 %1886  ;;  %v3960_v16 = vpop.permute.xlu0 %2182  ;;  %1898 = vrot.lane.b32.xlu2 %v1883_v4, %s3051_s13  ;;  %v1672_v48 = vshll.u32 %v1534_v44, 16  ;;  %v1678_v15 = vshll.u32 %v3796_v34, 16  ;;  %v1682_v3 = vshrl.u32 %v3796_v34, 16  ;;  %v3970_v44 = vld [vmem:[#allocation2 + $0x7c] sm:$0xf] }
 0x1b3   : > { %v1999_v22 = vunpack.c.l.b16 %v1386_v62  ;;  %v1428_v12 = vor.u32 %v1427_v59, %v1423_v40  ;;  %v3963_v1 = vpop.permute.xlu1 %1930  ;;  %v1419_v14 = vrot.slane %v1418_v50, 4  ;;  %v1688_v45 = vshll.u32 %v3801_v2, 16  ;;  %v3977_v58 = vld [vmem:[#allocation2 + $0x80] sm:$0x1] }
 0x1b4   : > { %v1433_v56 = vrot.slane %v1431_v10, 5  ;;  %v1674_v46 = vrot.slane %v1672_v48, 5  ;;  %v1680_v18 = vrot.slane %v1678_v15, 5  ;;  %v1684_v39 = vrot.slane %v1682_v3, 4 }
 0x1b5   : > { %v2009_v53 = vpack.c.b16 %v1999_v22, %v1998_v47  ;;  %v1429_v52 = vrot.slane %v1428_v12, 4  ;;  %v1424_v49 = vsel %vm3622_vm0, %v1419_v14, %v1423_v40  ;;  %v1690_v25 = vrot.slane %v1688_v45, 5  ;;  %v1442_v12 = vld [vmem:[#allocation2 + $0x6c] sm:$0xe] }
 0x1b6   : > { %v2002_v2 = vunpack.c.l.b16 %v1424_v49  ;;  %v1675_v57 = vor.u32 %v1674_v46, %v1671_v7  ;;  %v1685_v11 = vor.u32 %v1684_v39, %v1680_v18  ;;  %v1717_v43 = vshrl.u32 %v1538_v13, 16 }
 0x1b7   : > { %2022 = vrot.lane.b32.xlu0 %v2009_v53, %s3052_s14  ;;  %1986 = vrot.lane.b32.xlu1 %v2933_v60, %s3047_s8  ;;  %v1434_v34 = vsel %vm3622_vm0, %v1429_v52, %v1433_v56  ;;  %v2202_v42 = vsel %vm2196_vm1, %v2919_v32, %v1887_v9  ;;  %v1720_v20 = vshll.u32 %v1538_v13, 16  ;;  %v1726_v10 = vshll.u32 %v3970_v44, 16  ;;  %v2941_v53 = vld [vmem:[#allocation2 + $0x78] sm:$0xff] }
 0x1b8   : > { %v2003_v31 = vunpack.c.l.b16 %v1434_v34  ;;  %v1676_v29 = vrot.slane %v1675_v57, 4  ;;  %v1686_v4 = vrot.slane %v1685_v11, 4  ;;  %v1719_v37 = vrot.slane %v1717_v43, 4 }
 0x1b9   : > { %v1730_v40 = vshrl.u32 %v3970_v44, 16  ;;  %v1722_v50 = vrot.slane %v1720_v20, 5  ;;  %v1728_v22 = vrot.slane %v1726_v10, 5  ;;  %v1736_v15 = vshll.u32 %v3977_v58, 16  ;;  %v1747_v10 = vld [vmem:[#allocation2 + $0x78] sm:$0xe] }
 0x1ba   : > { %v2011_v0 = vpack.c.b16 %v2003_v31, %v2002_v2  ;;  %v2015_v59 = vpop.permute.xlu2 %2014  ;;  %v3981_v62 = vpop.permute.xlu0 %1932  ;;  %v1681_v47 = vsel %vm3622_vm0, %v1676_v29, %v1680_v18  ;;  %v1691_v7 = vsel %vm3622_vm0, %v1686_v4, %v1690_v25  ;;  %v2225_v45 = vsel %vm2221_vm2, %v2202_v42, %v3918_v61 }
 0x1bb   : > { %v3985_v9 = vpop.permute.xlu1 %2058  ;;  %v2126_v48 = vunpack.c.l.b16 %v1681_v47  ;;  %v1732_v14 = vrot.slane %v1730_v40, 4  ;;  %v2127_v3 = vunpack.c.l.b16 %v1691_v7  ;;  %v1723_v60 = vor.u32 %v1722_v50, %v1719_v37 }
 0x1bc   : > { %2026 = vrot.lane.b32.xlu2 %v2011_v0, %s3052_s14  ;;  %v1518_v52 = vrot.slane %v3946_v6, 5  ;;  %v2776_v46 = vrot.slane %v1442_v12, 9  ;;  %v1521_v39 = vrot.slane %v3948_v5, 5  ;;  %v1738_v2 = vrot.slane %v1736_v15, 5  ;;  %v2348_v6 = vld [vmem:[%s4233_s3 + $0x20] sm:$0xf] }
 0x1bd   : > { %v1733_v56 = vor.u32 %v1732_v14, %v1728_v22  ;;  %v2137_v13 = vpack.c.b16 %v2127_v3, %v2126_v48  ;;  %v1724_v49 = vrot.slane %v1723_v60, 4  ;;  %v2242_v61 = vsel %vm2238_vm3, %v2225_v45, %v3873_v27  ;;  %v2945_v48 = vld [vmem:[%s4233_s3 + $0x18] sm:$0xff]  ;;  %v2944_v60 = vld [vmem:[%s4233_s3 + $0x10] sm:$0xff]  ;;  %s2690_s14 = sshll.u32 %s4265_s10, 1 }
 0x1be   : > { %v1520_v18 = vrot.slane %v1518_v52, 4  ;;  %v2259_v5 = vsel %vm2255_vm4, %v2242_v61, %v2015_v59  ;;  %v1519_v27 = vsel %vm3412_vm13, %v2776_v46, %v1518_v52  ;;  %v1823_v0 = vrot.slane %v3970_v44, 5 }
 0x1bf   : > { %2114 = vrot.lane.b32.xlu1 %v2941_v53, %s3046_s24  ;;  %v1734_v34 = vrot.slane %v1733_v56, 4  ;;  %2150 = vrot.lane.b32.xlu0 %v2137_v13, %s3053_s15  ;;  %v1729_v57 = vsel %vm3622_vm0, %v1724_v49, %v1728_v22  ;;  %v2276_v20 = vsel %vm2272_vm5, %v2259_v5, %v3939_v26  ;;  %v2370_v4 = vunpack.c.l.b16 %v2348_v6 }
 0x1c0   : > { %v1522_v25 = vsel %vm3412_vm13, %v1520_v18, %v1521_v39  ;;  %v2130_v31 = vunpack.c.l.b16 %v1729_v57  ;;  %v2042_v40 = vunpack.c.l.b16 %v1519_v27  ;;  %v1825_v59 = vrot.slane %v1823_v0, 4  ;;  %v2943_v18 = vld [vmem:[%s4233_s3 + $0x8] sm:$0xff] }
 0x1c1   : > { %v1739_v32 = vsel %vm3622_vm0, %v1734_v34, %v1738_v2  ;;  %v2043_v11 = vunpack.c.l.b16 %v1522_v25  ;;  %v2375_v47 = vpack.c.b16 %v2370_v4, %v2370_v4  ;;  %v2784_v50 = vrot.slane %v1747_v10, 9  ;;  %v2922_v25 = vld [vmem:[#allocation2 + $0x3c] sm:$0xff] }
 0x1c2   : > { %v4011_v43 = vpop.permute.xlu2 %2142  ;;  %v4013_v29 = vpop.permute.xlu0 %2060  ;;  %v2131_v42 = vunpack.c.l.b16 %v1739_v32  ;;  %v1826_v22 = vrot.slane %v3977_v58, 5  ;;  %v2293_v12 = vsel %vm2289_vm7, %v2276_v20, %v3899_v28  ;;  %v2918_v58 = vld [vmem:[#allocation2 + $0xc] sm:$0xff]  ;;  %v2920_v20 = vld [vmem:[#allocation2 + $0x24] sm:$0xff] }
 0x1c3   : > { %v4018_v37 = vpop.permute.xlu1 %2186  ;;  %v2051_v26 = vpack.c.b16 %v2043_v11, %v2042_v40  ;;  %v2399_v44 = vsel %vm2397_vm6, %v2375_v47, 0  ;;  %v1824_v28 = vsel %vm3412_vm13, %v2784_v50, %v1823_v0  ;;  %v2921_v50 = vld [vmem:[#allocation2 + $0x30] sm:$0xff] }
 0x1c4   : > { %v2139_v55 = vpack.c.b16 %v2131_v42, %v2130_v31  ;;  %v1827_v7 = vsel %vm3412_vm13, %v1825_v59, %v1826_v22  ;;  %2404 = vmatpush.bf16.msra.mxu1 %v2399_v44  ;;  %2947 = vmatpush.bf16.msrb.mxu3 %v2399_v44  ;;  %v2170_v56 = vunpack.c.l.b16 %v1824_v28  ;;  %v2310_v42 = vsel %vm2306_vm8, %v2293_v12, %v4011_v43 }
 0x1c5   : > { %v2171_v3 = vunpack.c.l.b16 %v1827_v7  ;;  %v2327_v0 = vsel %vm2323_vm9, %v2310_v42, %v3960_v16  ;;  %v2925_v42 = vld [vmem:[#allocation2 + $0x60] sm:$0xff] }
 0x1c6   : > { %2154 = vrot.lane.b32.xlu2 %v2139_v55, %s3053_s15  ;;  %s2691_s15 = sshll.u32 %s4261_s25, 5 }
 0x1c7   : > { %2066 = vrot.lane.b32.xlu0 %v2051_v26, %s3049_s11  ;;  %v2179_v13 = vpack.c.b16 %v2171_v3, %v2170_v56  ;;  %s300_s16 = sadd.s32 %s2691_s15, %s2690_s14 }
 0x1c8   : > { %2405 = vmatpush.bf16.msra.mxu1 %v2945_v48  ;;  %2948 = vmatpush.bf16.msrb.mxu3 %v2945_v48  ;;  %s2692_s19 = sshll.u32 %s300_s16, 3 }
 0x1c9   : > { %s4166_s22 = scalar_lea.vmem %s4237_s7, %s2692_s19 }
 0x1ca   : > { %v4033_v14 = vpop.permute.xlu2 %2064  ;;  %v1885_v15 = vpop.permute.xlu0 %1884 }
 0x1cb   : > { %v2013_v45 = vpop.permute.xlu1 %2012  ;;  %v2199_v53 = vsel %vm2196_vm1, %v2918_v58, %v1885_v15 }
 0x1cc   : > { %v2223_v52 = vsel %vm2221_vm2, %v2199_v53, %v3892_v36  ;;  %2406 = vmatpush.bf16.msra.mxu1 %v2944_v60  ;;  %2949 = vmatpush.bf16.msrb.mxu3 %v2944_v60  ;;  %v2924_v53 = vld [vmem:[#allocation2 + $0x54] sm:$0xff] }
 0x1cd   : > { %v2240_v51 = vsel %vm2238_vm3, %v2223_v52, %v3846_v8 }
 0x1ce   : > { %v2257_v46 = vsel %vm2255_vm4, %v2240_v51, %v2013_v45 }
 0x1cf   : > { %v2274_v49 = vsel %vm2272_vm5, %v2257_v46, %v3843_v33  ;;  %2194 = vrot.lane.b32.xlu0 %v2179_v13, %s3050_s12  ;;  %v2942_v33 = vld [vmem:[%s4233_s3] sm:$0xff] }
 0x1d0   : > { %v2291_v39 = vsel %vm2289_vm7, %v2274_v49, %v3776_v63  ;;  %2407 = vmatpush.bf16.msra.mxu1 %v2943_v18  ;;  %2950 = vmatpush.bf16.msrb.mxu3 %v2943_v18 }
 0x1d2   : > { %v4052_v36 = vpop.permute.xlu2 %1982  ;;  %v2141_v8 = vpop.permute.xlu0 %2140 }
 0x1d3   : > { %v2109_v34 = vpop.permute.xlu1 %2108  ;;  %v2308_v2 = vsel %vm2306_vm8, %v2291_v39, %v2141_v8 }
 0x1d4   : > { %2408 = vmatpush.bf16.msra.mxu1 %v2942_v33  ;;  %v2325_v63 = vsel %vm2323_vm9, %v2308_v2, %v3942_v30  ;;  %2951 = vmatpush.bf16.msrb.mxu3 %v2942_v33  ;;  %v2923_v2 = vld [vmem:[#allocation2 + $0x48] sm:$0xff] }
 0x1d7   : > { %2897 = vmatmul.msk.bf16.vlgmr.msra.gmra.mxu1 %vm2380_vm10, %v2325_v63 }
 0x1da   : > { %v4060_v61 = vpop.permute.xlu2 %2110  ;;  %v2189_v6 = vpop.permute.xlu0 %2188 }
 0x1db   : > { %v1889_v57 = vpop.permute.xlu1 %1888 }
 0x1dc   : > { %v2205_v10 = vsel %vm2196_vm1, %v2920_v20, %v1889_v57 }
 0x1e2   : > { %v1893_v5 = vpop.permute.xlu2 %1892  ;;  %v1985_v32 = vpop.permute.xlu0 %1984 }
 0x1e3   : > { %v2017_v31 = vpop.permute.xlu1 %2016  ;;  %v2211_v27 = vsel %vm2196_vm1, %v2922_v25, %v1893_v5 }
 0x1e4   : > { %v2231_v11 = vsel %vm2221_vm2, %v2211_v27, %v3981_v62  ;;  %v2227_v62 = vsel %vm2221_vm2, %v2205_v10, %v3869_v35 }
 0x1e5   : > { %v2248_v30 = vsel %vm2238_vm3, %v2231_v11, %v3922_v24  ;;  %v2244_v47 = vsel %vm2238_vm3, %v2227_v62, %v3841_v17 }
 0x1e6   : > { %v2261_v16 = vsel %vm2255_vm4, %v2244_v47, %v2017_v31 }
 0x1e7   : > { %2898 = vmatmul.msk.bf16.gmra.mxu1 %vm2380_vm10, %v2327_v0  ;;  %v2278_v12 = vsel %vm2272_vm5, %v2261_v16, %v3890_v21 }
 0x1e8   : > { %v2295_v35 = vsel %vm2289_vm7, %v2278_v12, %v3867_v38 }
 0x1ea   : > { %v2021_v4 = vpop.permute.xlu2 %2020  ;;  %v2113_v55 = vpop.permute.xlu0 %2112 }
 0x1eb   : > { %v2145_v40 = vpop.permute.xlu1 %2144  ;;  %v2265_v59 = vsel %vm2255_vm4, %v2248_v30, %v2021_v4 }
 0x1ec   : > { %v2282_v24 = vsel %vm2272_vm5, %v2265_v59, %v4013_v29  ;;  %v2312_v29 = vsel %vm2306_vm8, %v2295_v35, %v2145_v40 }
 0x1ed   : > { %v2299_v43 = vsel %vm2289_vm7, %v2282_v24, %v2109_v34  ;;  %v2329_v17 = vsel %vm2323_vm9, %v2312_v29, %v3916_v41 }
 0x1f2   : > { %v1891_v22 = vpop.permute.xlu0 %1890 }
 0x1f3   : > { %v2193_v26 = vpop.permute.xlu1 %2192  ;;  %v2208_v44 = vsel %vm2196_vm1, %v2921_v50, %v1891_v22  ;;  %v2474_v50 = vld [vmem:[%s4235_s5] sm:$0xf] }
 0x1f4   : > { %v2229_v7 = vsel %vm2221_vm2, %v2208_v44, %v3963_v1  ;;  %v2149_v60 = vpop.permute.xlu2 %2148  ;;  %v2504_v22 = vsel %vm2397_vm6, %v2474_v50, 0 }
 0x1f5   : > { %v2246_v48 = vsel %vm2238_vm3, %v2229_v7, %v3798_v54  ;;  %v2316_v46 = vsel %vm2306_vm8, %v2299_v43, %v2149_v60  ;;  %2513 = vmatpush.bf16.msra.mxu2 %v2504_v22  ;;  %2952 = vmatpush.bf16.msra.mxu3 %v2504_v22 }
 0x1f6   : > { %v2333_v39 = vsel %vm2323_vm9, %v2316_v46, %v2189_v6 }
 0x1f7   : > { %2899 = vmatmul.msk.bf16.gmra.mxu1 %vm2380_vm10, %v2329_v17 }
 0x1fa   : > { %v2019_v58 = vpop.permute.xlu0 %2018 }
 0x1fb   : > { %v2063_v21 = vpop.permute.xlu1 %2062  ;;  %v2263_v28 = vsel %vm2255_vm4, %v2246_v48, %v2019_v58 }
 0x1fc   : > { %v2280_v38 = vsel %vm2272_vm5, %v2263_v28, %v3985_v9 }
 0x1fd   : > { %v2297_v3 = vsel %vm2289_vm7, %v2280_v38, %v3823_v19 }
 0x200   : > { %v2153_v49 = vpop.permute.xlu2 %2152 }
 0x203   : > { %v2191_v15 = vpop.permute.xlu1 %2190 }
 0x204   : > { %v2147_v1 = vpop.permute.xlu0 %2146 }
 0x205   : > { %v2314_v45 = vsel %vm2306_vm8, %v2297_v3, %v2147_v1 }
 0x206   : > { %v2331_v41 = vsel %vm2323_vm9, %v2314_v45, %v4018_v37 }
 0x207   : > { %2900 = vmatmul.msk.bf16.gmra.mxu1 %vm2380_vm10, %v2331_v41 }
 0x20b   : > { %v1897_v54 = vpop.permute.xlu1 %1896 }
 0x20c   : > { %v2217_v52 = vsel %vm2196_vm1, %v2924_v53, %v1897_v54  ;;  %v1935_v56 = vpop.permute.xlu0 %1934  ;;  %v1899_v5 = vpop.permute.xlu2 %1898 }
 0x20d   : > { %v2235_v9 = vsel %vm2221_vm2, %v2217_v52, %v3937_v23  ;;  %v2220_v10 = vsel %vm2196_vm1, %v2925_v42, %v1899_v5 }
 0x20e   : > { %v2252_v19 = vsel %vm2238_vm3, %v2235_v9, %v1985_v32 }
 0x215   : > { %v2025_v51 = vpop.permute.xlu1 %2024 }
 0x216   : > { %v2269_v13 = vsel %vm2255_vm4, %v2252_v19, %v2025_v51 }
 0x217   : > { %v2286_v37 = vsel %vm2272_vm5, %v2269_v13, %v4033_v14  ;;  %2901 = vmatmul.msk.bf16.gmra.mxu1 %vm2380_vm10, %v2333_v39  ;;  %v1939_v34 = vpop.permute.xlu0 %1938 }
 0x218   : > { %v2303_v18 = vsel %vm2289_vm7, %v2286_v37, %v2113_v55  ;;  %v2237_v0 = vsel %vm2221_vm2, %v2220_v10, %v1939_v34 }
 0x219   : > { %v2320_v8 = vsel %vm2306_vm8, %v2303_v18, %v2153_v49 }
 0x21a   : > { %v2337_v23 = vsel %vm2323_vm9, %v2320_v8, %v2193_v26  ;;  %v3003_v26 = vld [vmem:[%s4234_s4] ss:$0 sm:$0xff] }
 0x21b   : > { %2903 = vmatmul.msk.bf16.vlgmr.msrb.gmra.mxu3 %vm2380_vm10, %v2337_v23 }
 0x221   : > { %v1895_v33 = vpop.permute.xlu1 %1894 }
 0x222   : > { %v2214_v63 = vsel %vm2196_vm1, %v2923_v2, %v1895_v33 }
 0x223   : > { %v2233_v14 = vsel %vm2221_vm2, %v2214_v63, %v1935_v56 }
 0x224   : > { %v2250_v25 = vsel %vm2238_vm3, %v2233_v14, %v4052_v36  ;;  %v2027_v36 = vpop.permute.xlu2 %2026 }
 0x229   : > { %v2023_v57 = vpop.permute.xlu0 %2022  ;;  %v1987_v31 = vpop.permute.xlu1 %1986 }
 0x22a   : > { %v2267_v6 = vsel %vm2255_vm4, %v2250_v25, %v2023_v57  ;;  %v2254_v4 = vsel %vm2238_vm3, %v2237_v0, %v1987_v31 }
 0x22b   : > { %v2284_v32 = vsel %vm2272_vm5, %v2267_v6, %v2063_v21  ;;  %v2271_v40 = vsel %vm2255_vm4, %v2254_v4, %v2027_v36 }
 0x22c   : > { %v2301_v27 = vsel %vm2289_vm7, %v2284_v32, %v4060_v61  ;;  %v2155_v24 = vpop.permute.xlu2 %2154 }
 0x231   : > { %v2151_v11 = vpop.permute.xlu0 %2150  ;;  %v2115_v59 = vpop.permute.xlu1 %2114 }
 0x232   : > { %v2318_v30 = vsel %vm2306_vm8, %v2301_v27, %v2151_v11 }
 0x233   : > { %v2335_v20 = vsel %vm2323_vm9, %v2318_v30, %v2191_v15 }
 0x234   : > { %2902 = vmatmul.msk.bf16.gmra.mxu1 %vm2380_vm10, %v2335_v20 }
 0x239   : > { %v2067_v55 = vpop.permute.xlu0 %2066 }
 0x23a   : > { %v2288_v61 = vsel %vm2272_vm5, %v2271_v40, %v2067_v55 }
 0x23b   : > { %v2305_v62 = vsel %vm2289_vm7, %v2288_v61, %v2115_v59 }
 0x23c   : > { %v2322_v47 = vsel %vm2306_vm8, %v2305_v62, %v2155_v24  ;;  %v4160_v62 = vld [vmem:[%s4236_s6] ss:$0 sm:$0xff] }
 0x241   : > { %v2195_v43 = vpop.permute.xlu0 %2194 }
 0x242   : > { %v2339_v16 = vsel %vm2323_vm9, %v2322_v47, %v2195_v43 }
 0x243   : > { %2904 = vmatmul.msk.bf16.gmra.mxu3 %vm2380_vm10, %v2339_v16 }
 0x254   : > { %v2410_v12 = vpop.f32.mrf.mxu1 }
 0x255   : > { %v2411_v44 = vadd.f32 %v3003_v26, %v2410_v12 }
 0x257   : > { %v2450_v7 = vmax.f32 %v2411_v44, 0.0 }
 0x25c   : > { %v2412_v35 = vpop.f32.mrf.mxu1 }
 0x25d   : > { %v2413_v29 = vadd.f32 %v3003_v26, %v2412_v35 }
 0x25f   : > { %v2451_v17 = vmax.f32 %v2413_v29, 0.0 }
 0x261   : > { %v2466_v48 = vpack.c.bf16 %v2451_v17, %v2450_v7 }
 0x263   : > { %2905 = vmatmul.msk.bf16.vlgmr.msra.gmra.mxu2 %vm2196_vm1, %v2466_v48 }
 0x264   : > { %v2415_v58 = vpop.f32.mrf.mxu1 }
 0x265   : > { %v2416_v21 = vadd.f32 %v3003_v26, %v2415_v58 }
 0x267   : > { %v2452_v15 = vmax.f32 %v2416_v21, 0.0 }
 0x26c   : > { %v2417_v28 = vpop.f32.mrf.mxu1 }
 0x26d   : > { %v2418_v38 = vadd.f32 %v3003_v26, %v2417_v28 }
 0x26f   : > { %v2453_v3 = vmax.f32 %v2418_v38, 0.0 }
 0x271   : > { %v2467_v1 = vpack.c.bf16 %v2453_v3, %v2452_v15 }
 0x273   : > { %2906 = vmatmul.msk.bf16.gmra.mxu2 %vm2196_vm1, %v2467_v1 }
 0x274   : > { %v2420_v45 = vpop.f32.mrf.mxu1 }
 0x275   : > { %v2421_v41 = vadd.f32 %v3003_v26, %v2420_v45 }
 0x277   : > { %v2454_v60 = vmax.f32 %v2421_v41, 0.0 }
 0x27c   : > { %v2422_v54 = vpop.f32.mrf.mxu1 }
 0x27d   : > { %v2423_v53 = vadd.f32 %v3003_v26, %v2422_v54 }
 0x27f   : > { %v2455_v52 = vmax.f32 %v2423_v53, 0.0 }
 0x281   : > { %v2468_v9 = vpack.c.bf16 %v2455_v52, %v2454_v60 }
 0x283   : > { %2907 = vmatmul.msk.bf16.gmra.mxu2 %vm2196_vm1, %v2468_v9 }
 0x284   : > { %v2425_v56 = vpop.f32.mrf.mxu1 }
 0x285   : > { %v2426_v51 = vadd.f32 %v3003_v26, %v2425_v56 }
 0x287   : > { %v2456_v13 = vmax.f32 %v2426_v51, 0.0 }
 0x28c   : > { %v2427_v19 = vpop.f32.mrf.mxu1 }
 0x28d   : > { %v2428_v46 = vadd.f32 %v3003_v26, %v2427_v19 }
 0x28f   : > { %v2457_v37 = vmax.f32 %v2428_v46, 0.0 }
 0x291   : > { %v2469_v49 = vpack.c.bf16 %v2457_v37, %v2456_v13 }
 0x293   : > { %2908 = vmatmul.msk.bf16.gmra.mxu2 %vm2196_vm1, %v2469_v49 }
 0x294   : > { %v2430_v18 = vpop.f32.mrf.mxu1 }
 0x295   : > { %v2431_v39 = vadd.f32 %v3003_v26, %v2430_v18 }
 0x297   : > { %v2458_v34 = vmax.f32 %v2431_v39, 0.0 }
 0x29c   : > { %v2432_v8 = vpop.f32.mrf.mxu1 }
 0x29d   : > { %v2433_v23 = vadd.f32 %v3003_v26, %v2432_v8 }
 0x29e   : > { %v2440_v14 = vpop.f32.mrf.mxu3 }
 0x29f   : > { %v2459_v33 = vmax.f32 %v2433_v23, 0.0  ;;  %v2441_v42 = vadd.f32 %v3003_v26, %v2440_v14 }
 0x2a1   : > { %v2470_v2 = vpack.c.bf16 %v2459_v33, %v2458_v34  ;;  %v2462_v10 = vmax.f32 %v2441_v42, 0.0 }
 0x2a3   : > { %2909 = vmatmul.msk.bf16.gmra.mxu2 %vm2196_vm1, %v2470_v2 }
 0x2a6   : > { %v2442_v31 = vpop.f32.mrf.mxu3 }
 0x2a7   : > { %v2443_v11 = vadd.f32 %v3003_v26, %v2442_v31 }
 0x2a9   : > { %v2463_v20 = vmax.f32 %v2443_v11, 0.0 }
 0x2ab   : > { %v2472_v0 = vpack.c.bf16 %v2463_v20, %v2462_v10 }
 0x2b1   : > { %v2435_v63 = vpop.f32.mrf.mxu1 }
 0x2b2   : > { %v2436_v57 = vadd.f32 %v3003_v26, %v2435_v63 }
 0x2b4   : > { %v2460_v5 = vmax.f32 %v2436_v57, 0.0 }
 0x2b9   : > { %v2437_v25 = vpop.f32.mrf.mxu1 }
 0x2ba   : > { %v2438_v6 = vadd.f32 %v3003_v26, %v2437_v25 }
 0x2bc   : > { %v2461_v32 = vmax.f32 %v2438_v6, 0.0 }
 0x2be   : > { %v2471_v27 = vpack.c.bf16 %v2461_v32, %v2460_v5 }
 0x2c0   : > { %2910 = vmatmul.msk.bf16.gmra.mxu2 %vm2196_vm1, %v2471_v27 }
 0x2c6   : > { %v2445_v30 = vpop.f32.mrf.mxu3 }
 0x2c7   : > { %v2446_v36 = vadd.f32 %v3003_v26, %v2445_v30 }
 0x2c9   : > { %v2464_v40 = vmax.f32 %v2446_v36, 0.0 }
 0x2ce   : > { %v2447_v4 = vpop.f32.mrf.mxu3 }
 0x2cf   : > { %v2448_v55 = vadd.f32 %v3003_v26, %v2447_v4 }
 0x2d0   : > { %2911 = vmatmul.msk.bf16.gmra.mxu2 %vm2196_vm1, %v2472_v0 }
 0x2d1   : > { %v2465_v59 = vmax.f32 %v2448_v55, 0.0 }
 0x2d3   : > { %v2473_v61 = vpack.c.bf16 %v2465_v59, %v2464_v40 }
 0x2d5   : > { %2912 = vmatmul.msk.bf16.vlgmr.msra.gmra.mxu3 %vm2196_vm1, %v2473_v61 }
 0x2e6   : > { %v2515_v24 = vpop.f32.mrf.mxu2 }
 0x2e7   : > { %v2516_v43 = vadd.f32 %v4160_v62, %v2515_v24 }
 0x2e9   : > { %v2555_v47 = vmax.f32 %v2516_v43, 0.0 }
 0x2eb   : > { %2571 = vst.msk [vmem:[%s4166_s22] sm:$0xff] %vm2196_vm1, %v2555_v47 }
 0x2ee   : > { %v2517_v16 = vpop.f32.mrf.mxu2 }
 0x2ef   : > { %v2518_v50 = vadd.f32 %v4160_v62, %v2517_v16 }
 0x2f1   : > { %v2556_v22 = vmax.f32 %v2518_v50, 0.0 }
 0x2f3   : > { %2572 = vst.msk [vmem:[%s4166_s22 + $0x8] sm:$0xff] %vm2196_vm1, %v2556_v22 }
 0x2f6   : > { %v2520_v12 = vpop.f32.mrf.mxu2 }
 0x2f7   : > { %v2521_v26 = vadd.f32 %v4160_v62, %v2520_v12 }
 0x2f9   : > { %v2557_v44 = vmax.f32 %v2521_v26, 0.0 }
 0x2fb   : > { %2573 = vst.msk [vmem:[%s4166_s22 + $0x10] sm:$0xff] %vm2196_vm1, %v2557_v44 }
 0x2fe   : > { %v2522_v35 = vpop.f32.mrf.mxu2 }
 0x2ff   : > { %v2523_v29 = vadd.f32 %v4160_v62, %v2522_v35 }
 0x301   : > { %v2558_v7 = vmax.f32 %v2523_v29, 0.0 }
 0x303   : > { %2574 = vst.msk [vmem:[%s4166_s22 + $0x18] sm:$0xff] %vm2196_vm1, %v2558_v7 }
 0x306   : > { %v2525_v17 = vpop.f32.mrf.mxu2 }
 0x307   : > { %v2526_v48 = vadd.f32 %v4160_v62, %v2525_v17 }
 0x309   : > { %v2559_v58 = vmax.f32 %v2526_v48, 0.0 }
 0x30b   : > { %2575 = vst.msk [vmem:[%s4166_s22 + $0x20] sm:$0xff] %vm2196_vm1, %v2559_v58 }
 0x30e   : > { %v2527_v21 = vpop.f32.mrf.mxu2 }
 0x30f   : > { %v2528_v28 = vadd.f32 %v4160_v62, %v2527_v21 }
 0x311   : > { %v2560_v38 = vmax.f32 %v2528_v28, 0.0 }
 0x313   : > { %2576 = vst.msk [vmem:[%s4166_s22 + $0x28] sm:$0xff] %vm2196_vm1, %v2560_v38 }
 0x316   : > { %v2530_v15 = vpop.f32.mrf.mxu2 }
 0x317   : > { %v2531_v3 = vadd.f32 %v4160_v62, %v2530_v15 }
 0x319   : > { %v2561_v1 = vmax.f32 %v2531_v3, 0.0 }
 0x31b   : > { %2577 = vst.msk [vmem:[%s4166_s22 + $0x30] sm:$0xff] %vm2196_vm1, %v2561_v1 }
 0x31e   : > { %v2532_v45 = vpop.f32.mrf.mxu2 }
 0x31f   : > { %v2533_v41 = vadd.f32 %v4160_v62, %v2532_v45 }
 0x321   : > { %v2562_v54 = vmax.f32 %v2533_v41, 0.0 }
 0x323   : > { %2578 = vst.msk [vmem:[%s4166_s22 + $0x38] sm:$0xff] %vm2196_vm1, %v2562_v54 }
 0x326   : > { %v2535_v53 = vpop.f32.mrf.mxu2 }
 0x327   : > { %v2536_v60 = vadd.f32 %v4160_v62, %v2535_v53 }
 0x329   : > { %v2563_v52 = vmax.f32 %v2536_v60, 0.0 }
 0x32b   : > { %2579 = vst.msk [vmem:[%s4166_s22 + $0x40] sm:$0xff] %vm2196_vm1, %v2563_v52 }
 0x32e   : > { %v2537_v9 = vpop.f32.mrf.mxu2 }
 0x32f   : > { %v2538_v56 = vadd.f32 %v4160_v62, %v2537_v9 }
 0x331   : > { %v2564_v51 = vmax.f32 %v2538_v56, 0.0 }
 0x333   : > { %2580 = vst.msk [vmem:[%s4166_s22 + $0x48] sm:$0xff] %vm2196_vm1, %v2564_v51 }
 0x343   : > { %v2540_v19 = vpop.f32.mrf.mxu2 }
 0x344   : > { %v2541_v46 = vadd.f32 %v4160_v62, %v2540_v19 }
 0x346   : > { %v2565_v13 = vmax.f32 %v2541_v46, 0.0 }
 0x348   : > { %2581 = vst.msk [vmem:[%s4166_s22 + $0x50] sm:$0xff] %vm2196_vm1, %v2565_v13 }
 0x34b   : > { %v2542_v37 = vpop.f32.mrf.mxu2 }
 0x34c   : > { %v2543_v49 = vadd.f32 %v4160_v62, %v2542_v37 }
 0x34e   : > { %v2566_v18 = vmax.f32 %v2543_v49, 0.0 }
 0x350   : > { %2582 = vst.msk [vmem:[%s4166_s22 + $0x58] sm:$0xff] %vm2196_vm1, %v2566_v18 }
 0x353   : > { %v2545_v39 = vpop.f32.mrf.mxu2 }
 0x354   : > { %v2546_v8 = vadd.f32 %v4160_v62, %v2545_v39 }
 0x356   : > { %v2567_v23 = vmax.f32 %v2546_v8, 0.0 }
 0x358   : > { %2583 = vst.msk [vmem:[%s4166_s22 + $0x60] sm:$0xff] %vm2196_vm1, %v2567_v23  ;;  %v2550_v34 = vpop.f32.mrf.mxu3 }
 0x359   : > { %v2551_v33 = vadd.f32 %v4160_v62, %v2550_v34 }
 0x35b   : > { %v2569_v2 = vmax.f32 %v2551_v33, 0.0  ;;  %v2547_v63 = vpop.f32.mrf.mxu2 }
 0x35c   : > { %v2548_v14 = vadd.f32 %v4160_v62, %v2547_v63 }
 0x35d   : > { %2585 = vst.msk [vmem:[%s4166_s22 + $0x70] sm:$0xff] %vm2196_vm1, %v2569_v2 }
 0x35e   : > { %v2568_v57 = vmax.f32 %v2548_v14, 0.0 }
 0x360   : > { %2584 = vst.msk [vmem:[%s4166_s22 + $0x68] sm:$0xff] %vm2196_vm1, %v2568_v57  ;;  %v2552_v25 = vpop.f32.mrf.mxu3 }
 0x361   : > { %v2553_v6 = vadd.f32 %v4160_v62, %v2552_v25 }
 0x363   : > { %v2570_v5 = vmax.f32 %v2553_v6, 0.0 }
 0x365   : > { %2586 = vst.msk [vmem:[%s4166_s22 + $0x78] sm:$0xff] %vm2196_vm1, %v2570_v5 }
 0x366 PF: > { %s17_s28 = sadd.s32 1, %s3043_s28   ;;  %s4250_s24 = smov %s3035_s26 }
 0x367   : > { %p14_p9 = scmp.ge.s32.totalorder %s17_s28, 6   ;;  %s4251_s25 = smov %s3039_s27 }
 0x368   : > { %s4252_s26 = smov %s4255_s29  ;;  %s4253_s27 = smov %s4259_s30 }
 0x369   :  { %16 = sbr.rel (!%p14_p9) target bundleno = 3 (0x3), region = 84 }

</bundles_post_ra>
